<compile_context>
chip_gen: v6e
topology: v6e:2x2x1
jax: 0.10.0
libtpu: 0.0.40
codegen_flags: <defaults>
</compile_context>

<pallas_src>
import math

import jax
import jax.numpy as jnp
from jax.experimental import pallas as pl
from jax.experimental.pallas import tpu as pltpu

LN_EPS = 1e-5
_R_MAX = 128   # cap per-step rows so the confusion/LN matmul LHS stays one MXU tile (v5e)


def _cdiv(a, b):
    return -(-a // b)


def _round_up(x, m):
    return _cdiv(x, m) * m


def _row_slab_layout(K):
    """Column layout of the consolidated per-row weight/bias slab (2R rows)."""
    off, cur = {}, 0
    for name, width in (
            ('w32', 9), ('w52', 25), ('b32', 1), ('b52', 1),   # stage-2 (all 2R rows)
            ('w31', 9), ('w51', 25), ('b31', 1), ('b51', 1),   # stage-1 (top R rows)
            ('bconf', 1), ('gamma', 1), ('beta', 1),           # top R rows
            ('wfc', 2 * K), ('bfc', 2 * K)):                   # top R rows (bfc replicated)
        off[name] = (cur, width)
        cur += width
    return off, cur


def _make_kernel(H, W, C, G, K, P, Wp, proportion, slab_off):
    R = G * C
    inv_hw = 1.0 / float(H * W)

    # Static tap-offset tables (dy, dx) relative to the output pixel.
    offs5 = [(dy, dx) for dy in range(-2, 3) for dx in range(-2, 3)]       # 25 taps
    off3_idx = {(dy, dx): (dy + 1) * 3 + (dx + 1)
                for dy in range(-1, 2) for dx in range(-1, 2)}             # 9 of them

    def kernel(x_ref, mask_ref, row_ref, mat_ref, out_ref):
        def rcol(name, rows=R):                      # static slice of the row slab
            o, w = slab_off[name]
            return row_ref[0:rows, o:o + w]

        x = x_ref[...]                               # (R, P)  zero-padded flat spatial
        mask = mask_ref[...]                         # (1, P)  1.0 on the valid H*W interior
        relu = lambda a: jnp.maximum(a, 0.0)

        def dw_pair(src, w3, b3, w5, b5):
            """Depthwise 3x3 + 5x5 convs sharing one set of 25 rolled taps."""
            # TODO(synk): if a bundle dump shows VALU saturation on v5e/v6e,
            # offload this tap MAC to the MXU via a block-diag (rows, 25*rows)
            # contraction per 128-lane chunk instead of per-tap mul+adds.
            rows = src.shape[0]
            acc3 = jnp.broadcast_to(b3, (rows, P))   # bias-initialized accumulators
            acc5 = jnp.broadcast_to(b5, (rows, P))
            for t5, (dy, dx) in enumerate(offs5):
                s = dy * Wp + dx                     # flat shift of this tap
                # jnp.roll convention: roll(src, -s)[q] == src[q + s].
                tap = src if s == 0 else pltpu.roll(src, (-s) % P, 1)
                acc5 = acc5 + tap * w5[:, t5:t5 + 1]
                t3 = off3_idx.get((dy, dx))
                if t3 is not None:
                    acc3 = acc3 + tap * w3[:, t3:t3 + 1]
            return acc3, acc5

        # ---- DMSRB stage 1: 3x3 & 5x5 depthwise on x, 25 shared rolled taps ----
        a31, a51 = dw_pair(x, rcol('w31'), rcol('b31'), rcol('w51'), rcol('b51'))
        # Masking gives stage 2 valid zero padding; the (2R, P) stack is exactly
        # the module's concat [out_3_1, out_5_1] laid out on sublanes.
        m1 = jnp.concatenate([relu(a31), relu(a51)], axis=0) * mask        # (2R, P)

        # ---- DMSRB stage 2: ONE dw_pair over the (2R, P) stack (stacked weights) ----
        a32, a52 = dw_pair(m1, rcol('w32', 2 * R), rcol('b32', 2 * R),
                           rcol('w52', 2 * R), rcol('b52', 2 * R))

        # ---- 1x1 confusion conv: two accumulated block-diag dots (no 4R concat) ----
        conf = jnp.dot(mat_ref[:, 0:2 * R], relu(a32),
                       preferred_element_type=jnp.float32)
        conf = conf + jnp.dot(mat_ref[:, 2 * R:4 * R], relu(a52),
                              preferred_element_type=jnp.float32)
        out = conf + rcol('bconf') + x                                     # residual

        # ---- channel LayerNorm (stats via tiny block-diag matmuls) + ReLU ----
        # Padding-band / lane-tail pixels hold finite garbage here; var+eps > 0
        # keeps rsqrt safe and they are masked out again before pooling.
        avgc = mat_ref[:, 4 * R:5 * R]
        mean = jnp.dot(avgc, out, preferred_element_type=jnp.float32)
        cen = out - mean
        var = jnp.dot(avgc, cen * cen, preferred_element_type=jnp.float32)
        y = cen * jax.lax.rsqrt(var + LN_EPS)
        y = relu(y * rcol('gamma') + rcol('beta'))

        # ---- global average pool over the valid H*W pixels ----
        pooled = jnp.sum(y * mask, axis=1, keepdims=True) * inv_hw         # (R, 1)

        # ---- fc_alpha & fc_theta fused into one stacked (C, 2K) projection ----
        # TODO(synk): dropout1/dropout2 are identity here (inference mode), no RNG.
        contrib = pooled * rcol('wfc')                                     # (R, 2K)
        fc = jnp.dot(mat_ref[:, 5 * R:6 * R], contrib,
                     preferred_element_type=jnp.float32)                   # rows 0..G-1 valid
        fc = fc + rcol('bfc')                                              # alpha bias (theta half is 0)
        lane = jax.lax.broadcasted_iota(jnp.int32, (R, 2 * K), 1)
        alpha = jax.nn.sigmoid(fc)
        theta = (fc / (1.0 + jnp.abs(fc))) * proportion
        out_ref[...] = jnp.where(lane < K, alpha, theta)

    return kernel


def mrouting_forward(x_nchw, params, kernel_number, proportion_deg=40.0):
    B, C, H, W = x_nchw.shape
    K = kernel_number
    prop = proportion_deg / 180.0 * math.pi
    Hp, Wp = H + 4, W + 4
    # Lane-dense flattened spatial length; the explicit tail of >= 2*Wp + 2 zero
    # lanes guarantees circular roll wraparound never reaches valid-pixel taps.
    P = _round_up(Hp * Wp + 2 * Wp + 2, 128)

    # ---- batch-group fold: large R per step, >= 2 steps when B >= 2, pad batch ----
    g_cap = max(1, _R_MAX // C)
    steps = max(2, _cdiv(B, g_cap)) if B >= 2 else 1
    G = min(g_cap, max(_cdiv(B, steps), _cdiv(8, C)))   # keep >= 8 sublane rows
    B_pad = steps * G
    R = G * C

    # ---- input: NCHW -> pad batch -> zero-pad spatial by 2 -> flatten onto lanes ----
    x = x_nchw.astype(jnp.float32)
    if B_pad > B:
        x = jnp.pad(x, ((0, B_pad - B), (0, 0), (0, 0), (0, 0)))
    xpad = jnp.pad(x, ((0, 0), (0, 0), (2, 2), (2, 2)))                   # (B_pad,C,Hp,Wp)
    xflat = jnp.pad(xpad.reshape(B_pad * C, Hp * Wp),
                    ((0, 0), (0, P - Hp * Wp)))                           # (B_pad*C, P)
    x3 = xflat.reshape(steps, R, P)

    # Interior (valid pixel) mask on the flattened padded spatial axis.
    yy, xx = jnp.meshgrid(jnp.arange(Hp), jnp.arange(Wp), indexing='ij')
    interior = ((yy >= 2) & (yy < 2 + H) & (xx >= 2) & (xx < 2 + W))
    mask = jnp.pad(interior.reshape(1, Hp * Wp).astype(jnp.float32),
                   ((0, 0), (0, P - Hp * Wp)))                            # (1, P)

    p = params

    # ---- consolidated per-row slab (2R rows; row = g*C + c, stage-2 rows stacked) ----
    def rows(w_tc):        # (taps, C) -> (R, taps)
        return jnp.tile(w_tc.T, (G, 1)).astype(jnp.float32)

    def col(b_1c):         # (1, C) -> (R, 1)
        return jnp.tile(b_1c.reshape(-1, 1), (G, 1)).astype(jnp.float32)

    def two(top, bot=None):  # place a piece on the (2R, width) row grid
        return jnp.concatenate(
            [top, bot if bot is not None else jnp.zeros_like(top)], axis=0)

    slab_off, _ = _row_slab_layout(K)
    pieces = {
        'w32': two(rows(p['w32'][:, :C]), rows(p['w32'][:, C:])),
        'w52': two(rows(p['w52'][:, :C]), rows(p['w52'][:, C:])),
        'b32': two(col(p['b32'][:, :C]), col(p['b32'][:, C:])),
        'b52': two(col(p['b52'][:, :C]), col(p['b52'][:, C:])),
        'w31': two(rows(p['w31'])),
        'w51': two(rows(p['w51'])),
        'b31': two(col(p['b31'])),
        'b51': two(col(p['b51'])),
        'bconf': two(col(p['bconf'])),
        'gamma': two(col(p['gamma'])),
        'beta': two(col(p['beta'])),
        'wfc': two(jnp.tile(jnp.concatenate([p['wa'], p['wt']], axis=1), (G, 1))),
        'bfc': jnp.tile(jnp.concatenate([p['ba'], jnp.zeros((1, K), jnp.float32)],
                                        axis=1), (2 * R, 1)),
    }
    rowslab = jnp.concatenate([pieces[name].astype(jnp.float32)
                               for name in slab_off], axis=1)             # (2R, Ncols)

    # ---- matrix slab (R, 6R): confusion block-diag weights | LN avg | group-sum ----
    eye_g = jnp.eye(G, dtype=jnp.float32)
    wc = p['wconf'].astype(jnp.float32)                                   # (4C, C)

    def blk(sl):           # (R, R) block-diag piece of wconf[sl].T
        return jnp.kron(eye_g, wc[sl, :].T)

    w32conf = jnp.concatenate([blk(slice(0, C)), blk(slice(C, 2 * C))], axis=1)
    w52conf = jnp.concatenate([blk(slice(2 * C, 3 * C)), blk(slice(3 * C, 4 * C))], axis=1)
    avgc = jnp.kron(eye_g, jnp.full((C, C), 1.0 / C, jnp.float32))        # (R, R)
    sumpad = jnp.concatenate(
        [jnp.kron(eye_g, jnp.ones((1, C), jnp.float32)),                  # (G, R)
         jnp.zeros((R - G, R), jnp.float32)], axis=0)                     # -> (R, R)
    matslab = jnp.concatenate([w32conf, w52conf, avgc, sumpad], axis=1)   # (R, 6R)

    kernel = _make_kernel(H, W, C, G, K, P, Wp, prop, slab_off)

    operands = (x3, mask, rowslab, matslab)
    in_specs = [pl.BlockSpec((None, R, P), lambda i: (i, 0, 0)),
                pl.BlockSpec(mask.shape, lambda i: (0, 0)),
                pl.BlockSpec(rowslab.shape, lambda i: (0, 0)),
                pl.BlockSpec(matslab.shape, lambda i: (0, 0))]
    out_spec = pl.BlockSpec((None, R, 2 * K), lambda i: (i, 0, 0))

    # VMEM limit: ~3/4 of this chip's VMEM (v7x has 64 MiB/TC, v5e/v6e 128 MiB).
    try:
        vmem_cap = int(pltpu.get_tpu_info().vmem_capacity_bytes)
    except Exception:
        vmem_cap = 64 * 1024 * 1024
    vmem_limit = min((vmem_cap * 3) // 4, 100 * 1024 * 1024)

    # TODO(synk): for production H*W*C too large to keep one image resident, add
    # an H-strip grid axis with a 2-row halo, sizing strips against vmem_limit.
    fc = pl.pallas_call(
        kernel,
        grid_spec=pltpu.PrefetchScalarGridSpec(
            num_scalar_prefetch=0,
            grid=(steps,),
            in_specs=in_specs,
            out_specs=out_spec),
        out_shape=jax.ShapeDtypeStruct((steps, R, 2 * K), jnp.float32),
        compiler_params=pltpu.CompilerParams(
            dimension_semantics=("parallel",),
            vmem_limit_bytes=vmem_limit),
    )(*operands)

    fc = fc[:, :G, :].reshape(B_pad, 2 * K)[:B]
    return fc[:, :K], fc[:, K:]


def init_params(key, C, K):
    ks = jax.random.split(key, 12)

    def tn(k, shape, std=0.02):
        return (std * jax.random.truncated_normal(k, -2.0, 2.0, shape)).astype(jnp.float32)

    def small(k, shape):
        return (0.05 * jax.random.normal(k, shape)).astype(jnp.float32)

    p = {}
    # depthwise weights stored as (k*k, channels); biases as (1, channels)
    p['w31'] = tn(ks[0], (9, C));        p['b31'] = small(ks[1], (1, C))
    p['w51'] = tn(ks[2], (25, C));       p['b51'] = small(ks[3], (1, C))
    p['w32'] = tn(ks[4], (9, 2 * C));    p['b32'] = small(ks[5], (1, 2 * C))
    p['w52'] = tn(ks[6], (25, 2 * C));   p['b52'] = small(ks[7], (1, 2 * C))
    p['wconf'] = (0.1 * jax.random.normal(ks[8], (4 * C, C))).astype(jnp.float32)
    p['bconf'] = small(ks[9], (1, C))
    p['gamma'] = jnp.ones((1, C), jnp.float32)    # LayerNorm weight init
    p['beta'] = jnp.zeros((1, C), jnp.float32)    # LayerNorm bias init
    p['wa'] = tn(ks[10], (C, K));        p['ba'] = jnp.zeros((1, K), jnp.float32)
    p['wt'] = tn(ks[11], (C, K))
    return p


def mrouting_reference(x_nchw, p, K, proportion_deg=40.0):
    """Pure-JAX reference (uses lax.conv for the depthwise convs)."""
    prop = proportion_deg / 180.0 * math.pi
    x = jnp.transpose(x_nchw, (0, 2, 3, 1)).astype(jnp.float32)
    C = x.shape[-1]

    def dw(inp, wflat, brow, k, pad):
        Cc = inp.shape[-1]
        w = wflat.reshape(k, k, 1, Cc)
        out = jax.lax.conv_general_dilated(
            inp, w, (1, 1), [(pad, pad), (pad, pad)],
            dimension_numbers=('NHWC', 'HWIO', 'NHWC'),
            feature_group_count=Cc)
        return out + brow.reshape(1, 1, 1, Cc)

    o31 = jax.nn.relu(dw(x, p['w31'], p['b31'], 3, 1))
    o51 = jax.nn.relu(dw(x, p['w51'], p['b51'], 5, 2))
    in2 = jnp.concatenate([o31, o51], -1)
    o32 = jax.nn.relu(dw(in2, p['w32'], p['b32'], 3, 1))
    o52 = jax.nn.relu(dw(in2, p['w52'], p['b52'], 5, 2))
    in3 = jnp.concatenate([o32, o52], -1)
    out = jnp.einsum('bhwi,io->bhwo', in3, p['wconf']) + p['bconf'].reshape(1, 1, 1, C)
    out = out + x
    mean = out.mean(-1, keepdims=True)
    var = ((out - mean) ** 2).mean(-1, keepdims=True)
    out = (out - mean) * jax.lax.rsqrt(var + LN_EPS)
    out = out * p['gamma'].reshape(1, 1, 1, C) + p['beta'].reshape(1, 1, 1, C)
    out = jax.nn.relu(out)
    pooled = out.mean(axis=(1, 2))                         # (B, C)
    alphas = jax.nn.sigmoid(pooled @ p['wa'] + p['ba'].reshape(1, -1))
    t = pooled @ p['wt']
    angles = (t / (1.0 + jnp.abs(t))) * prop
    return alphas, angles


if __name__ == "__main__":
    B, C, H, W = 2, 4, 16, 16
    K = 8  # kernel_number

    key = jax.random.PRNGKey(0)
    kx, kp = jax.random.split(key)
    x = jax.random.normal(kx, (B, C, H, W), jnp.float32)
    params = init_params(kp, C, K)

    alphas, angles = mrouting_forward(x, params, K)
    jax.block_until_ready((alphas, angles))

    ref_a, ref_t = mrouting_reference(x, params, K)
    assert alphas.shape == (B, K) and angles.shape == (B, K)
    assert jnp.allclose(alphas, ref_a, atol=2e-3, rtol=2e-3), "alphas mismatch"
    assert jnp.allclose(angles, ref_t, atol=2e-3, rtol=2e-3), "angles mismatch"
    print("KERNEL_OK")
</pallas_src>

<mosaic_0001>
module attributes {stable_mosaic.version = 11 : i64} {
  func.func @kernel(%arg0: i32, %arg1: memref<1x8x512xf32, #tpu.memory_space<vmem>>, %arg2: memref<1x512xf32, #tpu.memory_space<vmem>>, %arg3: memref<16x107xf32, #tpu.memory_space<vmem>>, %arg4: memref<8x48xf32, #tpu.memory_space<vmem>>, %arg5: memref<1x8x16xf32, #tpu.memory_space<vmem>>) attributes {dimension_semantics = [#tpu.dimension_semantics<parallel>], iteration_bounds = array<i64: 2>, scalar_prefetch = 0 : i64, scratch_operands = 0 : i64, tpu.core_type = #tpu.core_type<tc>, window_params = [{transform_indices = @transform_0, window_bounds = array<i64: 1, 8, 512>}, {pipeline_mode = #tpu.pipeline_mode<synchronous>, transform_indices = @transform_1, window_bounds = array<i64: 1, 512>}, {pipeline_mode = #tpu.pipeline_mode<synchronous>, transform_indices = @transform_2, window_bounds = array<i64: 16, 107>}, {pipeline_mode = #tpu.pipeline_mode<synchronous>, transform_indices = @transform_3, window_bounds = array<i64: 8, 48>}, {transform_indices = @transform_4, window_bounds = array<i64: 1, 8, 16>}]} {
    %c0 = arith.constant 0 : index
    %c0_0 = arith.constant 0 : index
    %c0_1 = arith.constant 0 : index
    %0 = vector.load %arg1[%c0, %c0_0, %c0_1] : memref<1x8x512xf32, #tpu.memory_space<vmem>>, vector<1x8x512xf32>
    %1 = vector.shape_cast %0 : vector<1x8x512xf32> to vector<8x512xf32>
    %c0_2 = arith.constant 0 : index
    %c0_3 = arith.constant 0 : index
    %2 = vector.load %arg2[%c0_2, %c0_3] : memref<1x512xf32, #tpu.memory_space<vmem>>, vector<1x512xf32>
    %c0_4 = arith.constant 0 : index
    %c36 = arith.constant 36 : index
    %3 = vector.load %arg3[%c0_4, %c36] : memref<16x107xf32, #tpu.memory_space<vmem>>, vector<8x9xf32>
    %c0_5 = arith.constant 0 : index
    %c70 = arith.constant 70 : index
    %4 = vector.load %arg3[%c0_5, %c70] : memref<16x107xf32, #tpu.memory_space<vmem>>, vector<8x1xf32>
    %c0_6 = arith.constant 0 : index
    %c45 = arith.constant 45 : index
    %5 = vector.load %arg3[%c0_6, %c45] : memref<16x107xf32, #tpu.memory_space<vmem>>, vector<8x25xf32>
    %c0_7 = arith.constant 0 : index
    %c71 = arith.constant 71 : index
    %6 = vector.load %arg3[%c0_7, %c71] : memref<16x107xf32, #tpu.memory_space<vmem>>, vector<8x1xf32>
    %7 = vector.shape_cast %4 : vector<8x1xf32> to vector<8x1xf32>
    %8 = vector.broadcast %7 : vector<8x1xf32> to vector<8x512xf32>
    %9 = vector.shape_cast %6 : vector<8x1xf32> to vector<8x1xf32>
    %10 = vector.broadcast %9 : vector<8x1xf32> to vector<8x512xf32>
    %c42_i32 = arith.constant 42 : i32
    %11 = tpu.dynamic_rotate %1 by %c42_i32 dim 1 : vector<8x512xf32>, i32 -> vector<8x512xf32>
    %12 = vector.extract_strided_slice %5 {offsets = [0, 0], sizes = [8, 1], strides = [1, 1]} : vector<8x25xf32> to vector<8x1xf32>
    %13 = vector.broadcast %12 : vector<8x1xf32> to vector<8x512xf32>
    %14 = arith.mulf %11, %13 : vector<8x512xf32>
    %15 = arith.addf %10, %14 : vector<8x512xf32>
    %c41_i32 = arith.constant 41 : i32
    %16 = tpu.dynamic_rotate %1 by %c41_i32 dim 1 : vector<8x512xf32>, i32 -> vector<8x512xf32>
    %17 = vector.extract_strided_slice %5 {offsets = [0, 1], sizes = [8, 1], strides = [1, 1]} : vector<8x25xf32> to vector<8x1xf32>
    %18 = vector.broadcast %17 : vector<8x1xf32> to vector<8x512xf32>
    %19 = arith.mulf %16, %18 : vector<8x512xf32>
    %20 = arith.addf %15, %19 : vector<8x512xf32>
    %c40_i32 = arith.constant 40 : i32
    %21 = tpu.dynamic_rotate %1 by %c40_i32 dim 1 : vector<8x512xf32>, i32 -> vector<8x512xf32>
    %22 = vector.extract_strided_slice %5 {offsets = [0, 2], sizes = [8, 1], strides = [1, 1]} : vector<8x25xf32> to vector<8x1xf32>
    %23 = vector.broadcast %22 : vector<8x1xf32> to vector<8x512xf32>
    %24 = arith.mulf %21, %23 : vector<8x512xf32>
    %25 = arith.addf %20, %24 : vector<8x512xf32>
    %c39_i32 = arith.constant 39 : i32
    %26 = tpu.dynamic_rotate %1 by %c39_i32 dim 1 : vector<8x512xf32>, i32 -> vector<8x512xf32>
    %27 = vector.extract_strided_slice %5 {offsets = [0, 3], sizes = [8, 1], strides = [1, 1]} : vector<8x25xf32> to vector<8x1xf32>
    %28 = vector.broadcast %27 : vector<8x1xf32> to vector<8x512xf32>
    %29 = arith.mulf %26, %28 : vector<8x512xf32>
    %30 = arith.addf %25, %29 : vector<8x512xf32>
    %c38_i32 = arith.constant 38 : i32
    %31 = tpu.dynamic_rotate %1 by %c38_i32 dim 1 : vector<8x512xf32>, i32 -> vector<8x512xf32>
    %32 = vector.extract_strided_slice %5 {offsets = [0, 4], sizes = [8, 1], strides = [1, 1]} : vector<8x25xf32> to vector<8x1xf32>
    %33 = vector.broadcast %32 : vector<8x1xf32> to vector<8x512xf32>
    %34 = arith.mulf %31, %33 : vector<8x512xf32>
    %35 = arith.addf %30, %34 : vector<8x512xf32>
    %c22_i32 = arith.constant 22 : i32
    %36 = tpu.dynamic_rotate %1 by %c22_i32 dim 1 : vector<8x512xf32>, i32 -> vector<8x512xf32>
    %37 = vector.extract_strided_slice %5 {offsets = [0, 5], sizes = [8, 1], strides = [1, 1]} : vector<8x25xf32> to vector<8x1xf32>
    %38 = vector.broadcast %37 : vector<8x1xf32> to vector<8x512xf32>
    %39 = arith.mulf %36, %38 : vector<8x512xf32>
    %40 = arith.addf %35, %39 : vector<8x512xf32>
    %c21_i32 = arith.constant 21 : i32
    %41 = tpu.dynamic_rotate %1 by %c21_i32 dim 1 : vector<8x512xf32>, i32 -> vector<8x512xf32>
    %42 = vector.extract_strided_slice %5 {offsets = [0, 6], sizes = [8, 1], strides = [1, 1]} : vector<8x25xf32> to vector<8x1xf32>
    %43 = vector.broadcast %42 : vector<8x1xf32> to vector<8x512xf32>
    %44 = arith.mulf %41, %43 : vector<8x512xf32>
    %45 = arith.addf %40, %44 : vector<8x512xf32>
    %46 = vector.extract_strided_slice %3 {offsets = [0, 0], sizes = [8, 1], strides = [1, 1]} : vector<8x9xf32> to vector<8x1xf32>
    %47 = vector.broadcast %46 : vector<8x1xf32> to vector<8x512xf32>
    %48 = arith.mulf %41, %47 : vector<8x512xf32>
    %49 = arith.addf %8, %48 : vector<8x512xf32>
    %c20_i32 = arith.constant 20 : i32
    %50 = tpu.dynamic_rotate %1 by %c20_i32 dim 1 : vector<8x512xf32>, i32 -> vector<8x512xf32>
    %51 = vector.extract_strided_slice %5 {offsets = [0, 7], sizes = [8, 1], strides = [1, 1]} : vector<8x25xf32> to vector<8x1xf32>
    %52 = vector.broadcast %51 : vector<8x1xf32> to vector<8x512xf32>
    %53 = arith.mulf %50, %52 : vector<8x512xf32>
    %54 = arith.addf %45, %53 : vector<8x512xf32>
    %55 = vector.extract_strided_slice %3 {offsets = [0, 1], sizes = [8, 1], strides = [1, 1]} : vector<8x9xf32> to vector<8x1xf32>
    %56 = vector.broadcast %55 : vector<8x1xf32> to vector<8x512xf32>
    %57 = arith.mulf %50, %56 : vector<8x512xf32>
    %58 = arith.addf %49, %57 : vector<8x512xf32>
    %c19_i32 = arith.constant 19 : i32
    %59 = tpu.dynamic_rotate %1 by %c19_i32 dim 1 : vector<8x512xf32>, i32 -> vector<8x512xf32>
    %60 = vector.extract_strided_slice %5 {offsets = [0, 8], sizes = [8, 1], strides = [1, 1]} : vector<8x25xf32> to vector<8x1xf32>
    %61 = vector.broadcast %60 : vector<8x1xf32> to vector<8x512xf32>
    %62 = arith.mulf %59, %61 : vector<8x512xf32>
    %63 = arith.addf %54, %62 : vector<8x512xf32>
    %64 = vector.extract_strided_slice %3 {offsets = [0, 2], sizes = [8, 1], strides = [1, 1]} : vector<8x9xf32> to vector<8x1xf32>
    %65 = vector.broadcast %64 : vector<8x1xf32> to vector<8x512xf32>
    %66 = arith.mulf %59, %65 : vector<8x512xf32>
    %67 = arith.addf %58, %66 : vector<8x512xf32>
    %c18_i32 = arith.constant 18 : i32
    %68 = tpu.dynamic_rotate %1 by %c18_i32 dim 1 : vector<8x512xf32>, i32 -> vector<8x512xf32>
    %69 = vector.extract_strided_slice %5 {offsets = [0, 9], sizes = [8, 1], strides = [1, 1]} : vector<8x25xf32> to vector<8x1xf32>
    %70 = vector.broadcast %69 : vector<8x1xf32> to vector<8x512xf32>
    %71 = arith.mulf %68, %70 : vector<8x512xf32>
    %72 = arith.addf %63, %71 : vector<8x512xf32>
    %c2_i32 = arith.constant 2 : i32
    %73 = tpu.dynamic_rotate %1 by %c2_i32 dim 1 : vector<8x512xf32>, i32 -> vector<8x512xf32>
    %74 = vector.extract_strided_slice %5 {offsets = [0, 10], sizes = [8, 1], strides = [1, 1]} : vector<8x25xf32> to vector<8x1xf32>
    %75 = vector.broadcast %74 : vector<8x1xf32> to vector<8x512xf32>
    %76 = arith.mulf %73, %75 : vector<8x512xf32>
    %77 = arith.addf %72, %76 : vector<8x512xf32>
    %c1_i32 = arith.constant 1 : i32
    %78 = tpu.dynamic_rotate %1 by %c1_i32 dim 1 : vector<8x512xf32>, i32 -> vector<8x512xf32>
    %79 = vector.extract_strided_slice %5 {offsets = [0, 11], sizes = [8, 1], strides = [1, 1]} : vector<8x25xf32> to vector<8x1xf32>
    %80 = vector.broadcast %79 : vector<8x1xf32> to vector<8x512xf32>
    %81 = arith.mulf %78, %80 : vector<8x512xf32>
    %82 = arith.addf %77, %81 : vector<8x512xf32>
    %83 = vector.extract_strided_slice %3 {offsets = [0, 3], sizes = [8, 1], strides = [1, 1]} : vector<8x9xf32> to vector<8x1xf32>
    %84 = vector.broadcast %83 : vector<8x1xf32> to vector<8x512xf32>
    %85 = arith.mulf %78, %84 : vector<8x512xf32>
    %86 = arith.addf %67, %85 : vector<8x512xf32>
    %87 = vector.extract_strided_slice %5 {offsets = [0, 12], sizes = [8, 1], strides = [1, 1]} : vector<8x25xf32> to vector<8x1xf32>
    %88 = vector.broadcast %87 : vector<8x1xf32> to vector<8x512xf32>
    %89 = arith.mulf %1, %88 : vector<8x512xf32>
    %90 = arith.addf %82, %89 : vector<8x512xf32>
    %91 = vector.extract_strided_slice %3 {offsets = [0, 4], sizes = [8, 1], strides = [1, 1]} : vector<8x9xf32> to vector<8x1xf32>
    %92 = vector.broadcast %91 : vector<8x1xf32> to vector<8x512xf32>
    %93 = arith.mulf %1, %92 : vector<8x512xf32>
    %94 = arith.addf %86, %93 : vector<8x512xf32>
    %c511_i32 = arith.constant 511 : i32
    %95 = tpu.dynamic_rotate %1 by %c511_i32 dim 1 : vector<8x512xf32>, i32 -> vector<8x512xf32>
    %96 = vector.extract_strided_slice %5 {offsets = [0, 13], sizes = [8, 1], strides = [1, 1]} : vector<8x25xf32> to vector<8x1xf32>
    %97 = vector.broadcast %96 : vector<8x1xf32> to vector<8x512xf32>
    %98 = arith.mulf %95, %97 : vector<8x512xf32>
    %99 = arith.addf %90, %98 : vector<8x512xf32>
    %100 = vector.extract_strided_slice %3 {offsets = [0, 5], sizes = [8, 1], strides = [1, 1]} : vector<8x9xf32> to vector<8x1xf32>
    %101 = vector.broadcast %100 : vector<8x1xf32> to vector<8x512xf32>
    %102 = arith.mulf %95, %101 : vector<8x512xf32>
    %103 = arith.addf %94, %102 : vector<8x512xf32>
    %c510_i32 = arith.constant 510 : i32
    %104 = tpu.dynamic_rotate %1 by %c510_i32 dim 1 : vector<8x512xf32>, i32 -> vector<8x512xf32>
    %105 = vector.extract_strided_slice %5 {offsets = [0, 14], sizes = [8, 1], strides = [1, 1]} : vector<8x25xf32> to vector<8x1xf32>
    %106 = vector.broadcast %105 : vector<8x1xf32> to vector<8x512xf32>
    %107 = arith.mulf %104, %106 : vector<8x512xf32>
    %108 = arith.addf %99, %107 : vector<8x512xf32>
    %c494_i32 = arith.constant 494 : i32
    %109 = tpu.dynamic_rotate %1 by %c494_i32 dim 1 : vector<8x512xf32>, i32 -> vector<8x512xf32>
    %110 = vector.extract_strided_slice %5 {offsets = [0, 15], sizes = [8, 1], strides = [1, 1]} : vector<8x25xf32> to vector<8x1xf32>
    %111 = vector.broadcast %110 : vector<8x1xf32> to vector<8x512xf32>
    %112 = arith.mulf %109, %111 : vector<8x512xf32>
    %113 = arith.addf %108, %112 : vector<8x512xf32>
    %c493_i32 = arith.constant 493 : i32
    %114 = tpu.dynamic_rotate %1 by %c493_i32 dim 1 : vector<8x512xf32>, i32 -> vector<8x512xf32>
    %115 = vector.extract_strided_slice %5 {offsets = [0, 16], sizes = [8, 1], strides = [1, 1]} : vector<8x25xf32> to vector<8x1xf32>
    %116 = vector.broadcast %115 : vector<8x1xf32> to vector<8x512xf32>
    %117 = arith.mulf %114, %116 : vector<8x512xf32>
    %118 = arith.addf %113, %117 : vector<8x512xf32>
    %119 = vector.extract_strided_slice %3 {offsets = [0, 6], sizes = [8, 1], strides = [1, 1]} : vector<8x9xf32> to vector<8x1xf32>
    %120 = vector.broadcast %119 : vector<8x1xf32> to vector<8x512xf32>
    %121 = arith.mulf %114, %120 : vector<8x512xf32>
    %122 = arith.addf %103, %121 : vector<8x512xf32>
    %c492_i32 = arith.constant 492 : i32
    %123 = tpu.dynamic_rotate %1 by %c492_i32 dim 1 : vector<8x512xf32>, i32 -> vector<8x512xf32>
    %124 = vector.extract_strided_slice %5 {offsets = [0, 17], sizes = [8, 1], strides = [1, 1]} : vector<8x25xf32> to vector<8x1xf32>
    %125 = vector.broadcast %124 : vector<8x1xf32> to vector<8x512xf32>
    %126 = arith.mulf %123, %125 : vector<8x512xf32>
    %127 = arith.addf %118, %126 : vector<8x512xf32>
    %128 = vector.extract_strided_slice %3 {offsets = [0, 7], sizes = [8, 1], strides = [1, 1]} : vector<8x9xf32> to vector<8x1xf32>
    %129 = vector.broadcast %128 : vector<8x1xf32> to vector<8x512xf32>
    %130 = arith.mulf %123, %129 : vector<8x512xf32>
    %131 = arith.addf %122, %130 : vector<8x512xf32>
    %c491_i32 = arith.constant 491 : i32
    %132 = tpu.dynamic_rotate %1 by %c491_i32 dim 1 : vector<8x512xf32>, i32 -> vector<8x512xf32>
    %133 = vector.extract_strided_slice %5 {offsets = [0, 18], sizes = [8, 1], strides = [1, 1]} : vector<8x25xf32> to vector<8x1xf32>
    %134 = vector.broadcast %133 : vector<8x1xf32> to vector<8x512xf32>
    %135 = arith.mulf %132, %134 : vector<8x512xf32>
    %136 = arith.addf %127, %135 : vector<8x512xf32>
    %137 = vector.extract_strided_slice %3 {offsets = [0, 8], sizes = [8, 1], strides = [1, 1]} : vector<8x9xf32> to vector<8x1xf32>
    %138 = vector.broadcast %137 : vector<8x1xf32> to vector<8x512xf32>
    %139 = arith.mulf %132, %138 : vector<8x512xf32>
    %140 = arith.addf %131, %139 : vector<8x512xf32>
    %c490_i32 = arith.constant 490 : i32
    %141 = tpu.dynamic_rotate %1 by %c490_i32 dim 1 : vector<8x512xf32>, i32 -> vector<8x512xf32>
    %142 = vector.extract_strided_slice %5 {offsets = [0, 19], sizes = [8, 1], strides = [1, 1]} : vector<8x25xf32> to vector<8x1xf32>
    %143 = vector.broadcast %142 : vector<8x1xf32> to vector<8x512xf32>
    %144 = arith.mulf %141, %143 : vector<8x512xf32>
    %145 = arith.addf %136, %144 : vector<8x512xf32>
    %c474_i32 = arith.constant 474 : i32
    %146 = tpu.dynamic_rotate %1 by %c474_i32 dim 1 : vector<8x512xf32>, i32 -> vector<8x512xf32>
    %147 = vector.extract_strided_slice %5 {offsets = [0, 20], sizes = [8, 1], strides = [1, 1]} : vector<8x25xf32> to vector<8x1xf32>
    %148 = vector.broadcast %147 : vector<8x1xf32> to vector<8x512xf32>
    %149 = arith.mulf %146, %148 : vector<8x512xf32>
    %150 = arith.addf %145, %149 : vector<8x512xf32>
    %c473_i32 = arith.constant 473 : i32
    %151 = tpu.dynamic_rotate %1 by %c473_i32 dim 1 : vector<8x512xf32>, i32 -> vector<8x512xf32>
    %152 = vector.extract_strided_slice %5 {offsets = [0, 21], sizes = [8, 1], strides = [1, 1]} : vector<8x25xf32> to vector<8x1xf32>
    %153 = vector.broadcast %152 : vector<8x1xf32> to vector<8x512xf32>
    %154 = arith.mulf %151, %153 : vector<8x512xf32>
    %155 = arith.addf %150, %154 : vector<8x512xf32>
    %c472_i32 = arith.constant 472 : i32
    %156 = tpu.dynamic_rotate %1 by %c472_i32 dim 1 : vector<8x512xf32>, i32 -> vector<8x512xf32>
    %157 = vector.extract_strided_slice %5 {offsets = [0, 22], sizes = [8, 1], strides = [1, 1]} : vector<8x25xf32> to vector<8x1xf32>
    %158 = vector.broadcast %157 : vector<8x1xf32> to vector<8x512xf32>
    %159 = arith.mulf %156, %158 : vector<8x512xf32>
    %160 = arith.addf %155, %159 : vector<8x512xf32>
    %c471_i32 = arith.constant 471 : i32
    %161 = tpu.dynamic_rotate %1 by %c471_i32 dim 1 : vector<8x512xf32>, i32 -> vector<8x512xf32>
    %162 = vector.extract_strided_slice %5 {offsets = [0, 23], sizes = [8, 1], strides = [1, 1]} : vector<8x25xf32> to vector<8x1xf32>
    %163 = vector.broadcast %162 : vector<8x1xf32> to vector<8x512xf32>
    %164 = arith.mulf %161, %163 : vector<8x512xf32>
    %165 = arith.addf %160, %164 : vector<8x512xf32>
    %c470_i32 = arith.constant 470 : i32
    %166 = tpu.dynamic_rotate %1 by %c470_i32 dim 1 : vector<8x512xf32>, i32 -> vector<8x512xf32>
    %167 = vector.extract_strided_slice %5 {offsets = [0, 24], sizes = [8, 1], strides = [1, 1]} : vector<8x25xf32> to vector<8x1xf32>
    %168 = vector.broadcast %167 : vector<8x1xf32> to vector<8x512xf32>
    %169 = arith.mulf %166, %168 : vector<8x512xf32>
    %170 = arith.addf %165, %169 : vector<8x512xf32>
    %cst = arith.constant 0.000000e+00 : f32
    %171 = vector.broadcast %cst : f32 to vector<8x512xf32>
    %172 = arith.maximumf %140, %171 : vector<8x512xf32>
    %cst_8 = arith.constant 0.000000e+00 : f32
    %173 = vector.broadcast %cst_8 : f32 to vector<8x512xf32>
    %174 = arith.maximumf %170, %173 : vector<8x512xf32>
    %175 = tpu.concatenate %172, %174 in 0 : vector<8x512xf32>, vector<8x512xf32> -> vector<16x512xf32>
    %176 = vector.broadcast %2 : vector<1x512xf32> to vector<16x512xf32>
    %177 = arith.mulf %175, %176 : vector<16x512xf32>
    %c0_9 = arith.constant 0 : index
    %c0_10 = arith.constant 0 : index
    %178 = vector.load %arg3[%c0_9, %c0_10] : memref<16x107xf32, #tpu.memory_space<vmem>>, vector<16x9xf32>
    %c0_11 = arith.constant 0 : index
    %c34 = arith.constant 34 : index
    %179 = vector.load %arg3[%c0_11, %c34] : memref<16x107xf32, #tpu.memory_space<vmem>>, vector<16x1xf32>
    %c0_12 = arith.constant 0 : index
    %c9 = arith.constant 9 : index
    %180 = vector.load %arg3[%c0_12, %c9] : memref<16x107xf32, #tpu.memory_space<vmem>>, vector<16x25xf32>
    %c0_13 = arith.constant 0 : index
    %c35 = arith.constant 35 : index
    %181 = vector.load %arg3[%c0_13, %c35] : memref<16x107xf32, #tpu.memory_space<vmem>>, vector<16x1xf32>
    %182 = vector.shape_cast %179 : vector<16x1xf32> to vector<16x1xf32>
    %183 = vector.broadcast %182 : vector<16x1xf32> to vector<16x512xf32>
    %184 = vector.shape_cast %181 : vector<16x1xf32> to vector<16x1xf32>
    %185 = vector.broadcast %184 : vector<16x1xf32> to vector<16x512xf32>
    %c42_i32_14 = arith.constant 42 : i32
    %186 = tpu.dynamic_rotate %177 by %c42_i32_14 dim 1 : vector<16x512xf32>, i32 -> vector<16x512xf32>
    %187 = vector.extract_strided_slice %180 {offsets = [0, 0], sizes = [16, 1], strides = [1, 1]} : vector<16x25xf32> to vector<16x1xf32>
    %188 = vector.broadcast %187 : vector<16x1xf32> to vector<16x512xf32>
    %189 = arith.mulf %186, %188 : vector<16x512xf32>
    %190 = arith.addf %185, %189 : vector<16x512xf32>
    %c41_i32_15 = arith.constant 41 : i32
    %191 = tpu.dynamic_rotate %177 by %c41_i32_15 dim 1 : vector<16x512xf32>, i32 -> vector<16x512xf32>
    %192 = vector.extract_strided_slice %180 {offsets = [0, 1], sizes = [16, 1], strides = [1, 1]} : vector<16x25xf32> to vector<16x1xf32>
    %193 = vector.broadcast %192 : vector<16x1xf32> to vector<16x512xf32>
    %194 = arith.mulf %191, %193 : vector<16x512xf32>
    %195 = arith.addf %190, %194 : vector<16x512xf32>
    %c40_i32_16 = arith.constant 40 : i32
    %196 = tpu.dynamic_rotate %177 by %c40_i32_16 dim 1 : vector<16x512xf32>, i32 -> vector<16x512xf32>
    %197 = vector.extract_strided_slice %180 {offsets = [0, 2], sizes = [16, 1], strides = [1, 1]} : vector<16x25xf32> to vector<16x1xf32>
    %198 = vector.broadcast %197 : vector<16x1xf32> to vector<16x512xf32>
    %199 = arith.mulf %196, %198 : vector<16x512xf32>
    %200 = arith.addf %195, %199 : vector<16x512xf32>
    %c39_i32_17 = arith.constant 39 : i32
    %201 = tpu.dynamic_rotate %177 by %c39_i32_17 dim 1 : vector<16x512xf32>, i32 -> vector<16x512xf32>
    %202 = vector.extract_strided_slice %180 {offsets = [0, 3], sizes = [16, 1], strides = [1, 1]} : vector<16x25xf32> to vector<16x1xf32>
    %203 = vector.broadcast %202 : vector<16x1xf32> to vector<16x512xf32>
    %204 = arith.mulf %201, %203 : vector<16x512xf32>
    %205 = arith.addf %200, %204 : vector<16x512xf32>
    %c38_i32_18 = arith.constant 38 : i32
    %206 = tpu.dynamic_rotate %177 by %c38_i32_18 dim 1 : vector<16x512xf32>, i32 -> vector<16x512xf32>
    %207 = vector.extract_strided_slice %180 {offsets = [0, 4], sizes = [16, 1], strides = [1, 1]} : vector<16x25xf32> to vector<16x1xf32>
    %208 = vector.broadcast %207 : vector<16x1xf32> to vector<16x512xf32>
    %209 = arith.mulf %206, %208 : vector<16x512xf32>
    %210 = arith.addf %205, %209 : vector<16x512xf32>
    %c22_i32_19 = arith.constant 22 : i32
    %211 = tpu.dynamic_rotate %177 by %c22_i32_19 dim 1 : vector<16x512xf32>, i32 -> vector<16x512xf32>
    %212 = vector.extract_strided_slice %180 {offsets = [0, 5], sizes = [16, 1], strides = [1, 1]} : vector<16x25xf32> to vector<16x1xf32>
    %213 = vector.broadcast %212 : vector<16x1xf32> to vector<16x512xf32>
    %214 = arith.mulf %211, %213 : vector<16x512xf32>
    %215 = arith.addf %210, %214 : vector<16x512xf32>
    %c21_i32_20 = arith.constant 21 : i32
    %216 = tpu.dynamic_rotate %177 by %c21_i32_20 dim 1 : vector<16x512xf32>, i32 -> vector<16x512xf32>
    %217 = vector.extract_strided_slice %180 {offsets = [0, 6], sizes = [16, 1], strides = [1, 1]} : vector<16x25xf32> to vector<16x1xf32>
    %218 = vector.broadcast %217 : vector<16x1xf32> to vector<16x512xf32>
    %219 = arith.mulf %216, %218 : vector<16x512xf32>
    %220 = arith.addf %215, %219 : vector<16x512xf32>
    %221 = vector.extract_strided_slice %178 {offsets = [0, 0], sizes = [16, 1], strides = [1, 1]} : vector<16x9xf32> to vector<16x1xf32>
    %222 = vector.broadcast %221 : vector<16x1xf32> to vector<16x512xf32>
    %223 = arith.mulf %216, %222 : vector<16x512xf32>
    %224 = arith.addf %183, %223 : vector<16x512xf32>
    %c20_i32_21 = arith.constant 20 : i32
    %225 = tpu.dynamic_rotate %177 by %c20_i32_21 dim 1 : vector<16x512xf32>, i32 -> vector<16x512xf32>
    %226 = vector.extract_strided_slice %180 {offsets = [0, 7], sizes = [16, 1], strides = [1, 1]} : vector<16x25xf32> to vector<16x1xf32>
    %227 = vector.broadcast %226 : vector<16x1xf32> to vector<16x512xf32>
    %228 = arith.mulf %225, %227 : vector<16x512xf32>
    %229 = arith.addf %220, %228 : vector<16x512xf32>
    %230 = vector.extract_strided_slice %178 {offsets = [0, 1], sizes = [16, 1], strides = [1, 1]} : vector<16x9xf32> to vector<16x1xf32>
    %231 = vector.broadcast %230 : vector<16x1xf32> to vector<16x512xf32>
    %232 = arith.mulf %225, %231 : vector<16x512xf32>
    %233 = arith.addf %224, %232 : vector<16x512xf32>
    %c19_i32_22 = arith.constant 19 : i32
    %234 = tpu.dynamic_rotate %177 by %c19_i32_22 dim 1 : vector<16x512xf32>, i32 -> vector<16x512xf32>
    %235 = vector.extract_strided_slice %180 {offsets = [0, 8], sizes = [16, 1], strides = [1, 1]} : vector<16x25xf32> to vector<16x1xf32>
    %236 = vector.broadcast %235 : vector<16x1xf32> to vector<16x512xf32>
    %237 = arith.mulf %234, %236 : vector<16x512xf32>
    %238 = arith.addf %229, %237 : vector<16x512xf32>
    %239 = vector.extract_strided_slice %178 {offsets = [0, 2], sizes = [16, 1], strides = [1, 1]} : vector<16x9xf32> to vector<16x1xf32>
    %240 = vector.broadcast %239 : vector<16x1xf32> to vector<16x512xf32>
    %241 = arith.mulf %234, %240 : vector<16x512xf32>
    %242 = arith.addf %233, %241 : vector<16x512xf32>
    %c18_i32_23 = arith.constant 18 : i32
    %243 = tpu.dynamic_rotate %177 by %c18_i32_23 dim 1 : vector<16x512xf32>, i32 -> vector<16x512xf32>
    %244 = vector.extract_strided_slice %180 {offsets = [0, 9], sizes = [16, 1], strides = [1, 1]} : vector<16x25xf32> to vector<16x1xf32>
    %245 = vector.broadcast %244 : vector<16x1xf32> to vector<16x512xf32>
    %246 = arith.mulf %243, %245 : vector<16x512xf32>
    %247 = arith.addf %238, %246 : vector<16x512xf32>
    %c2_i32_24 = arith.constant 2 : i32
    %248 = tpu.dynamic_rotate %177 by %c2_i32_24 dim 1 : vector<16x512xf32>, i32 -> vector<16x512xf32>
    %249 = vector.extract_strided_slice %180 {offsets = [0, 10], sizes = [16, 1], strides = [1, 1]} : vector<16x25xf32> to vector<16x1xf32>
    %250 = vector.broadcast %249 : vector<16x1xf32> to vector<16x512xf32>
    %251 = arith.mulf %248, %250 : vector<16x512xf32>
    %252 = arith.addf %247, %251 : vector<16x512xf32>
    %c1_i32_25 = arith.constant 1 : i32
    %253 = tpu.dynamic_rotate %177 by %c1_i32_25 dim 1 : vector<16x512xf32>, i32 -> vector<16x512xf32>
    %254 = vector.extract_strided_slice %180 {offsets = [0, 11], sizes = [16, 1], strides = [1, 1]} : vector<16x25xf32> to vector<16x1xf32>
    %255 = vector.broadcast %254 : vector<16x1xf32> to vector<16x512xf32>
    %256 = arith.mulf %253, %255 : vector<16x512xf32>
    %257 = arith.addf %252, %256 : vector<16x512xf32>
    %258 = vector.extract_strided_slice %178 {offsets = [0, 3], sizes = [16, 1], strides = [1, 1]} : vector<16x9xf32> to vector<16x1xf32>
    %259 = vector.broadcast %258 : vector<16x1xf32> to vector<16x512xf32>
    %260 = arith.mulf %253, %259 : vector<16x512xf32>
    %261 = arith.addf %242, %260 : vector<16x512xf32>
    %262 = vector.extract_strided_slice %180 {offsets = [0, 12], sizes = [16, 1], strides = [1, 1]} : vector<16x25xf32> to vector<16x1xf32>
    %263 = vector.broadcast %262 : vector<16x1xf32> to vector<16x512xf32>
    %264 = arith.mulf %177, %263 : vector<16x512xf32>
    %265 = arith.addf %257, %264 : vector<16x512xf32>
    %266 = vector.extract_strided_slice %178 {offsets = [0, 4], sizes = [16, 1], strides = [1, 1]} : vector<16x9xf32> to vector<16x1xf32>
    %267 = vector.broadcast %266 : vector<16x1xf32> to vector<16x512xf32>
    %268 = arith.mulf %177, %267 : vector<16x512xf32>
    %269 = arith.addf %261, %268 : vector<16x512xf32>
    %c511_i32_26 = arith.constant 511 : i32
    %270 = tpu.dynamic_rotate %177 by %c511_i32_26 dim 1 : vector<16x512xf32>, i32 -> vector<16x512xf32>
    %271 = vector.extract_strided_slice %180 {offsets = [0, 13], sizes = [16, 1], strides = [1, 1]} : vector<16x25xf32> to vector<16x1xf32>
    %272 = vector.broadcast %271 : vector<16x1xf32> to vector<16x512xf32>
    %273 = arith.mulf %270, %272 : vector<16x512xf32>
    %274 = arith.addf %265, %273 : vector<16x512xf32>
    %275 = vector.extract_strided_slice %178 {offsets = [0, 5], sizes = [16, 1], strides = [1, 1]} : vector<16x9xf32> to vector<16x1xf32>
    %276 = vector.broadcast %275 : vector<16x1xf32> to vector<16x512xf32>
    %277 = arith.mulf %270, %276 : vector<16x512xf32>
    %278 = arith.addf %269, %277 : vector<16x512xf32>
    %c510_i32_27 = arith.constant 510 : i32
    %279 = tpu.dynamic_rotate %177 by %c510_i32_27 dim 1 : vector<16x512xf32>, i32 -> vector<16x512xf32>
    %280 = vector.extract_strided_slice %180 {offsets = [0, 14], sizes = [16, 1], strides = [1, 1]} : vector<16x25xf32> to vector<16x1xf32>
    %281 = vector.broadcast %280 : vector<16x1xf32> to vector<16x512xf32>
    %282 = arith.mulf %279, %281 : vector<16x512xf32>
    %283 = arith.addf %274, %282 : vector<16x512xf32>
    %c494_i32_28 = arith.constant 494 : i32
    %284 = tpu.dynamic_rotate %177 by %c494_i32_28 dim 1 : vector<16x512xf32>, i32 -> vector<16x512xf32>
    %285 = vector.extract_strided_slice %180 {offsets = [0, 15], sizes = [16, 1], strides = [1, 1]} : vector<16x25xf32> to vector<16x1xf32>
    %286 = vector.broadcast %285 : vector<16x1xf32> to vector<16x512xf32>
    %287 = arith.mulf %284, %286 : vector<16x512xf32>
    %288 = arith.addf %283, %287 : vector<16x512xf32>
    %c493_i32_29 = arith.constant 493 : i32
    %289 = tpu.dynamic_rotate %177 by %c493_i32_29 dim 1 : vector<16x512xf32>, i32 -> vector<16x512xf32>
    %290 = vector.extract_strided_slice %180 {offsets = [0, 16], sizes = [16, 1], strides = [1, 1]} : vector<16x25xf32> to vector<16x1xf32>
    %291 = vector.broadcast %290 : vector<16x1xf32> to vector<16x512xf32>
    %292 = arith.mulf %289, %291 : vector<16x512xf32>
    %293 = arith.addf %288, %292 : vector<16x512xf32>
    %294 = vector.extract_strided_slice %178 {offsets = [0, 6], sizes = [16, 1], strides = [1, 1]} : vector<16x9xf32> to vector<16x1xf32>
    %295 = vector.broadcast %294 : vector<16x1xf32> to vector<16x512xf32>
    %296 = arith.mulf %289, %295 : vector<16x512xf32>
    %297 = arith.addf %278, %296 : vector<16x512xf32>
    %c492_i32_30 = arith.constant 492 : i32
    %298 = tpu.dynamic_rotate %177 by %c492_i32_30 dim 1 : vector<16x512xf32>, i32 -> vector<16x512xf32>
    %299 = vector.extract_strided_slice %180 {offsets = [0, 17], sizes = [16, 1], strides = [1, 1]} : vector<16x25xf32> to vector<16x1xf32>
    %300 = vector.broadcast %299 : vector<16x1xf32> to vector<16x512xf32>
    %301 = arith.mulf %298, %300 : vector<16x512xf32>
    %302 = arith.addf %293, %301 : vector<16x512xf32>
    %303 = vector.extract_strided_slice %178 {offsets = [0, 7], sizes = [16, 1], strides = [1, 1]} : vector<16x9xf32> to vector<16x1xf32>
    %304 = vector.broadcast %303 : vector<16x1xf32> to vector<16x512xf32>
    %305 = arith.mulf %298, %304 : vector<16x512xf32>
    %306 = arith.addf %297, %305 : vector<16x512xf32>
    %c491_i32_31 = arith.constant 491 : i32
    %307 = tpu.dynamic_rotate %177 by %c491_i32_31 dim 1 : vector<16x512xf32>, i32 -> vector<16x512xf32>
    %308 = vector.extract_strided_slice %180 {offsets = [0, 18], sizes = [16, 1], strides = [1, 1]} : vector<16x25xf32> to vector<16x1xf32>
    %309 = vector.broadcast %308 : vector<16x1xf32> to vector<16x512xf32>
    %310 = arith.mulf %307, %309 : vector<16x512xf32>
    %311 = arith.addf %302, %310 : vector<16x512xf32>
    %312 = vector.extract_strided_slice %178 {offsets = [0, 8], sizes = [16, 1], strides = [1, 1]} : vector<16x9xf32> to vector<16x1xf32>
    %313 = vector.broadcast %312 : vector<16x1xf32> to vector<16x512xf32>
    %314 = arith.mulf %307, %313 : vector<16x512xf32>
    %315 = arith.addf %306, %314 : vector<16x512xf32>
    %c490_i32_32 = arith.constant 490 : i32
    %316 = tpu.dynamic_rotate %177 by %c490_i32_32 dim 1 : vector<16x512xf32>, i32 -> vector<16x512xf32>
    %317 = vector.extract_strided_slice %180 {offsets = [0, 19], sizes = [16, 1], strides = [1, 1]} : vector<16x25xf32> to vector<16x1xf32>
    %318 = vector.broadcast %317 : vector<16x1xf32> to vector<16x512xf32>
    %319 = arith.mulf %316, %318 : vector<16x512xf32>
    %320 = arith.addf %311, %319 : vector<16x512xf32>
    %c474_i32_33 = arith.constant 474 : i32
    %321 = tpu.dynamic_rotate %177 by %c474_i32_33 dim 1 : vector<16x512xf32>, i32 -> vector<16x512xf32>
    %322 = vector.extract_strided_slice %180 {offsets = [0, 20], sizes = [16, 1], strides = [1, 1]} : vector<16x25xf32> to vector<16x1xf32>
    %323 = vector.broadcast %322 : vector<16x1xf32> to vector<16x512xf32>
    %324 = arith.mulf %321, %323 : vector<16x512xf32>
    %325 = arith.addf %320, %324 : vector<16x512xf32>
    %c473_i32_34 = arith.constant 473 : i32
    %326 = tpu.dynamic_rotate %177 by %c473_i32_34 dim 1 : vector<16x512xf32>, i32 -> vector<16x512xf32>
    %327 = vector.extract_strided_slice %180 {offsets = [0, 21], sizes = [16, 1], strides = [1, 1]} : vector<16x25xf32> to vector<16x1xf32>
    %328 = vector.broadcast %327 : vector<16x1xf32> to vector<16x512xf32>
    %329 = arith.mulf %326, %328 : vector<16x512xf32>
    %330 = arith.addf %325, %329 : vector<16x512xf32>
    %c472_i32_35 = arith.constant 472 : i32
    %331 = tpu.dynamic_rotate %177 by %c472_i32_35 dim 1 : vector<16x512xf32>, i32 -> vector<16x512xf32>
    %332 = vector.extract_strided_slice %180 {offsets = [0, 22], sizes = [16, 1], strides = [1, 1]} : vector<16x25xf32> to vector<16x1xf32>
    %333 = vector.broadcast %332 : vector<16x1xf32> to vector<16x512xf32>
    %334 = arith.mulf %331, %333 : vector<16x512xf32>
    %335 = arith.addf %330, %334 : vector<16x512xf32>
    %c471_i32_36 = arith.constant 471 : i32
    %336 = tpu.dynamic_rotate %177 by %c471_i32_36 dim 1 : vector<16x512xf32>, i32 -> vector<16x512xf32>
    %337 = vector.extract_strided_slice %180 {offsets = [0, 23], sizes = [16, 1], strides = [1, 1]} : vector<16x25xf32> to vector<16x1xf32>
    %338 = vector.broadcast %337 : vector<16x1xf32> to vector<16x512xf32>
    %339 = arith.mulf %336, %338 : vector<16x512xf32>
    %340 = arith.addf %335, %339 : vector<16x512xf32>
    %c470_i32_37 = arith.constant 470 : i32
    %341 = tpu.dynamic_rotate %177 by %c470_i32_37 dim 1 : vector<16x512xf32>, i32 -> vector<16x512xf32>
    %342 = vector.extract_strided_slice %180 {offsets = [0, 24], sizes = [16, 1], strides = [1, 1]} : vector<16x25xf32> to vector<16x1xf32>
    %343 = vector.broadcast %342 : vector<16x1xf32> to vector<16x512xf32>
    %344 = arith.mulf %341, %343 : vector<16x512xf32>
    %345 = arith.addf %340, %344 : vector<16x512xf32>
    %c0_38 = arith.constant 0 : index
    %c0_39 = arith.constant 0 : index
    %346 = vector.load %arg4[%c0_38, %c0_39] : memref<8x48xf32, #tpu.memory_space<vmem>>, vector<8x16xf32>
    %cst_40 = arith.constant 0.000000e+00 : f32
    %347 = vector.broadcast %cst_40 : f32 to vector<16x512xf32>
    %348 = arith.maximumf %315, %347 : vector<16x512xf32>
    %cst_41 = arith.constant dense<0.000000e+00> : vector<8x512xf32>
    %349 = tpu.matmul %346, %348, %cst_41 {dimension_numbers = #tpu.dot_dimension_numbers<[1], [0], [0], [1], [0, 0, 1, 1], [], []>} : vector<8x16xf32>, vector<16x512xf32>, vector<8x512xf32> -> vector<8x512xf32>
    %c0_42 = arith.constant 0 : index
    %c16 = arith.constant 16 : index
    %350 = vector.load %arg4[%c0_42, %c16] : memref<8x48xf32, #tpu.memory_space<vmem>>, vector<8x16xf32>
    %cst_43 = arith.constant 0.000000e+00 : f32
    %351 = vector.broadcast %cst_43 : f32 to vector<16x512xf32>
    %352 = arith.maximumf %345, %351 : vector<16x512xf32>
    %cst_44 = arith.constant dense<0.000000e+00> : vector<8x512xf32>
    %353 = tpu.matmul %350, %352, %cst_44 {dimension_numbers = #tpu.dot_dimension_numbers<[1], [0], [0], [1], [0, 0, 1, 1], [], []>} : vector<8x16xf32>, vector<16x512xf32>, vector<8x512xf32> -> vector<8x512xf32>
    %354 = arith.addf %349, %353 : vector<8x512xf32>
    %c0_45 = arith.constant 0 : index
    %c72 = arith.constant 72 : index
    %355 = vector.load %arg3[%c0_45, %c72] : memref<16x107xf32, #tpu.memory_space<vmem>>, vector<8x1xf32>
    %356 = vector.broadcast %355 : vector<8x1xf32> to vector<8x512xf32>
    %357 = arith.addf %354, %356 : vector<8x512xf32>
    %358 = arith.addf %357, %1 : vector<8x512xf32>
    %c0_46 = arith.constant 0 : index
    %c32 = arith.constant 32 : index
    %359 = vector.load %arg4[%c0_46, %c32] : memref<8x48xf32, #tpu.memory_space<vmem>>, vector<8x8xf32>
    %cst_47 = arith.constant dense<0.000000e+00> : vector<8x512xf32>
    %360 = tpu.matmul %359, %358, %cst_47 {dimension_numbers = #tpu.dot_dimension_numbers<[1], [0], [0], [1], [0, 0, 1, 1], [], []>} : vector<8x8xf32>, vector<8x512xf32>, vector<8x512xf32> -> vector<8x512xf32>
    %361 = arith.subf %358, %360 : vector<8x512xf32>
    %362 = arith.mulf %361, %361 : vector<8x512xf32>
    %cst_48 = arith.constant dense<0.000000e+00> : vector<8x512xf32>
    %363 = tpu.matmul %359, %362, %cst_48 {dimension_numbers = #tpu.dot_dimension_numbers<[1], [0], [0], [1], [0, 0, 1, 1], [], []>} : vector<8x8xf32>, vector<8x512xf32>, vector<8x512xf32> -> vector<8x512xf32>
    %cst_49 = arith.constant 9.99999974E-6 : f32
    %364 = vector.broadcast %cst_49 : f32 to vector<8x512xf32>
    %365 = arith.addf %363, %364 : vector<8x512xf32>
    %366 = math.rsqrt %365 : vector<8x512xf32>
    %367 = arith.mulf %361, %366 : vector<8x512xf32>
    %c0_50 = arith.constant 0 : index
    %c73 = arith.constant 73 : index
    %368 = vector.load %arg3[%c0_50, %c73] : memref<16x107xf32, #tpu.memory_space<vmem>>, vector<8x1xf32>
    %369 = vector.broadcast %368 : vector<8x1xf32> to vector<8x512xf32>
    %370 = arith.mulf %367, %369 : vector<8x512xf32>
    %c0_51 = arith.constant 0 : index
    %c74 = arith.constant 74 : index
    %371 = vector.load %arg3[%c0_51, %c74] : memref<16x107xf32, #tpu.memory_space<vmem>>, vector<8x1xf32>
    %372 = vector.broadcast %371 : vector<8x1xf32> to vector<8x512xf32>
    %373 = arith.addf %370, %372 : vector<8x512xf32>
    %cst_52 = arith.constant 0.000000e+00 : f32
    %374 = vector.broadcast %cst_52 : f32 to vector<8x512xf32>
    %375 = arith.maximumf %373, %374 : vector<8x512xf32>
    %376 = vector.broadcast %2 : vector<1x512xf32> to vector<8x512xf32>
    %377 = arith.mulf %375, %376 : vector<8x512xf32>
    %cst_53 = arith.constant dense<0.000000e+00> : vector<8xf32>
    %378 = vector.multi_reduction <add>, %377, %cst_53 [1] : vector<8x512xf32> to vector<8xf32>
    %379 = vector.shape_cast %378 : vector<8xf32> to vector<8x1xf32>
    %cst_54 = arith.constant 3.906250e-03 : f32
    %380 = vector.broadcast %cst_54 : f32 to vector<8x1xf32>
    %381 = arith.mulf %379, %380 : vector<8x1xf32>
    %c0_55 = arith.constant 0 : index
    %c75 = arith.constant 75 : index
    %382 = vector.load %arg3[%c0_55, %c75] : memref<16x107xf32, #tpu.memory_space<vmem>>, vector<8x16xf32>
    %383 = vector.broadcast %381 : vector<8x1xf32> to vector<8x16xf32>
    %384 = arith.mulf %383, %382 : vector<8x16xf32>
    %c0_56 = arith.constant 0 : index
    %c40 = arith.constant 40 : index
    %385 = vector.load %arg4[%c0_56, %c40] : memref<8x48xf32, #tpu.memory_space<vmem>>, vector<8x8xf32>
    %cst_57 = arith.constant dense<0.000000e+00> : vector<8x16xf32>
    %386 = tpu.matmul %385, %384, %cst_57 {dimension_numbers = #tpu.dot_dimension_numbers<[1], [0], [0], [1], [0, 0, 1, 1], [], []>} : vector<8x8xf32>, vector<8x16xf32>, vector<8x16xf32> -> vector<8x16xf32>
    %c0_58 = arith.constant 0 : index
    %c91 = arith.constant 91 : index
    %387 = vector.load %arg3[%c0_58, %c91] : memref<16x107xf32, #tpu.memory_space<vmem>>, vector<8x16xf32>
    %388 = arith.addf %386, %387 : vector<8x16xf32>
    %389 = tpu.iota {dimensions = array<i32: 1>} : vector<8x16xi32>
    %390 = arith.negf %388 : vector<8x16xf32>
    %391 = math.exp %390 : vector<8x16xf32>
    %cst_59 = arith.constant 1.000000e+00 : f32
    %392 = vector.broadcast %cst_59 : f32 to vector<8x16xf32>
    %393 = arith.addf %392, %391 : vector<8x16xf32>
    %394 = arith.divf %392, %393 : vector<8x16xf32>
    %395 = math.absf %388 : vector<8x16xf32>
    %cst_60 = arith.constant 1.000000e+00 : f32
    %396 = vector.broadcast %cst_60 : f32 to vector<8x16xf32>
    %397 = arith.addf %396, %395 : vector<8x16xf32>
    %398 = arith.divf %388, %397 : vector<8x16xf32>
    %cst_61 = arith.constant 0.69813168 : f32
    %399 = vector.broadcast %cst_61 : f32 to vector<8x16xf32>
    %400 = arith.mulf %398, %399 : vector<8x16xf32>
    %c8_i32 = arith.constant 8 : i32
    %401 = vector.broadcast %c8_i32 : i32 to vector<8x16xi32>
    %402 = arith.cmpi slt, %389, %401 : vector<8x16xi32>
    %403 = arith.select %402, %394, %400 : vector<8x16xi1>, vector<8x16xf32>
    %c0_62 = arith.constant 0 : index
    %c0_63 = arith.constant 0 : index
    %c0_64 = arith.constant 0 : index
    %404 = vector.load %arg5[%c0_62, %c0_63, %c0_64] : memref<1x8x16xf32, #tpu.memory_space<vmem>>, vector<1x8x16xf32>
    %405 = vector.shape_cast %404 : vector<1x8x16xf32> to vector<8x16xf32>
    %406 = vector.shape_cast %403 : vector<8x16xf32> to vector<1x8x16xf32>
    tpu.vector_store %arg5[%c0_62, %c0_63, %c0_64], %406 {strides = array<i32>} : memref<1x8x16xf32, #tpu.memory_space<vmem>>, vector<1x8x16xf32>,
    return
  }
  func.func @transform_0(%arg0: i32) -> (i32, i32, i32) {
    %c0_i32 = arith.constant 0 : i32
    %c0_i32_0 = arith.constant 0 : i32
    %c0_i32_1 = arith.constant 0 : i32
    return %arg0, %c0_i32, %c0_i32_0 : i32, i32, i32
  }
  func.func @transform_1(%arg0: i32) -> (i32, i32) {
    %c0_i32 = arith.constant 0 : i32
    %c0_i32_0 = arith.constant 0 : i32
    %c0_i32_1 = arith.constant 0 : i32
    return %c0_i32, %c0_i32_0 : i32, i32
  }
  func.func @transform_2(%arg0: i32) -> (i32, i32) {
    %c0_i32 = arith.constant 0 : i32
    %c0_i32_0 = arith.constant 0 : i32
    %c0_i32_1 = arith.constant 0 : i32
    return %c0_i32, %c0_i32_0 : i32, i32
  }
  func.func @transform_3(%arg0: i32) -> (i32, i32) {
    %c0_i32 = arith.constant 0 : i32
    %c0_i32_0 = arith.constant 0 : i32
    %c0_i32_1 = arith.constant 0 : i32
    return %c0_i32, %c0_i32_0 : i32, i32
  }
  func.func @transform_4(%arg0: i32) -> (i32, i32, i32) {
    %c0_i32 = arith.constant 0 : i32
    %c0_i32_0 = arith.constant 0 : i32
    %c0_i32_1 = arith.constant 0 : i32
    return %arg0, %c0_i32, %c0_i32_0 : i32, i32, i32
  }
}

</mosaic_0001>

<bundles_post_ra>
// kernel: tpu_custom_call.1
= control target key start
LH: loop header
LB: loop body
LE: loop exit
PB: predicated region body
PF: predicated region fallthrough
CT: control target
= control target key end

     0   :  { %9 = vsyncpa [#allocation3], 0  ;;  %s7802_s0 = inlined_call_operand.hbm [shape: f32[2,8,512], index: 0, kind: input, shape index: {}]   ;;  %s7803_s1 = inlined_call_operand.hbm [shape: f32[1,512], index: 1, kind: input, shape index: {}]   ;;  %s7804_s2 = inlined_call_operand.hbm [shape: f32[16,107], index: 2, kind: input, shape index: {}]   ;;  %s7805_s3 = inlined_call_operand.hbm [shape: f32[8,48], index: 3, kind: input, shape index: {}]   ;;  %s7806_s4 = inlined_call_operand.hbm [shape: f32[2,8,16], index: 4, kind: output, shape index: {}]  }
   0x1   :  { %11 = vsyncpa [#allocation3 + $0x1], 0 }
   0x2   :  { %12 = vsyncpa [#allocation6], 0 }
   0x3   :  { %13 = vsyncpa [#allocation9], 0 }
   0x4   :  { %14 = vsyncpa [#allocation4], 0 }
   0x5   :  { %16 = vsyncpa [#allocation4 + $0x1], 0  ;;  %s3967_s15 = smov 0   ;;  %s3969_s16 = smov 0  }
   0x6   :  { %s3971_s17 = smov 0   ;;  %s3973_s18 = smov 0  }
   0x7 LB: > { %s3988_s19 = sadd.s32 4294967295, %s3828_s18   ;;  %s3305_s20 = sadd.s32 4294967294, %s3828_s18   ;;  %s3828_s18 = sphi %s3973_s18, %s8885_s18   ;;  %s3824_s17 = sphi %s3971_s17, %s8884_s17   ;;  %s3820_s16 = sphi %s3969_s16, %s8883_s16   ;;  %s3816_s15 = sphi %s3967_s15, %s8882_s15  }
   0x8   : > { %p42_p0 = scmp.ne.s32.totalorder %s3820_s16, %s3816_s15  ;;  %p7807_p1 = scmp.eq.s32.totalorder %s3988_s19, 0 }
   0x9   : > { %p135_p3 = scmp.eq.s32.totalorder %s3305_s20, 1  ;;  %p3306_p5 = scmp.ge.s32.totalorder %s3828_s18, 1 }
   0xa   : > { %p3997_p4 = por %p7807_p1, %p42_p0  ;;  %p142_p7 = scmp.lt.s32.totalorder %s3828_s18, 3 }
   0xb   : > { %p4002_p6 = por %p135_p3, %p42_p0  ;;  %s3830_s24 = smov [#allocation5]  }
   0xc   : > { %s8154_s21 = scalar_select %p3997_p4, 1, 0 }
   0xd   : > { %s8155_s22 = scalar_select %p4002_p6, 1, 0 }
   0xe   : > { %p4007_p8 = pnand %p3306_p5, %p142_p7  ;;  %s155_s25 = sshll.u32 %s3830_s24, 4  ;;  %s156_s25 = int_to_ptr.vmem [resolvable:$true] %s155_s25 }
   0xf   : > { %s3831_s26 = smov [#allocation7]   ;;  %s3832_s29 = smov [#allocation8]  }
  0x10   : > { %s8156_s23 = scalar_select %p4007_p8, 1, 0 }
  0x11   : > { %p3358_p10 = pneg %p4007_p8  ;;  %s165_s27 = sshll.u32 %s3831_s26, 4  ;;  %s166_s27 = int_to_ptr.vmem [resolvable:$true] %s165_s27 }
  0x12   : > { %s179_s30 = sshll.u32 %s3832_s29, 4  ;;  %s3661_s5 = scalar_lea.vmem %s156_s25, 64  ;;  %s180_s30 = int_to_ptr.vmem [resolvable:$true] %s179_s30 }
  0x13   : > { %p4016_p11 = pnand %p3358_p10, %p7807_p1  ;;  %p3662_p13 = scmp.ne.s32.totalorder %s156_s25, %s3661_s5 }
  0x14   : > { %p3669_p5 = scmp.lt.s32.totalorder %s156_s25, %s156_s25  ;;  %p3670_p7 = scmp.lt.s32.totalorder %s3661_s5, %s3661_s5 }
  0x15   : > { %p3652_p12 = pneg %p4016_p11 }
  0x16   : > { %p3671_p9 = por %p3670_p7, %p3669_p5 }
  0x17   : > { %p3664_p0 = pnand %p3662_p13, %p3652_p12 }
  0x19   : > { %p3665_p3 = pneg %p3664_p0 }
  0x1b   : > { %p3672_p10 = pnand %p3671_p9, %p3665_p3 }
  0x1d   : > { %3675 = shalt.err (!%p3672_p10)
}
  0x1e   : > { %3361 = dma.hbm_to_vmem [thread:$0]  (!%p4016_p11), %s7803_s1, 64, %s156_s25, [#allocation6]  }
  0x1f   : > { %s3687_s8 = scalar_lea.vmem %s166_s27, 256  ;;  %p3695_p13 = scmp.lt.s32.totalorder %s166_s27, %s166_s27 }
  0x20   : > { %p3688_p1 = scmp.ne.s32.totalorder %s166_s27, %s3687_s8  ;;  %p3696_p0 = scmp.lt.s32.totalorder %s3687_s8, %s3687_s8 }
  0x22   : > { %p3690_p2 = pnand %p3688_p1, %p3652_p12  ;;  %p3697_p4 = por %p3696_p0, %p3695_p13 }
  0x24   : > { %p3691_p6 = pneg %p3690_p2 }
  0x26   : > { %p3698_p8 = pnand %p3697_p4, %p3691_p6 }
  0x28   : > { %3701 = shalt.err (!%p3698_p8)
}
  0x29   : > { %s3833_s9 = smov 128   ;;  %s3834_s10 = smov 8  }
  0x2a   : > { %3364 = dma.hbm_to_vmem [thread:$0]  (!%p4016_p11), %s7804_s2, 256, %s166_s27, [#allocation6], %s3833_s9, %s3833_s9, %s3834_s10  }
  0x2b   : > { %s3713_s13 = scalar_lea.vmem %s180_s30, 128  ;;  %p3721_p3 = scmp.lt.s32.totalorder %s180_s30, %s180_s30 }
  0x2c   : > { %p3714_p9 = scmp.ne.s32.totalorder %s180_s30, %s3713_s13  ;;  %p3722_p5 = scmp.lt.s32.totalorder %s3713_s13, %s3713_s13 }
  0x2e   : > { %p3716_p1 = pnand %p3714_p9, %p3652_p12  ;;  %p3723_p4 = por %p3722_p5, %p3721_p3 }
  0x30   : > { %p3717_p2 = pneg %p3716_p1 }
  0x32   : > { %p3724_p6 = pnand %p3723_p4, %p3717_p2 }
  0x34   : > { %3727 = shalt.err (!%p3724_p6)
}
  0x35   : > { %3367 = dma.hbm_to_vmem [thread:$0]  (!%p4016_p11), %s7805_s3, 128, %s180_s30, [#allocation9]  }
  0x36   : > { %s4047_s24 = sadd.s32 1, %s3828_s18   ;;  %s29_s26 = sadd.s32 1, %s3824_s17 }
  0x37   : > { %s26_s25 = ssub.s32 %s3828_s18, %s4047_s24  ;;  %p36_p12 = scmp.ne.s32.totalorder %s3824_s17, %s3820_s16 }
  0x38   : > { %p27_p8 = scmp.eq.s32.totalorder %s26_s25, 0  ;;  %p37_p7 = scmp.eq.s32.totalorder %s3828_s18, 0 }
  0x39   : > { %p3379_p10 = scmp.lt.s32.totalorder %s3828_s18, 2  ;;  %p8158_p0 = scmp.eq.s32.totalorder %s3988_s19, 1 }
  0x3a   : > { %s4057_s27 = scalar_select %p27_p8, %s3824_s17, %s29_s26  }
  0x3b   : > { %p38_p13 = por %p37_p7, %p36_p12  ;;  %p4061_p9 = por %p8158_p0, %p36_p12 }
  0x3c   : > { %s190_s29 = sand.u32 1, %s3824_s17   ;;  %s3334_s5 = sshll.u32 %s3828_s18, 9 }
  0x3d   : > { %s8159_s28 = scalar_select %p4061_p9, 1, 0 }
  0x3e   : > { %s3311_s30 = sshll.u32 %s190_s29, 5  ;;  %s4070_s8 = scalar_lea.hbm %s7802_s0, %s3334_s5 }
  0x3f   : > { %s194_s9 = scalar_lea.vmem [#allocation2], %s3311_s30  ;;  %p4072_p11 = pnand %p3379_p10, %p38_p13 }
  0x40   : > { %s202_s10 = sshll.u32 %s194_s9, 4  ;;  %s191_s12 = scalar_lea.sflag [#allocation3], %s190_s29  ;;  %s203_s10 = int_to_ptr.vmem [resolvable:$true] %s202_s10 }
  0x41   : > { %s3728_s13 = scalar_lea.hbm %s4070_s8, 512  ;;  %p3730_p2 = pneg %p4072_p11 }
  0x42   : > { %p3729_p1 = scmp.ne.s32.totalorder %s4070_s8, %s3728_s13  ;;  %s3733_s25 = scalar_lea.hbm %s7802_s0, 1024 }
  0x43   : > { %p3734_p4 = scmp.lt.s32.totalorder %s4070_s8, %s7802_s0  ;;  %p3735_p6 = scmp.lt.s32.totalorder %s3733_s25, %s3728_s13 }
  0x44   : > { %p3731_p3 = pnand %p3730_p2, %p3729_p1 }
  0x45   : > { %p3736_p8 = por %p3735_p6, %p3734_p4 }
  0x46   : > { %p3732_p5 = pneg %p3731_p3 }
  0x48   : > { %p3737_p12 = pnand %p3736_p8, %p3732_p5 }
  0x4a   : > { %3740 = shalt.err (!%p3737_p12)
}
  0x4b   : > { %s3741_s30 = scalar_lea.vmem %s203_s10, 512  ;;  %s3835_s29 = smov [#allocation2]  }
  0x4c   : > { %p3742_p7 = scmp.ne.s32.totalorder %s203_s10, %s3741_s30  ;;  %s3746_s6 = sshll.u32 %s3835_s29, 4  ;;  %s3747_s6 = int_to_ptr.vmem [resolvable:$false] %s3746_s6 }
  0x4d   : > { %s3748_s7 = scalar_lea.vmem %s3747_s6, 1024  ;;  %p3749_p0 = scmp.lt.s32.totalorder %s203_s10, %s3747_s6 }
  0x4e   : > { %p3744_p10 = pnand %p3742_p7, %p3730_p2  ;;  %p3750_p1 = scmp.lt.s32.totalorder %s3748_s7, %s3741_s30 }
  0x50   : > { %p3745_p13 = pneg %p3744_p10  ;;  %p3751_p3 = por %p3750_p1, %p3749_p0 }
  0x52   : > { %p3752_p9 = pnand %p3751_p3, %p3745_p13 }
  0x54   : > { %3755 = shalt.err (!%p3752_p9)
}
  0x55   : > { %3371 = dma.hbm_to_vmem [thread:$0]  (!%p4072_p11), %s4070_s8, 512, %s203_s10, %s191_s12  }
  0x56   : > { %p8161_p5 = scmp.ne.s32.totalorder %s8156_s23, 0 }
  0x58   : > { %211 = sbr.rel (%p8161_p5) target bundleno = 2372 (0x944), region = 36 }
  0x5d   : > { %s4093_s9 = sand.u32 1, %s3820_s16   ;;  %p8162_p2 = scmp.ne.s32.totalorder %s8154_s21, 0 }
  0x5e   : > { %s3315_s13 = sshll.u32 %s4093_s9, 5  ;;  %s214_s14 = scalar_lea.sflag [#allocation3], %s4093_s9 }
  0x5f   : > { %s4097_s20 = scalar_lea.vmem [#allocation2], %s3315_s13 }
  0x60   : > { %3799 = dma.done.wait (%p8162_p2), %s214_s14, 512  }
  0x61   : > { %3801 = vsyncadd (%p8162_p2), %s214_s14, 4294966784  ;;  %p8163_p9 = scmp.eq.s32.totalorder %s3988_s19, 0 }
  0x63   : > { %3803 = dma.done.wait (%p8163_p9), [#allocation6], 320   ;;  %p8164_p11 = pmov %p8163_p9 }
  0x64   : > { %p8165_p4 = pmov %p8163_p9 }
  0x65   : > { %3805 = vsyncadd (%p8164_p11), [#allocation6], 4294966976 }
  0x66   : > { %3807 = dma.done.wait (%p8165_p4), [#allocation9], 128   ;;  %p8166_p6 = pmov %p8165_p4 }
  0x67   : > { %v3836_v0 = vmov 46   ;;  %v3837_v1 = vmov 45   ;;  %v4111_v2 = vld [vmem:[#allocation7] sm:$0xff]  ;;  %s3838_s21 = smov 42   ;;  %v3839_v4 = vmov 71   ;;  %v3840_v6 = vmov 47  }
  0x68   : > { %3809 = vsyncadd (%p8166_p6), [#allocation9], 4294967168  ;;  %3528 = vset.pattern.permute.xlu1 %v3836_v0  ;;  %3526 = vset.pattern.permute.xlu0 %v3837_v1  ;;  %v4116_v3 = vld [vmem:[%s4097_s20] sm:$0xff]  ;;  %v4121_v5 = vld [vmem:[%s4097_s20 + $0x8] sm:$0xff]  ;;  %v3841_v9 = vmov 48   ;;  %s3842_s23 = smov 41  }
  0x69   : > { %310 = vperm.xlu1 %3528, %v4111_v2   ;;  %285 = vperm.xlu0 %3526, %v4111_v2   ;;  %v4125_v7 = vld [vmem:[%s4097_s20 + $0x18] sm:$0xff]  ;;  %v4132_v8 = vld [vmem:[%s4097_s20 + $0x10] sm:$0xff]  ;;  %v3843_v10 = vmov 59   ;;  %s3844_s8 = smov 40   ;;  %v3845_v11 = vmov 49   ;;  %s3846_s10 = smov 39  }
  0x6a   : > { %8167 = vst [vmem:[#allocation15_spill] sm:$0xff] %v4132_v8  ;;  %v3847_v12 = vmov 50   ;;  %s3848_s11 = smov 38   ;;  %v3849_v13 = vmov 51   ;;  %s3850_s12 = smov 22   ;;  %v3851_v14 = vmov 52  }
  0x6b   : > { %s3852_s25 = smov 21   ;;  %v3853_v15 = vmov 53   ;;  %s3854_s26 = smov 20   ;;  %v3855_v16 = vmov 54   ;;  %v3857_v17 = vmov 55   ;;  %v3859_v18 = vmov 56  }
  0x6c   : > { %s3856_s5 = smov 19   ;;  %s7813_s30 = smov 18   ;;  %v3861_v19 = vmov 57   ;;  %v3863_v20 = vmov 58   ;;  %v3865_v21 = vmov 61   ;;  %v3868_v25 = vmov 37  }
  0x6d   : > { %269 = vrot.lane.b32.xlu1 %v4116_v3, %s3838_s21  ;;  %3527 = vset.pattern.permute.xlu0 %v3839_v4  ;;  %s7811_s29 = smov 2   ;;  %s7817_s6 = smov 1   ;;  %v3871_v39 = vmov 60   ;;  %v3872_v44 = vmov 36   ;;  %v3875_v53 = vmov 62   ;;  %v3876_v57 = vmov 70  }
  0x6e   : > { %3529 = vset.pattern.permute.xlu1 %v3840_v6  ;;  %266 = vperm.xlu0 %3527, %v4111_v2   ;;  %s7815_s7 = smov 127   ;;  %s7821_s13 = smov 126   ;;  %v3878_v61 = vmov 63  }
  0x6f   : > { %s7819_s14 = smov 110   ;;  %p8879_p12 = scmp.ne.s32.totalorder %s8159_s28, 0 }
  0x71   : > { %271 = vrot.lane.b32.xlu1 %v4121_v5, %s3838_s21 }
  0x72   : > { %275 = vrot.lane.b32.xlu0 %v4125_v7, %s3838_s21 }
  0x73   : > { %3530 = vset.pattern.permute.xlu0 %v3841_v9  ;;  %v3880_v9 = vmov 38  }
  0x75   : > { %335 = vperm.xlu1 %3529, %v4111_v2  }
  0x76   : > { %273 = vrot.lane.b32.xlu0 %v4132_v8, %s3838_s21 }
  0x79   : > { %296 = vrot.lane.b32.xlu1 %v4116_v3, %s3842_s23 }
  0x7a   : > { %298 = vrot.lane.b32.xlu0 %v4121_v5, %s3842_s23  ;;  %3541 = vset.pattern.permute.xlu1 %v3843_v10 }
  0x7d   : > { %302 = vrot.lane.b32.xlu1 %v4125_v7, %s3842_s23 }
  0x7e   : > { %360 = vperm.xlu0 %3530, %v4111_v2  }
  0x81   : > { %300 = vrot.lane.b32.xlu1 %v4132_v8, %s3842_s23 }
  0x82   : > { %323 = vrot.lane.b32.xlu0 %v4121_v5, %s3844_s8 }
  0x83   : > { %3531 = vset.pattern.permute.xlu0 %v3845_v11 }
  0x85   : > { %321 = vrot.lane.b32.xlu1 %v4116_v3, %s3844_s8 }
  0x86   : > { %385 = vperm.xlu0 %3531, %v4111_v2  }
  0x89   : > { %327 = vrot.lane.b32.xlu1 %v4125_v7, %s3844_s8 }
  0x8a   : > { %348 = vrot.lane.b32.xlu0 %v4121_v5, %s3846_s10 }
  0x8b   : > { %3532 = vset.pattern.permute.xlu0 %v3847_v12 }
  0x8d   : > { %325 = vrot.lane.b32.xlu1 %v4132_v8, %s3844_s8 }
  0x8e   : > { %410 = vperm.xlu0 %3532, %v4111_v2  }
  0x91   : > { %346 = vrot.lane.b32.xlu1 %v4116_v3, %s3846_s10 }
  0x92   : > { %373 = vrot.lane.b32.xlu0 %v4121_v5, %s3848_s11 }
  0x93   : > { %3533 = vset.pattern.permute.xlu0 %v3849_v13  ;;  %v3881_v13 = vmov 64  }
  0x95   : > { %352 = vrot.lane.b32.xlu1 %v4125_v7, %s3846_s10 }
  0x96   : > { %435 = vperm.xlu0 %3533, %v4111_v2  }
  0x99   : > { %350 = vrot.lane.b32.xlu1 %v4132_v8, %s3846_s10 }
  0x9a   : > { %398 = vrot.lane.b32.xlu0 %v4121_v5, %s3850_s12 }
  0x9b   : > { %3534 = vset.pattern.permute.xlu0 %v3851_v14 }
  0x9d   : > { %371 = vrot.lane.b32.xlu1 %v4116_v3, %s3848_s11 }
  0x9e   : > { %472 = vperm.xlu0 %3534, %v4111_v2  }
  0xa1   : > { %377 = vrot.lane.b32.xlu1 %v4125_v7, %s3848_s11 }
  0xa2   : > { %423 = vrot.lane.b32.xlu0 %v4121_v5, %s3852_s25 }
  0xa3   : > { %3535 = vset.pattern.permute.xlu0 %v3853_v15 }
  0xa5   : > { %375 = vrot.lane.b32.xlu1 %v4132_v8, %s3848_s11 }
  0xa6   : > { %509 = vperm.xlu0 %3535, %v4111_v2  }
  0xa9   : > { %396 = vrot.lane.b32.xlu1 %v4116_v3, %s3850_s12 }
  0xaa   : > { %460 = vrot.lane.b32.xlu0 %v4121_v5, %s3854_s26 }
  0xab   : > { %3536 = vset.pattern.permute.xlu0 %v3855_v16 }
  0xad   : > { %402 = vrot.lane.b32.xlu1 %v4125_v7, %s3850_s12 }
  0xae   : > { %546 = vperm.xlu0 %3536, %v4111_v2  }
  0xb1   : > { %400 = vrot.lane.b32.xlu1 %v4132_v8, %s3850_s12 }
  0xb2   : > { %497 = vrot.lane.b32.xlu0 %v4121_v5, %s3856_s5 }
  0xb3   : > { %3537 = vset.pattern.permute.xlu0 %v3857_v17  ;;  %v3883_v17 = vmov 39  }
  0xb5   : > { %421 = vrot.lane.b32.xlu1 %v4116_v3, %s3852_s25 }
  0xb6   : > { %571 = vperm.xlu0 %3537, %v4111_v2  }
  0xb9   : > { %427 = vrot.lane.b32.xlu1 %v4125_v7, %s3852_s25 }
  0xba   : > { %534 = vrot.lane.b32.xlu0 %v4121_v5, %s7813_s30 }
  0xbb   : > { %3538 = vset.pattern.permute.xlu0 %v3859_v18 }
  0xbd   : > { %425 = vrot.lane.b32.xlu1 %v4132_v8, %s3852_s25 }
  0xbe   : > { %596 = vperm.xlu0 %3538, %v4111_v2  }
  0xc1   : > { %458 = vrot.lane.b32.xlu1 %v4116_v3, %s3854_s26 }
  0xc2   : > { %559 = vrot.lane.b32.xlu0 %v4121_v5, %s7811_s29 }
  0xc3   : > { %3539 = vset.pattern.permute.xlu0 %v3861_v19 }
  0xc5   : > { %464 = vrot.lane.b32.xlu1 %v4125_v7, %s3854_s26 }
  0xc6   : > { %620 = vperm.xlu0 %3539, %v4111_v2  }
  0xc9   : > { %462 = vrot.lane.b32.xlu1 %v4132_v8, %s3854_s26 }
  0xca   : > { %584 = vrot.lane.b32.xlu0 %v4121_v5, %s7817_s6 }
  0xcb   : > { %3540 = vset.pattern.permute.xlu0 %v3863_v20 }
  0xcd   : > { %495 = vrot.lane.b32.xlu1 %v4116_v3, %s3856_s5 }
  0xce   : > { %657 = vperm.xlu0 %3540, %v4111_v2  }
  0xd1   : > { %501 = vrot.lane.b32.xlu1 %v4125_v7, %s3856_s5 }
  0xd2   : > { %643 = vrot.lane.b32.xlu0 %v4116_v3, %s7815_s7 }
  0xd3   : > { %3543 = vset.pattern.permute.xlu0 %v3865_v21  ;;  %v3884_v21 = vmov 65  }
  0xd5   : > { %499 = vrot.lane.b32.xlu1 %v4132_v8, %s3856_s5 }
  0xd6   : > { %647 = vrot.lane.b32.xlu0 %v4132_v8, %s7815_s7 }
  0xd9   : > { %532 = vrot.lane.b32.xlu1 %v4116_v3, %s7813_s30 }
  0xda   : > { %649 = vrot.lane.b32.xlu0 %v4125_v7, %s7815_s7 }
  0xdd   : > { %538 = vrot.lane.b32.xlu1 %v4125_v7, %s7813_s30 }
  0xde   : > { %682 = vrot.lane.b32.xlu0 %v4121_v5, %s7821_s13 }
  0xe1   : > { %536 = vrot.lane.b32.xlu1 %v4132_v8, %s7813_s30  ;;  %s7825_s30 = smov 108  }
  0xe2   : > { %744 = vperm.xlu0 %3543, %v4111_v2  }
  0xe4   : > { %v4233_v22 = vpop.permute.xlu1 %310  ;;  %v4235_v23 = vpop.permute.xlu0 %285 }
  0xe5   : > { %557 = vrot.lane.b32.xlu1 %v4116_v3, %s7811_s29 }
  0xe6   : > { %705 = vrot.lane.b32.xlu0 %v4116_v3, %s7819_s14 }
  0xe7   : > { %3547 = vset.pattern.permute.xlu0 %v3868_v25 }
  0xe8   : > { %v4241_v24 = vpop.permute.xlu1 %269 }
  0xe9   : > { %563 = vrot.lane.b32.xlu1 %v4125_v7, %s7811_s29  ;;  %v4245_v26 = vpop.permute.xlu0 %266 }
  0xea   : > { %709 = vrot.lane.b32.xlu0 %v4132_v8, %s7819_s14 }
  0xec   : > { %v4249_v27 = vpop.permute.xlu1 %271 }
  0xed   : > { %561 = vrot.lane.b32.xlu1 %v4132_v8, %s7811_s29  ;;  %v4253_v28 = vpop.permute.xlu0 %275  ;;  %s7823_s29 = smov 109  }
  0xee   : > { %711 = vrot.lane.b32.xlu0 %v4125_v7, %s7819_s14 }
  0xf0   : > { %v4257_v29 = vpop.permute.xlu1 %335 }
  0xf1   : > { %582 = vrot.lane.b32.xlu1 %v4116_v3, %s7817_s6  ;;  %v4261_v30 = vpop.permute.xlu0 %273 }
  0xf2   : > { %484 = vperm.xlu0 %3547, %v4111_v2  }
  0xf4   : > { %v4264_v31 = vpop.permute.xlu1 %296 }
  0xf5   : > { %588 = vrot.lane.b32.xlu1 %v4125_v7, %s7817_s6  ;;  %v4268_v32 = vpop.permute.xlu0 %298 }
  0xf6   : > { %734 = vrot.lane.b32.xlu0 %v4132_v8, %s7823_s29 }
  0xf8   : > { %v4272_v33 = vpop.permute.xlu1 %302 }
  0xf9   : > { %586 = vrot.lane.b32.xlu1 %v4132_v8, %s7817_s6  ;;  %v4276_v34 = vpop.permute.xlu0 %360  ;;  %s3874_s6 = smov 106  }
  0xfa   : > { %736 = vrot.lane.b32.xlu0 %v4125_v7, %s7823_s29 }
  0xfc   : > { %v4280_v35 = vpop.permute.xlu1 %300 }
  0xfd   : > { %694 = vperm.xlu1 %3541, %v4111_v2   ;;  %v4283_v36 = vpop.permute.xlu0 %323 }
  0xfe   : > { %767 = vrot.lane.b32.xlu0 %v4116_v3, %s7825_s30 }
 0x100   : > { %v4287_v37 = vpop.permute.xlu1 %321 }
 0x101   : > { %645 = vrot.lane.b32.xlu1 %v4121_v5, %s7815_s7  ;;  %v4291_v38 = vpop.permute.xlu0 %385  ;;  %s7827_s7 = smov 107  }
 0x102   : > { %3542 = vset.pattern.permute.xlu1 %v3871_v39  ;;  %771 = vrot.lane.b32.xlu0 %v4132_v8, %s7825_s30 }
 0x104   : > { %v4295_v40 = vpop.permute.xlu1 %327 }
 0x105   : > { %719 = vperm.xlu1 %3542, %v4111_v2   ;;  %v4298_v41 = vpop.permute.xlu0 %348 }
 0x106   : > { %773 = vrot.lane.b32.xlu0 %v4125_v7, %s7825_s30 }
 0x108   : > { %v4302_v42 = vpop.permute.xlu1 %325 }
 0x109   : > { %680 = vrot.lane.b32.xlu1 %v4116_v3, %s7821_s13  ;;  %v4306_v43 = vpop.permute.xlu0 %410 }
 0x10a   : > { %3544 = vset.pattern.permute.xlu1 %v3872_v44  ;;  %804 = vrot.lane.b32.xlu0 %v4116_v3, %s7827_s7 }
 0x10c   : > { %v4310_v45 = vpop.permute.xlu1 %346 }
 0x10d   : > { %684 = vrot.lane.b32.xlu1 %v4132_v8, %s7821_s13  ;;  %v4314_v46 = vpop.permute.xlu0 %373 }
 0x10e   : > { %808 = vrot.lane.b32.xlu0 %v4132_v8, %s7827_s7 }
 0x110   : > { %v4318_v47 = vpop.permute.xlu1 %352 }
 0x111   : > { %686 = vrot.lane.b32.xlu1 %v4125_v7, %s7821_s13  ;;  %v4322_v48 = vpop.permute.xlu0 %435  ;;  %s3879_s13 = smov 89  }
 0x112   : > { %810 = vrot.lane.b32.xlu0 %v4125_v7, %s7827_s7 }
 0x114   : > { %v4326_v49 = vpop.permute.xlu1 %350 }
 0x115   : > { %447 = vperm.xlu1 %3544, %v4111_v2   ;;  %v4329_v50 = vpop.permute.xlu0 %398 }
 0x116   : > { %841 = vrot.lane.b32.xlu0 %v4116_v3, %s3874_s6 }
 0x118   : > { %v4333_v51 = vpop.permute.xlu1 %371 }
 0x119   : > { %707 = vrot.lane.b32.xlu1 %v4121_v5, %s7819_s14  ;;  %v4337_v52 = vpop.permute.xlu0 %472  ;;  %s3877_s14 = smov 90  }
 0x11a   : > { %3545 = vset.pattern.permute.xlu1 %v3875_v53  ;;  %845 = vrot.lane.b32.xlu0 %v4132_v8, %s3874_s6  ;;  %v3886_v53 = vmov 40  }
 0x11c   : > { %v4341_v54 = vpop.permute.xlu1 %377 }
 0x11d   : > { %781 = vperm.xlu1 %3545, %v4111_v2   ;;  %v4344_v55 = vpop.permute.xlu0 %423 }
 0x11e   : > { %847 = vrot.lane.b32.xlu0 %v4125_v7, %s3874_s6 }
 0x120   : > { %v4348_v56 = vpop.permute.xlu1 %375 }
 0x121   : > { %3546 = vset.pattern.permute.xlu1 %v3876_v57  ;;  %v4350_v58 = vpop.permute.xlu0 %509 }
 0x122   : > { %262 = vperm.xlu1 %3546, %v4111_v2   ;;  %866 = vrot.lane.b32.xlu0 %v4116_v3, %s3877_s14 }
 0x124   : > { %v4355_v59 = vpop.permute.xlu1 %396 }
 0x125   : > { %v4357_v60 = vpop.permute.xlu0 %460 }
 0x126   : > { %730 = vrot.lane.b32.xlu1 %v4116_v3, %s7823_s29  ;;  %870 = vrot.lane.b32.xlu0 %v4132_v8, %s3877_s14 }
 0x127   : > { %3548 = vset.pattern.permute.xlu1 %v3878_v61 }
 0x128   : > { %v4363_v62 = vpop.permute.xlu1 %402 }
 0x129   : > { %v4365_v63 = vpop.permute.xlu0 %546 }
 0x12a   : > { %732 = vrot.lane.b32.xlu1 %v4121_v5, %s7823_s29  ;;  %872 = vrot.lane.b32.xlu0 %v4125_v7, %s3877_s14  ;;  %s3882_s29 = smov 88  }
 0x12c   : > { %v4371_v0 = vpop.permute.xlu1 %400 }
 0x12d   : > { %v4373_v1 = vpop.permute.xlu0 %497 }
 0x12e   : > { %818 = vperm.xlu1 %3548, %v4111_v2   ;;  %891 = vrot.lane.b32.xlu0 %v4116_v3, %s3879_s13 }
 0x130   : > { %v4378_v4 = vpop.permute.xlu1 %421 }
 0x131   : > { %v4380_v6 = vpop.permute.xlu0 %571 }
 0x132   : > { %8168 = vst [vmem:[#allocation16_spill] sm:$0xff] %v4380_v6  ;;  %3549 = vset.pattern.permute.xlu1 %v3880_v9  ;;  %895 = vrot.lane.b32.xlu0 %v4132_v8, %s3879_s13 }
 0x133   : > { %521 = vperm.xlu1 %3549, %v4111_v2  }
 0x134   : > { %v4385_v10 = vpop.permute.xlu1 %427 }
 0x135   : > { %v4387_v11 = vpop.permute.xlu0 %534 }
 0x136   : > { %897 = vrot.lane.b32.xlu0 %v4125_v7, %s3879_s13 }
 0x137   : > { %769 = vrot.lane.b32.xlu1 %v4121_v5, %s7825_s30  ;;  %s3885_s30 = smov 87  }
 0x138   : > { %v4393_v12 = vpop.permute.xlu1 %425  ;;  %3550 = vset.pattern.permute.xlu1 %v3881_v13 }
 0x139   : > { %v4395_v14 = vpop.permute.xlu0 %596 }
 0x13a   : > { %8169 = vst [vmem:[#allocation17_spill] sm:$0xff] %v4395_v14  ;;  %916 = vrot.lane.b32.xlu0 %v4116_v3, %s3882_s29 }
 0x13b   : > { %855 = vperm.xlu1 %3550, %v4111_v2  }
 0x13c   : > { %v4400_v15 = vpop.permute.xlu1 %458 }
 0x13d   : > { %v4402_v16 = vpop.permute.xlu0 %559 }
 0x13e   : > { %8170 = vst [vmem:[#allocation18_spill] sm:$0xff] %v4402_v16  ;;  %920 = vrot.lane.b32.xlu0 %v4132_v8, %s3882_s29 }
 0x13f   : > { %3551 = vset.pattern.permute.xlu1 %v3883_v17  ;;  %v3888_v17 = vmov 66  }
 0x140   : > { %608 = vperm.xlu1 %3551, %v4111_v2   ;;  %v4407_v18 = vpop.permute.xlu1 %464 }
 0x141   : > { %v4409_v19 = vpop.permute.xlu0 %620 }
 0x142   : > { %8171 = vst [vmem:[#allocation19_spill] sm:$0xff] %v4409_v19  ;;  %922 = vrot.lane.b32.xlu0 %v4125_v7, %s3882_s29 }
 0x144   : > { %806 = vrot.lane.b32.xlu1 %v4121_v5, %s7827_s7  ;;  %v4415_v20 = vpop.permute.xlu1 %462  ;;  %s3887_s7 = smov 86  }
 0x145   : > { %3552 = vset.pattern.permute.xlu1 %v3884_v21  ;;  %v4417_v25 = vpop.permute.xlu0 %584 }
 0x146   : > { %8172 = vst [vmem:[#allocation20_spill] sm:$0xff] %v4417_v25  ;;  %941 = vrot.lane.b32.xlu0 %v4116_v3, %s3885_s30 }
 0x148   : > { %880 = vperm.xlu1 %3552, %v4111_v2   ;;  %v4422_v39 = vpop.permute.xlu1 %495 }
 0x149   : > { %v4424_v44 = vpop.permute.xlu0 %657 }
 0x14a   : > { %8173 = vst [vmem:[#allocation21_spill] sm:$0xff] %v4424_v44  ;;  %945 = vrot.lane.b32.xlu0 %v4132_v8, %s3885_s30 }
 0x14c   : > { %3553 = vset.pattern.permute.xlu1 %v3886_v53  ;;  %v4428_v57 = vpop.permute.xlu1 %501 }
 0x14d   : > { %632 = vperm.xlu1 %3553, %v4111_v2   ;;  %v4431_v61 = vpop.permute.xlu0 %643 }
 0x14e   : > { %8174 = vst [vmem:[#allocation22_spill] sm:$0xff] %v4431_v61  ;;  %966 = vrot.lane.b32.xlu0 %v4116_v3, %s3887_s7  ;;  %v3889_v3 = vmov 41  }
 0x150   : > { %v4435_v9 = vpop.permute.xlu1 %499 }
 0x151   : > { %843 = vrot.lane.b32.xlu1 %v4121_v5, %s3874_s6  ;;  %v4439_v13 = vpop.permute.xlu0 %647 }
 0x152   : > { %8175 = vst [vmem:[#allocation23_spill] sm:$0xff] %v4439_v13  ;;  %3554 = vset.pattern.permute.xlu1 %v3888_v17  ;;  %970 = vrot.lane.b32.xlu0 %v4132_v8, %s3887_s7  ;;  %v3890_v17 = vmov 67  }
 0x154   : > { %v4443_v21 = vpop.permute.xlu1 %532 }
 0x155   : > { %8176 = vst [vmem:[#allocation24_spill] sm:$0xff] %v4443_v21  ;;  %905 = vperm.xlu1 %3554, %v4111_v2   ;;  %v4446_v53 = vpop.permute.xlu0 %649 }
 0x156   : > { %8177 = vst [vmem:[#allocation25_spill] sm:$0xff] %v4446_v53 }
 0x158   : > { %v4448_v44 = vpop.permute.xlu1 %538 }
 0x159   : > { %3555 = vset.pattern.permute.xlu1 %v3889_v3  ;;  %v4453_v13 = vpop.permute.xlu0 %682  ;;  %v3891_v3 = vmov 42  }
 0x15a   : > { %669 = vperm.xlu1 %3555, %v4111_v2   ;;  %8178 = vst [vmem:[#allocation26_spill] sm:$0xff] %v4453_v13 }
 0x15c   : > { %v4451_v61 = vpop.permute.xlu1 %536 }
 0x15d   : > { %v4460_v53 = vpop.permute.xlu0 %744 }
 0x15e   : > { %868 = vrot.lane.b32.xlu1 %v4121_v5, %s3877_s14  ;;  %8180 = vst [vmem:[#allocation28_spill] sm:$0xff] %v4460_v53 }
 0x15f   : > { %3556 = vset.pattern.permute.xlu1 %v3890_v17 }
 0x160   : > { %v4457_v19 = vpop.permute.xlu1 %557 }
 0x161   : > { %8179 = vst [vmem:[#allocation27_spill] sm:$0xff] %v4457_v19  ;;  %v4467_v13 = vpop.permute.xlu0 %705  ;;  %v3892_v19 = vmov 68  }
 0x162   : > { %930 = vperm.xlu1 %3556, %v4111_v2   ;;  %8182 = vst [vmem:[#allocation30_spill] sm:$0xff] %v4467_v13 }
 0x164   : > { %v4462_v8 = vpop.permute.xlu1 %563 }
 0x165   : > { %8181 = vst [vmem:[#allocation29_spill] sm:$0xff] %v4462_v8  ;;  %v4474_v53 = vpop.permute.xlu0 %709  ;;  %v3896_v8 = vmov 9  }
 0x166   : > { %3557 = vset.pattern.permute.xlu1 %v3891_v3  ;;  %8184 = vst [vmem:[#allocation32_spill] sm:$0xff] %v4474_v53  ;;  %v3893_v3 = vmov 43   ;;  %3562 = vset.pattern.permute.xlu0 %v3896_v8 }
 0x167   : > { %756 = vperm.xlu1 %3557, %v4111_v2  }
 0x168   : > { %v4465_v14 = vpop.permute.xlu1 %561 }
 0x169   : > { %v4481_v13 = vpop.permute.xlu0 %711 }
 0x16a   : > { %8187 = vst [vmem:[#allocation35_spill] sm:$0xff] %v4481_v13 }
 0x16b   : > { %893 = vrot.lane.b32.xlu1 %v4121_v5, %s3879_s13 }
 0x16c   : > { %v4471_v17 = vpop.permute.xlu1 %582  ;;  %3558 = vset.pattern.permute.xlu1 %v3892_v19  ;;  %v3894_v19 = vmov 69  }
 0x16d   : > { %8183 = vst [vmem:[#allocation31_spill] sm:$0xff] %v4471_v17  ;;  %v4487_v25 = vpop.permute.xlu0 %484 }
 0x16e   : > { %8189 = vst [vmem:[#allocation37_spill] sm:$0xff] %v4487_v25 }
 0x16f   : > { %955 = vperm.xlu1 %3558, %v4111_v2  }
 0x170   : > { %v4476_v6 = vpop.permute.xlu1 %588 }
 0x171   : > { %8185 = vst [vmem:[#allocation33_spill] sm:$0xff] %v4476_v6  ;;  %v3895_v6 = vmov 44   ;;  %v4496_v13 = vpop.permute.xlu0 %734 }
 0x172   : > { %8193 = vst [vmem:[#allocation41_spill] sm:$0xff] %v4496_v13 }
 0x173   : > { %3559 = vset.pattern.permute.xlu1 %v3893_v3  ;;  %v4492_v3 = vld [vmem:[#allocation7 + $0x8] sm:$0xff] }
 0x174   : > { %793 = vperm.xlu1 %3559, %v4111_v2   ;;  %v4479_v21 = vpop.permute.xlu1 %586  ;;  %8191 = vst [vmem:[#allocation39_spill] sm:$0xff] %v4492_v3  ;;  %1077 = vperm.xlu0 %3562, %v4492_v3  }
 0x175   : > { %8186 = vst [vmem:[#allocation34_spill] sm:$0xff] %v4479_v21  ;;  %v4504_v25 = vpop.permute.xlu0 %736 }
 0x176   : > { %8195 = vst [vmem:[#allocation43_spill] sm:$0xff] %v4504_v25 }
 0x178   : > { %918 = vrot.lane.b32.xlu1 %v4121_v5, %s3882_s29  ;;  %v4485_v17 = vpop.permute.xlu1 %694 }
 0x179   : > { %8188 = vst [vmem:[#allocation36_spill] sm:$0xff] %v4485_v17  ;;  %3560 = vset.pattern.permute.xlu1 %v3894_v19  ;;  %v3897_v17 = vmov 35  }
 0x17c   : > { %980 = vperm.xlu1 %3560, %v4111_v2   ;;  %v4490_v53 = vpop.permute.xlu1 %645 }
 0x17d   : > { %8190 = vst [vmem:[#allocation38_spill] sm:$0xff] %v4490_v53  ;;  %v4513_v53 = vpop.permute.xlu0 %767 }
 0x17e   : > { %8198 = vst [vmem:[#allocation46_spill] sm:$0xff] %v4513_v53 }
 0x180   : > { %3561 = vset.pattern.permute.xlu1 %v3895_v6  ;;  %v4494_v21 = vpop.permute.xlu1 %719  ;;  %v3898_v6 = vmov 10  }
 0x181   : > { %8192 = vst [vmem:[#allocation40_spill] sm:$0xff] %v4494_v21  ;;  %830 = vperm.xlu1 %3561, %v4111_v2   ;;  %3565 = vset.pattern.permute.xlu0 %v3898_v6  ;;  %v4521_v25 = vpop.permute.xlu0 %771 }
 0x182   : > { %1125 = vperm.xlu0 %3565, %v4492_v3   ;;  %8200 = vst [vmem:[#allocation48_spill] sm:$0xff] %v4521_v25 }
 0x184   : > { %v4500_v19 = vpop.permute.xlu1 %680 }
 0x185   : > { %8194 = vst [vmem:[#allocation42_spill] sm:$0xff] %v4500_v19  ;;  %943 = vrot.lane.b32.xlu1 %v4121_v5, %s3885_s30 }
 0x186   : > { %3563 = vset.pattern.permute.xlu1 %v3897_v17 }
 0x188   : > { %v4507_v21 = vpop.permute.xlu1 %684 }
 0x189   : > { %8196 = vst [vmem:[#allocation44_spill] sm:$0xff] %v4507_v21  ;;  %947 = vrot.lane.b32.xlu1 %v4125_v7, %s3885_s30  ;;  %v7863_v21 = vmov 11  }
 0x18a   : > { %3568 = vset.pattern.permute.xlu0 %v7863_v21 }
 0x18c   : > { %v4511_v13 = vpop.permute.xlu1 %686 }
 0x18d   : > { %8197 = vst [vmem:[#allocation45_spill] sm:$0xff] %v4511_v13  ;;  %968 = vrot.lane.b32.xlu1 %v4121_v5, %s3887_s7  ;;  %v4527_v13 = vpop.permute.xlu0 %773 }
 0x18e   : > { %8202 = vst [vmem:[#allocation50_spill] sm:$0xff] %v4527_v13 }
 0x190   : > { %v4517_v19 = vpop.permute.xlu1 %447 }
 0x191   : > { %8199 = vst [vmem:[#allocation47_spill] sm:$0xff] %v4517_v19  ;;  %972 = vrot.lane.b32.xlu1 %v4125_v7, %s3887_s7  ;;  %v4532_v5 = vpop.permute.xlu0 %804 }
 0x192   : > { %8204 = vst [vmem:[#allocation52_spill] sm:$0xff] %v4532_v5  ;;  %v277_v5 = vlaneseq }
 0x194   : > { %v4523_v16 = vpop.permute.xlu1 %707 }
 0x195   : > { %8201 = vst [vmem:[#allocation49_spill] sm:$0xff] %v4523_v16  ;;  %1045 = vperm.xlu1 %3563, %v4492_v3   ;;  %v4539_v3 = vpop.permute.xlu0 %808  ;;  %v4557_v16 = vshrl.u32 %v277_v5, 7 }
 0x196   : > { %8206 = vst [vmem:[#allocation54_spill] sm:$0xff] %v4539_v3 }
 0x197   : > { %8214 = vst [vmem:[#allocation62_spill] sm:$0xff] %v4557_v16 }
 0x198   : > { %v4529_v53 = vpop.permute.xlu1 %781 }
 0x199   : > { %8203 = vst [vmem:[#allocation51_spill] sm:$0xff] %v4529_v53  ;;  %3564 = vset.pattern.permute.xlu1 %v3896_v8  ;;  %v4543_v25 = vpop.permute.xlu0 %810 }
 0x19a   : > { %1073 = vperm.xlu1 %3564, %v4111_v2   ;;  %8208 = vst [vmem:[#allocation56_spill] sm:$0xff] %v4543_v25 }
 0x19d   : > { %v4534_v19 = vpop.permute.xlu1 %262  ;;  %v4547_v8 = vpop.permute.xlu0 %841 }
 0x19e   : > { %8205 = vst [vmem:[#allocation53_spill] sm:$0xff] %v4534_v19  ;;  %3566 = vset.pattern.permute.xlu1 %v3897_v17  ;;  %8210 = vst [vmem:[#allocation58_spill] sm:$0xff] %v4547_v8  ;;  %v4553_v17 = vand.u32 127, %v277_v5 }
 0x19f   : > { %1041 = vperm.xlu1 %3566, %v4111_v2  }
 0x1a0   : > { %vm279_vm0 = vcmp.lt.s32.totalorder %v4553_v17, 42  ;;  %vm304_vm1 = vcmp.lt.s32.totalorder %v4553_v17, 41  ;;  %vm329_vm2 = vcmp.lt.s32.totalorder %v4553_v17, 40  ;;  %vm354_vm3 = vcmp.lt.s32.totalorder %v4553_v17, 39 }
 0x1a1   : > { %v4537_v7 = vpop.permute.xlu1 %730  ;;  %v4555_v2 = vpop.permute.xlu0 %845  ;;  %v280_v5 = vsel %vm279_vm0, %v4261_v30, %v4253_v28  ;;  %vm379_vm4 = vcmp.lt.s32.totalorder %v4553_v17, 38  ;;  %vm404_vm5 = vcmp.lt.s32.totalorder %v4553_v17, 22  ;;  %vm429_vm6 = vcmp.lt.s32.totalorder %v4553_v17, 21 }
 0x1a2   : > { %8213 = vst [vmem:[#allocation61_spill] sm:$0xff] %v4555_v2  ;;  %v4581_v2 = vld [vmem:[#allocation5] sm:$0xf]  ;;  %v291_v25 = vmul.f32 %v4235_v23, %v280_v5  ;;  %vm466_vm7 = vcmp.lt.s32.totalorder %v4553_v17, 20  ;;  %vm503_vm8 = vcmp.lt.s32.totalorder %v4553_v17, 19  ;;  %vm7914_vm9 = vcmp.lt.s32.totalorder %v4553_v17, 18 }
 0x1a3   : > { %3567 = vset.pattern.permute.xlu1 %v3898_v6  ;;  %8217 = vst [vmem:[#allocation65_spill] sm:$0xff] %v4581_v2  ;;  %vm7899_vm10 = vcmp.lt.s32.totalorder %v4553_v17, 2  ;;  %vm7888_vm11 = vcmp.lt.s32.totalorder %v4553_v17, 127  ;;  %vm7885_vm12 = vcmp.lt.s32.totalorder %v4553_v17, 1  ;;  %vm7896_vm13 = vcmp.lt.s32.totalorder %v4553_v17, 126 }
 0x1a4   : > { %vm7904_vm14 = vcmp.lt.s32.totalorder %v4553_v17, 110  ;;  %vm7913_vm15 = vcmp.lt.s32.totalorder %v4553_v17, 109 }
 0x1a5   : > { %v4541_v21 = vpop.permute.xlu1 %732  ;;  %v4567_v8 = vpop.permute.xlu0 %847 }
 0x1a6   : > { %8207 = vst [vmem:[#allocation55_spill] sm:$0xff] %v4541_v21  ;;  %v1002_v21 = vsub.s32 0, %v4557_v16  ;;  %8216 = vst [vmem:[#allocation64_spill] sm:$0xff] %v4567_v8 }
 0x1a9   : > { %v4545_v53 = vpop.permute.xlu1 %818 }
 0x1aa   : > { %8209 = vst [vmem:[#allocation57_spill] sm:$0xff] %v4545_v53 }
 0x1ae   : > { %v4549_v13 = vpop.permute.xlu1 %521 }
 0x1af   : > { %8211 = vst [vmem:[#allocation59_spill] sm:$0xff] %v4549_v13  ;;  %v282_v13 = vsel %vm279_vm0, %v4241_v24, %v4249_v27 }
 0x1b0   : > { %v289_v8 = vmul.f32 %v4235_v23, %v282_v13  ;;  %v4600_v13 = vrot.slane %v4581_v2, %v1002_v21  ;;  %v4619_v21 = vpop.permute.xlu0 %866 }
 0x1b2   : > { %v4551_v19 = vpop.permute.xlu1 %769  ;;  %8218 = vst [vmem:[#allocation66_spill] sm:$0xff] %v4600_v13  ;;  %v8258_v13 = vld [vmem:[#allocation43_spill] sm:$0xff] }
 0x1b3   : > { %8212 = vst [vmem:[#allocation60_spill] sm:$0xff] %v4551_v19  ;;  %v1006_v19 = vsub.s32 1, %v4557_v16  ;;  %v283_v16 = vsel %vm279_vm0, %v4253_v28, %v4241_v24  ;;  %v308_v28 = vsel %vm304_vm1, %v4272_v33, %v4264_v31 }
 0x1b4   : > { %v288_v5 = vmul.f32 %v4235_v23, %v283_v16 }
 0x1b5   : > { %v4603_v24 = vrot.slane %v4581_v2, %v1006_v19  ;;  %v295_v2 = vadd.f32 %v291_v25, %v4245_v26 }
 0x1b6   : > { %v4559_v6 = vpop.permute.xlu1 %855 }
 0x1b7   : > { %8215 = vst [vmem:[#allocation63_spill] sm:$0xff] %v4559_v6  ;;  %v281_v6 = vsel %vm279_vm0, %v4249_v27, %v4261_v30  ;;  %v307_v27 = vsel %vm304_vm1, %v4264_v31, %v4268_v32  ;;  %v306_v30 = vsel %vm304_vm1, %v4268_v32, %v4280_v35  ;;  %8219 = vst [vmem:[#allocation67_spill] sm:$0xff] %v4603_v24 }
 0x1b8   : > { %v290_v3 = vmul.f32 %v4235_v23, %v281_v6  ;;  %v305_v32 = vsel %vm304_vm1, %v4280_v35, %v4272_v33  ;;  %v314_v19 = vmul.f32 %v4233_v22, %v307_v27  ;;  %v315_v31 = vmul.f32 %v4233_v22, %v306_v30 }
 0x1b9   : > { %v332_v23 = vsel %vm329_vm2, %v4287_v37, %v4283_v36  ;;  %v331_v33 = vsel %vm329_vm2, %v4283_v36, %v4302_v42  ;;  %v293_v35 = vadd.f32 %v289_v8, %v4245_v26  ;;  %v313_v27 = vmul.f32 %v4233_v22, %v308_v28 }
 0x1ba   : > { %v294_v16 = vadd.f32 %v290_v3, %v4245_v26  ;;  %v316_v30 = vmul.f32 %v4233_v22, %v305_v32  ;;  %v333_v24 = vsel %vm329_vm2, %v4295_v40, %v4287_v37  ;;  %v330_v36 = vsel %vm329_vm2, %v4302_v42, %v4295_v40 }
 0x1bb   : > { %v4579_v53 = vpop.permute.xlu1 %608  ;;  %v357_v3 = vsel %vm354_vm3, %v4310_v45, %v4298_v41  ;;  %v292_v22 = vadd.f32 %v288_v5, %v4245_v26  ;;  %v339_v8 = vmul.f32 %v4257_v29, %v332_v23  ;;  %v340_v37 = vmul.f32 %v4257_v29, %v331_v33 }
 0x1bc   : > { %v356_v40 = vsel %vm354_vm3, %v4298_v41, %v4326_v49  ;;  %v318_v42 = vadd.f32 %v314_v19, %v293_v35  ;;  %v319_v28 = vadd.f32 %v315_v31, %v294_v16  ;;  %v358_v32 = vsel %vm354_vm3, %v4318_v47, %v4310_v45  ;;  %v4673_v19 = vpop.permute.xlu0 %870 }
 0x1bd   : > { %v355_v26 = vsel %vm354_vm3, %v4326_v49, %v4318_v47  ;;  %v338_v5 = vmul.f32 %v4257_v29, %v333_v24  ;;  %v341_v23 = vmul.f32 %v4257_v29, %v330_v36  ;;  %v364_v33 = vmul.f32 %v4276_v34, %v357_v3 }
 0x1be   : > { %v381_v41 = vsel %vm379_vm4, %v4314_v46, %v4348_v56  ;;  %v317_v31 = vadd.f32 %v313_v27, %v292_v22  ;;  %v320_v45 = vadd.f32 %v316_v30, %v295_v2  ;;  %v365_v35 = vmul.f32 %v4276_v34, %v356_v40 }
 0x1bf   : > { %v4610_v6 = vpop.permute.xlu1 %806  ;;  %v343_v47 = vadd.f32 %v339_v8, %v318_v42  ;;  %v344_v49 = vadd.f32 %v340_v37, %v319_v28  ;;  %v363_v24 = vmul.f32 %v4276_v34, %v358_v32  ;;  %v366_v29 = vmul.f32 %v4276_v34, %v355_v26 }
 0x1c0   : > { %v382_v36 = vsel %vm379_vm4, %v4333_v51, %v4314_v46  ;;  %v383_v2 = vsel %vm379_vm4, %v4341_v54, %v4333_v51  ;;  %v380_v27 = vsel %vm379_vm4, %v4348_v56, %v4341_v54  ;;  %v390_v30 = vmul.f32 %v4291_v38, %v381_v41 }
 0x1c1   : > { %v342_v34 = vadd.f32 %v338_v5, %v317_v31  ;;  %v345_v3 = vadd.f32 %v341_v23, %v320_v45  ;;  %v368_v22 = vadd.f32 %v364_v33, %v343_v47  ;;  %v406_v46 = vsel %vm404_vm5, %v4329_v50, %v4371_v0 }
 0x1c2   : > { %v369_v8 = vadd.f32 %v365_v35, %v344_v49  ;;  %v407_v51 = vsel %vm404_vm5, %v4355_v59, %v4329_v50  ;;  %v408_v54 = vsel %vm404_vm5, %v4363_v62, %v4355_v59  ;;  %v405_v56 = vsel %vm404_vm5, %v4371_v0, %v4363_v62  ;;  %v4721_v59 = vpop.permute.xlu0 %872 }
 0x1c3   : > { %v4649_v25 = vpop.permute.xlu1 %880  ;;  %v389_v37 = vmul.f32 %v4291_v38, %v382_v36  ;;  %v388_v40 = vmul.f32 %v4291_v38, %v383_v2  ;;  %v391_v42 = vmul.f32 %v4291_v38, %v380_v27  ;;  %v4719_v50 = vsel %vm429_vm6, %v4344_v55, %v4393_v12 }
 0x1c4   : > { %8220 = vst [vmem:[#allocation68_spill] sm:$0xff] %v4719_v50  ;;  %v367_v32 = vadd.f32 %v363_v24, %v342_v34  ;;  %v370_v62 = vadd.f32 %v366_v29, %v345_v3  ;;  %v394_v0 = vadd.f32 %v390_v30, %v369_v8  ;;  %v415_v26 = vmul.f32 %v4306_v43, %v406_v46 }
 0x1c5   : > { %v414_v5 = vmul.f32 %v4306_v43, %v407_v51  ;;  %v413_v23 = vmul.f32 %v4306_v43, %v408_v54  ;;  %v416_v38 = vmul.f32 %v4306_v43, %v405_v56  ;;  %v4733_v33 = vsel %vm429_vm6, %v4378_v4, %v4344_v55 }
 0x1c6   : > { %v4739_v41 = vsel %vm429_vm6, %v4385_v10, %v4378_v4  ;;  %v4745_v31 = vsel %vm429_vm6, %v4393_v12, %v4385_v10  ;;  %v440_v43 = vmul.f32 %v4322_v48, %v4719_v50  ;;  %v4753_v55 = vsel %vm466_vm7, %v4357_v60, %v4415_v20  ;;  %v4784_v27 = vpop.permute.xlu0 %891 }
 0x1c7   : > { %8221 = vst [vmem:[#allocation69_spill] sm:$0xff] %v4753_v55  ;;  %v393_v45 = vadd.f32 %v389_v37, %v368_v22  ;;  %v392_v35 = vadd.f32 %v388_v40, %v367_v32  ;;  %v395_v47 = vadd.f32 %v391_v42, %v370_v62  ;;  %v419_v49 = vadd.f32 %v415_v26, %v394_v0  ;;  %v8224_v0 = vld [vmem:[#allocation18_spill] sm:$0xff] }
 0x1c8   : > { %v4679_v16 = vpop.permute.xlu1 %632  ;;  %v439_v10 = vmul.f32 %v4322_v48, %v4733_v33  ;;  %v4764_v12 = vsel %vm466_vm7, %v4400_v15, %v4357_v60  ;;  %v4770_v24 = vsel %vm466_vm7, %v4415_v20, %v4407_v18  ;;  %v438_v29 = vmul.f32 %v4322_v48, %v4739_v41 }
 0x1c9   : > { %v441_v36 = vmul.f32 %v4322_v48, %v4745_v31  ;;  %v477_v2 = vmul.f32 %v4337_v52, %v4753_v55  ;;  %v4782_v60 = vsel %vm503_vm8, %v4373_v1, %v4435_v9  ;;  %v418_v30 = vadd.f32 %v414_v5, %v393_v45 }
 0x1ca   : > { %8222 = vst [vmem:[#allocation70_spill] sm:$0xff] %v4782_v60  ;;  %v417_v20 = vadd.f32 %v413_v23, %v392_v35  ;;  %v420_v34 = vadd.f32 %v416_v38, %v395_v47  ;;  %v444_v3 = vadd.f32 %v440_v43, %v419_v49  ;;  %v476_v22 = vmul.f32 %v4337_v52, %v4764_v12  ;;  %v4837_v38 = vpop.permute.xlu0 %895  ;;  %v8225_v35 = vld [vmem:[#allocation29_spill] sm:$0xff]  ;;  %v8226_v49 = vld [vmem:[#allocation34_spill] sm:$0xff] }
 0x1cb   : > { %v478_v48 = vmul.f32 %v4337_v52, %v4770_v24  ;;  %v4794_v46 = vsel %vm503_vm8, %v4435_v9, %v4428_v57  ;;  %v542_v8 = vsel %vm7914_vm9, %v4387_v11, %v4451_v61  ;;  %v443_v51 = vadd.f32 %v439_v10, %v418_v30  ;;  %v8227_v10 = vld [vmem:[#allocation20_spill] sm:$0xff] }
 0x1cc   : > { %v4723_v28 = vpop.permute.xlu1 %843  ;;  %v4804_v54 = vsel %vm466_vm7, %v4407_v18, %v4400_v15  ;;  %v514_v56 = vmul.f32 %v4350_v58, %v4782_v60  ;;  %v442_v37 = vadd.f32 %v438_v29, %v417_v20  ;;  %v445_v40 = vadd.f32 %v441_v36, %v420_v34 }
 0x1cd   : > { %v481_v42 = vadd.f32 %v477_v2, %v444_v3  ;;  %v541_v32 = vsel %vm7914_vm9, %v4451_v61, %v4448_v44  ;;  %v4820_v15 = vsel %vm503_vm8, %v4422_v39, %v4373_v1  ;;  %v515_v18 = vmul.f32 %v4350_v58, %v4794_v46  ;;  %v8230_v2 = vld [vmem:[#allocation16_spill] sm:$0xff] }
 0x1ce   : > { %v551_v62 = vmul.f32 %v4365_v63, %v542_v8  ;;  %v567_v26 = vsel %vm7899_vm10, %v8224_v0, %v4465_v14  ;;  %v480_v5 = vadd.f32 %v476_v22, %v443_v51  ;;  %v475_v61 = vmul.f32 %v4337_v52, %v4804_v54  ;;  %v8231_v22 = vld [vmem:[#allocation33_spill] sm:$0xff] }
 0x1cf   : > { %v482_v23 = vadd.f32 %v478_v48, %v445_v40  ;;  %v4835_v1 = vsel %vm503_vm8, %v4428_v57, %v4422_v39  ;;  %v518_v43 = vadd.f32 %v514_v56, %v481_v42  ;;  %v552_v45 = vmul.f32 %v4365_v63, %v541_v32  ;;  %v8229_v57 = vld [vmem:[#allocation24_spill] sm:$0xff]  ;;  %v8234_v51 = vld [vmem:[#allocation17_spill] sm:$0xff] }
 0x1d0   : > { %v4756_v4 = vpop.permute.xlu1 %905  ;;  %v566_v47 = vsel %vm7899_vm10, %v4465_v14, %v8225_v35  ;;  %v4848_v52 = vsel %vm7885_vm12, %v8227_v10, %v8226_v49  ;;  %v513_v39 = vmul.f32 %v4350_v58, %v4820_v15  ;;  %v543_v36 = vsel %vm7914_vm9, %v8229_v57, %v4387_v11  ;;  %v8233_v11 = vld [vmem:[#allocation27_spill] sm:$0xff] }
 0x1d1   : > { %8228 = vst [vmem:[#allocation18_spill] sm:$0xff] %v4848_v52  ;;  %v544_v14 = vsel %vm7914_vm9, %v4448_v44, %v8229_v57  ;;  %v576_v30 = vmul.f32 %v8230_v2, %v567_v26  ;;  %v512_v20 = vmul.f32 %v4350_v58, %v4835_v1  ;;  %v519_v34 = vadd.f32 %v515_v18, %v482_v23  ;;  %v8235_v26 = vld [vmem:[#allocation31_spill] sm:$0xff] }
 0x1d2   : > { %v555_v3 = vadd.f32 %v551_v62, %v518_v43  ;;  %v4870_v48 = vsel %vm7885_vm12, %v8226_v49, %v8231_v22  ;;  %v568_v44 = vsel %vm7899_vm10, %v8233_v11, %v8224_v0  ;;  %v569_v8 = vsel %vm7899_vm10, %v8225_v35, %v8233_v11  ;;  %v8236_v49 = vld [vmem:[#allocation15_spill] sm:$0xff] }
 0x1d3   : > { %8232 = vst [vmem:[#allocation29_spill] sm:$0xff] %v4870_v48  ;;  %v577_v58 = vmul.f32 %v8230_v2, %v566_v47  ;;  %v601_v56 = vmul.f32 %v8234_v51, %v4848_v52  ;;  %v479_v40 = vadd.f32 %v475_v61, %v442_v37  ;;  %v550_v42 = vmul.f32 %v4365_v63, %v543_v36  ;;  %v4903_v61 = vpop.permute.xlu0 %897  ;;  %v8238_v36 = vld [vmem:[#allocation25_spill] sm:$0xff] }
 0x1d4   : > { %v549_v32 = vmul.f32 %v4365_v63, %v544_v14  ;;  %v556_v18 = vadd.f32 %v552_v45, %v519_v34  ;;  %v580_v0 = vadd.f32 %v576_v30, %v555_v3  ;;  %v4892_v23 = vsel %vm7885_vm12, %v8235_v26, %v8227_v10  ;;  %v8237_v10 = vld [vmem:[#allocation19_spill] sm:$0xff] }
 0x1d5   : > { %v4810_v9 = vpop.permute.xlu1 %669  ;;  %v4898_v37 = vsel %vm7885_vm12, %v8231_v22, %v8235_v26  ;;  %v602_v63 = vmul.f32 %v8234_v51, %v4870_v48  ;;  %v517_v43 = vadd.f32 %v513_v39, %v480_v5  ;;  %v516_v45 = vadd.f32 %v512_v20, %v479_v40  ;;  %v8239_v14 = vld [vmem:[#allocation23_spill] sm:$0xff]  ;;  %v8244_v40 = vld [vmem:[#allocation22_spill] sm:$0xff] }
 0x1d6   : > { %8223 = vst [vmem:[#allocation71_spill] sm:$0xff] %v4810_v9  ;;  %v575_v35 = vmul.f32 %v8230_v2, %v568_v44  ;;  %v574_v47 = vmul.f32 %v8230_v2, %v569_v8  ;;  %v625_v57 = vmul.f32 %v8237_v10, %v8236_v49  ;;  %v4913_v30 = vsel %vm7888_vm11, %v8239_v14, %v8238_v36  ;;  %v4920_v2 = vld [vmem:[%s4097_s20] sm:$0xff]  ;;  %v4925_v44 = vld [vmem:[%s4097_s20 + $0x18] sm:$0xff] }
 0x1d7   : > { %8240 = vst [vmem:[#allocation34_spill] sm:$0xff] %v4913_v30  ;;  %v581_v34 = vadd.f32 %v577_v58, %v556_v18  ;;  %v605_v3 = vadd.f32 %v601_v56, %v580_v0  ;;  %v554_v22 = vadd.f32 %v550_v42, %v517_v43  ;;  %v553_v11 = vadd.f32 %v549_v32, %v516_v45  ;;  %v8246_v18 = vld [vmem:[#allocation45_spill] sm:$0xff]  ;;  %v8247_v0 = vld [vmem:[#allocation44_spill] sm:$0xff]  ;;  %v8249_v49 = vld [vmem:[#allocation38_spill] sm:$0xff] }
 0x1d8   : > { %v600_v5 = vmul.f32 %v8234_v51, %v4892_v23  ;;  %v599_v39 = vmul.f32 %v8234_v51, %v4898_v37  ;;  %8241 = vst [vmem:[#allocation20_spill] sm:$0xff] %v4920_v2  ;;  %v623_v20 = vmul.f32 %v4920_v2, %v8237_v10  ;;  %8242 = vst [vmem:[#allocation24_spill] sm:$0xff] %v4925_v44  ;;  %vm775_vm12 = vcmp.lt.s32.totalorder %v4553_v17, 108  ;;  %v8248_v43 = vld [vmem:[#allocation21_spill] sm:$0xff]  ;;  %v8271_v2 = vld [vmem:[#allocation56_spill] sm:$0xff] }
 0x1d9   : > { %v4850_v29 = vpop.permute.xlu1 %868  ;;  %v626_v8 = vmul.f32 %v4925_v44, %v8237_v10  ;;  %v606_v58 = vadd.f32 %v602_v63, %v581_v34  ;;  %v4936_v51 = vsel %vm7888_vm11, %v8238_v36, %v8244_v40  ;;  %v579_v42 = vadd.f32 %v575_v35, %v554_v22  ;;  %v4959_v36 = vld [vmem:[%s4097_s20 + $0x8] sm:$0xff] }
 0x1da   : > { %8245 = vst [vmem:[#allocation33_spill] sm:$0xff] %v4936_v51  ;;  %v578_v32 = vadd.f32 %v574_v47, %v553_v11  ;;  %v689_v26 = vsel %vm7896_vm13, %v8247_v0, %v8246_v18  ;;  %v662_v63 = vmul.f32 %v8248_v43, %v4913_v30  ;;  %v629_v45 = vadd.f32 %v625_v57, %v605_v3  ;;  %v4956_v47 = vpop.permute.xlu0 %916  ;;  %v8251_v11 = vld [vmem:[#allocation42_spill] sm:$0xff] }
 0x1db   : > { %v4948_v34 = vsel %vm7888_vm11, %v8249_v49, %v8239_v14  ;;  %v4954_v35 = vsel %vm7888_vm11, %v8244_v40, %v8249_v49  ;;  %v624_v22 = vmul.f32 %v4959_v36, %v8237_v10  ;;  %v604_v57 = vadd.f32 %v600_v5, %v579_v42  ;;  %v8252_v40 = vld [vmem:[#allocation36_spill] sm:$0xff] }
 0x1dc   : > { %8250 = vst [vmem:[#allocation27_spill] sm:$0xff] %v4954_v35  ;;  %v603_v3 = vadd.f32 %v599_v39, %v578_v32  ;;  %v692_v14 = vsel %vm7896_vm13, %v8246_v18, %v8251_v11  ;;  %v663_v30 = vmul.f32 %v8248_v43, %v4936_v51  ;;  %v630_v52 = vadd.f32 %v626_v8, %v606_v58  ;;  %v8253_v39 = vld [vmem:[#allocation26_spill] sm:$0xff]  ;;  %v8254_v58 = vld [vmem:[#allocation35_spill] sm:$0xff]  ;;  %v8255_v32 = vld [vmem:[#allocation32_spill] sm:$0xff] }
 0x1dd   : > { %v4886_v62 = vpop.permute.xlu1 %930  ;;  %v699_v49 = vmul.f32 %v8252_v40, %v689_v26  ;;  %vm812_vm11 = vcmp.lt.s32.totalorder %v4553_v17, 107  ;;  %v660_v10 = vmul.f32 %v8248_v43, %v4954_v35  ;;  %v661_v5 = vmul.f32 %v8248_v43, %v4948_v34  ;;  %v8256_v26 = vld [vmem:[#allocation30_spill] sm:$0xff] }
 0x1de   : > { %v691_v42 = vsel %vm7896_vm13, %v8251_v11, %v8253_v39  ;;  %v690_v8 = vsel %vm7896_vm13, %v8253_v39, %v8247_v0  ;;  %v714_v18 = vsel %vm7904_vm14, %v8255_v32, %v8254_v58  ;;  %v717_v43 = vsel %vm7904_vm14, %v8254_v58, %v8256_v26  ;;  %v8257_v11 = vld [vmem:[#allocation37_spill] sm:$0xff] }
 0x1df   : > { %v666_v55 = vadd.f32 %v662_v63, %v629_v45  ;;  %v700_v51 = vmul.f32 %v8252_v40, %v692_v14  ;;  %v487_v50 = vmul.f32 %v8257_v11, %v4804_v54  ;;  %v628_v44 = vadd.f32 %v624_v22, %v604_v57  ;;  %v8259_v0 = vld [vmem:[#allocation41_spill] sm:$0xff]  ;;  %v5005_v14 = vpop.permute.xlu0 %920 }
 0x1e0   : > { %v627_v48 = vadd.f32 %v623_v20, %v603_v3  ;;  %v5000_v39 = vsel %vm7913_vm15, %v8259_v0, %v8258_v13  ;;  %vm7915_vm13 = vcmp.lt.s32.totalorder %v4553_v17, 106  ;;  %v697_v35 = vmul.f32 %v8252_v40, %v691_v42  ;;  %v8263_v3 = vld [vmem:[#allocation40_spill] sm:$0xff] }
 0x1e1   : > { %8260 = vst [vmem:[#allocation17_spill] sm:$0xff] %v5000_v39  ;;  %v698_v58 = vmul.f32 %v8252_v40, %v690_v8  ;;  %v667_v63 = vadd.f32 %v663_v30, %v630_v52  ;;  %v703_v45 = vadd.f32 %v699_v49, %v666_v55  ;;  %v488_v54 = vmul.f32 %v8257_v11, %v4764_v12  ;;  %v8264_v55 = vld [vmem:[#allocation49_spill] sm:$0xff]  ;;  %v8267_v49 = vld [vmem:[#allocation48_spill] sm:$0xff] }
 0x1e2   : > { %v4930_v56 = vpop.permute.xlu1 %756  ;;  %v664_v20 = vadd.f32 %v660_v10, %v627_v48  ;;  %v665_v22 = vadd.f32 %v661_v5, %v628_v44  ;;  %v5015_v57 = vsel %vm7913_vm15, %v8258_v13, %v4537_v7  ;;  %v724_v42 = vmul.f32 %v8263_v3, %v714_v18  ;;  %v8265_v13 = vld [vmem:[#allocation28_spill] sm:$0xff]  ;;  %v8266_v44 = vld [vmem:[#allocation50_spill] sm:$0xff] }
 0x1e3   : > { %8243 = vst [vmem:[#allocation16_spill] sm:$0xff] %v4930_v56  ;;  %8262 = vst [vmem:[#allocation15_spill] sm:$0xff] %v5015_v57  ;;  %v704_v40 = vadd.f32 %v700_v51, %v667_v63  ;;  %v715_v52 = vsel %vm7904_vm14, %v8264_v55, %v8255_v32  ;;  %v716_v12 = vsel %vm7904_vm14, %v8256_v26, %v8264_v55  ;;  %vm874_vm10 = vcmp.lt.s32.totalorder %v4553_v17, 90  ;;  %v8269_v10 = vld [vmem:[#allocation46_spill] sm:$0xff] }
 0x1e4   : > { %v725_v48 = vmul.f32 %v8263_v3, %v717_v43  ;;  %v749_v30 = vmul.f32 %v8265_v13, %v5000_v39  ;;  %v5034_v51 = vsel %vm775_vm12, %v8267_v49, %v8266_v44  ;;  %v5040_v5 = vsel %vm775_vm12, %v8266_v44, %v8269_v10  ;;  %v8270_v43 = vld [vmem:[#allocation47_spill] sm:$0xff] }
 0x1e5   : > { %8268 = vst [vmem:[#allocation19_spill] sm:$0xff] %v5034_v51  ;;  %v701_v8 = vadd.f32 %v697_v35, %v664_v20  ;;  %v702_v32 = vadd.f32 %v698_v58, %v665_v22  ;;  %v728_v18 = vadd.f32 %v724_v42, %v703_v45  ;;  %v750_v26 = vmul.f32 %v8265_v13, %v5015_v57  ;;  %v5062_v22 = vpop.permute.xlu0 %922 }
 0x1e6   : > { %v4971_v60 = vpop.permute.xlu1 %893  ;;  %v450_v63 = vmul.f32 %v8270_v43, %v4739_v41  ;;  %v722_v55 = vmul.f32 %v8263_v3, %v716_v12  ;;  %v723_v39 = vmul.f32 %v8263_v3, %v715_v52  ;;  %v451_v35 = vmul.f32 %v8270_v43, %v4733_v33  ;;  %v8275_v41 = vld [vmem:[#allocation51_spill] sm:$0xff]  ;;  %8276 = vst [vmem:[#allocation22_spill] sm:$0xff] %v5062_v22  ;;  %v8277_v3 = vld [vmem:[#allocation53_spill] sm:$0xff] }
 0x1e7   : > { %v453_v58 = vmul.f32 %v8270_v43, %v4745_v31  ;;  %v786_v45 = vmul.f32 %v8275_v41, %v5034_v51  ;;  %v729_v20 = vadd.f32 %v725_v48, %v704_v40  ;;  %v8278_v52 = vld [vmem:[#allocation55_spill] sm:$0xff]  ;;  %v8279_v31 = vld [vmem:[#allocation52_spill] sm:$0xff]  ;;  %vm899_vm14 = vcmp.lt.s32.totalorder %v4553_v17, 89 }
 0x1e8   : > { %v454_v42 = vadd.f32 %v450_v63, %v8277_v3  ;;  %v5069_v12 = vsel %vm7913_vm15, %v8278_v52, %v8259_v0  ;;  %v5075_v33 = vsel %vm7913_vm15, %v4537_v7, %v8278_v52  ;;  %v5081_v40 = vsel %vm812_vm11, %v8271_v2, %v8279_v31 }
 0x1e9   : > { %8280 = vst [vmem:[#allocation45_spill] sm:$0xff] %v5081_v40  ;;  %v753_v48 = vadd.f32 %v749_v30, %v728_v18  ;;  %v455_v63 = vadd.f32 %v451_v35, %v8277_v3  ;;  %v457_v0 = vadd.f32 %v453_v58, %v8277_v3  ;;  %v754_v51 = vadd.f32 %v750_v26, %v729_v20  ;;  %v8281_v18 = vld [vmem:[#allocation64_spill] sm:$0xff]  ;;  %v8282_v35 = vld [vmem:[#allocation61_spill] sm:$0xff]  ;;  %v8284_v58 = vld [vmem:[#allocation58_spill] sm:$0xff] }
 0x1ea   : > { %v5007_v56 = vpop.permute.xlu1 %955  ;;  %v490_v57 = vmul.f32 %v8257_v11, %v4770_v24  ;;  %v726_v43 = vadd.f32 %v722_v55, %v701_v8  ;;  %v727_v7 = vadd.f32 %v723_v39, %v702_v32  ;;  %v787_v52 = vmul.f32 %v8275_v41, %v5040_v5  ;;  %v5102_v24 = vpop.permute.xlu0 %941  ;;  %v8283_v8 = vld [vmem:[#allocation57_spill] sm:$0xff]  ;;  %v8285_v11 = vld [vmem:[#allocation60_spill] sm:$0xff] }
 0x1eb   : > { %8261 = vst [vmem:[#allocation31_spill] sm:$0xff] %v5007_v56  ;;  %v8272_v56 = vld [vmem:[#allocation54_spill] sm:$0xff]  ;;  %v747_v22 = vmul.f32 %v8265_v13, %v5075_v33  ;;  %v748_v30 = vmul.f32 %v8265_v13, %v5069_v12  ;;  %v5100_v26 = vsel %vm7915_vm13, %v8282_v35, %v8281_v18  ;;  %v491_v39 = vadd.f32 %v487_v50, %v454_v42  ;;  %v8286_v42 = vld [vmem:[#allocation59_spill] sm:$0xff] }
 0x1ec   : > { %v5052_v9 = vsel %vm812_vm11, %v8272_v56, %v8271_v2  ;;  %v790_v2 = vadd.f32 %v786_v45, %v753_v48  ;;  %v824_v55 = vmul.f32 %v8283_v8, %v5081_v40  ;;  %v853_v13 = vsel %vm7915_vm13, %v8281_v18, %v8284_v58 }
 0x1ed   : > { %8273 = vst [vmem:[#allocation25_spill] sm:$0xff] %v5052_v9  ;;  %v823_v32 = vmul.f32 %v8283_v8, %v5052_v9  ;;  %v492_v45 = vadd.f32 %v488_v54, %v455_v63  ;;  %v5112_v20 = vadd.f32 %v490_v57, %v457_v0  ;;  %v791_v48 = vadd.f32 %v787_v52, %v754_v51 }
 0x1ee   : > { %v5118_v50 = vsel %vm775_vm12, %v8269_v10, %v8285_v11  ;;  %v524_v9 = vmul.f32 %v8286_v42, %v4835_v1  ;;  %v525_v40 = vmul.f32 %v8286_v42, %v4820_v15  ;;  %v5128_v54 = vsel %vm775_vm12, %v8285_v11, %v8267_v49 }
 0x1ef   : > { %v5054_v44 = vpop.permute.xlu1 %793  ;;  %v5134_v57 = vsel %vm874_vm10, %v4673_v19, %v4721_v59  ;;  %vm924_vm15 = vcmp.lt.s32.totalorder %v4553_v17, 88  ;;  %vm949_vm9 = vcmp.lt.s32.totalorder %v4553_v17, 87  ;;  %v751_v1 = vadd.f32 %v747_v22, %v726_v43 }
 0x1f0   : > { %8274 = vst [vmem:[#allocation23_spill] sm:$0xff] %v5054_v44  ;;  %v752_v15 = vadd.f32 %v748_v30, %v727_v7  ;;  %v5144_v11 = vsel %vm812_vm11, %v8279_v31, %v4610_v6  ;;  %v878_v49 = vsel %vm874_vm10, %v4721_v59, %v4619_v21  ;;  %v5150_v10 = vadd.f32 %v823_v32, %v790_v2  ;;  %v8287_v59 = vld [vmem:[#allocation63_spill] sm:$0xff]  ;;  %v5171_v2 = vpop.permute.xlu0 %945 }
 0x1f1   : > { %v828_v63 = vadd.f32 %v824_v55, %v791_v48  ;;  %v784_v0 = vmul.f32 %v8275_v41, %v5118_v50  ;;  %v5158_v43 = vsel %vm812_vm11, %v4610_v6, %v8272_v56  ;;  %v5162_v22 = vmul.f32 %v8286_v42, %v4794_v46 }
 0x1f2   : > { %v785_v31 = vmul.f32 %v8275_v41, %v5128_v54  ;;  %v861_v7 = vmul.f32 %v8287_v59, %v853_v13  ;;  %v852_v52 = vsel %vm7915_vm13, %v8284_v58, %v4723_v28  ;;  %v528_v30 = vadd.f32 %v524_v9, %v491_v39 }
 0x1f3   : > { %v5090_v44 = vpop.permute.xlu1 %918  ;;  %v529_v18 = vadd.f32 %v525_v40, %v492_v45  ;;  %v821_v6 = vmul.f32 %v8283_v8, %v5144_v11  ;;  %v851_v46 = vsel %vm7915_vm13, %v4723_v28, %v8282_v35  ;;  %v611_v56 = vmul.f32 %v4579_v53, %v4898_v37 }
 0x1f4   : > { %v822_v41 = vmul.f32 %v8283_v8, %v5158_v43  ;;  %v5187_v9 = vsel %vm899_vm14, %v4837_v38, %v4903_v61  ;;  %v877_v40 = vsel %vm874_vm10, %v4619_v21, %v4850_v29  ;;  %v788_v28 = vadd.f32 %v784_v0, %v751_v1 }
 0x1f5   : > { %v858_v35 = vmul.f32 %v8287_v59, %v852_v52  ;;  %v903_v37 = vsel %vm899_vm14, %v4903_v61, %v4784_v27  ;;  %v876_v8 = vsel %vm874_vm10, %v4850_v29, %v4673_v19  ;;  %v789_v32 = vadd.f32 %v785_v31, %v752_v15 }
 0x1f6   : > { %v865_v55 = vadd.f32 %v861_v7, %v828_v63  ;;  %v859_v58 = vmul.f32 %v8287_v59, %v851_v46  ;;  %v902_v21 = vsel %vm899_vm14, %v4784_v27, %v4971_v60  ;;  %vm8090_vm13 = vcmp.lt.s32.totalorder %v4553_v17, 86  ;;  %v967_v63 = vpop.permute.xlu0 %966 }
 0x1f7   : > { %v5137_v51 = vpop.permute.xlu1 %980  ;;  %v612_v13 = vmul.f32 %v4579_v53, %v4892_v23  ;;  %v825_v61 = vadd.f32 %v821_v6, %v788_v28  ;;  %v883_v45 = vmul.f32 %v4649_v25, %v877_v40  ;;  %v901_v19 = vsel %vm899_vm14, %v4971_v60, %v4837_v38 }
 0x1f8   : > { %v615_v29 = vadd.f32 %v611_v56, %v528_v30  ;;  %v826_v48 = vadd.f32 %v822_v41, %v789_v32  ;;  %v884_v1 = vmul.f32 %v4649_v25, %v876_v8  ;;  %v927_v27 = vsel %vm924_vm15, %v4956_v47, %v5090_v44  ;;  %v8288_v41 = vld [vmem:[#allocation71_spill] sm:$0xff]  ;;  %v8289_v32 = vld [vmem:[#allocation22_spill] sm:$0xff] }
 0x1f9   : > { %v886_v23 = vmul.f32 %v4649_v25, %v878_v49  ;;  %v862_v0 = vadd.f32 %v858_v35, %v825_v61  ;;  %v908_v31 = vmul.f32 %v4756_v4, %v902_v21  ;;  %v926_v60 = vsel %vm924_vm15, %v5090_v44, %v5005_v14  ;;  %v8290_v21 = vld [vmem:[#allocation31_spill] sm:$0xff] }
 0x1fa   : > { %v636_v38 = vmul.f32 %v4959_v36, %v4679_v16  ;;  %v863_v7 = vadd.f32 %v859_v58, %v826_v48  ;;  %v909_v52 = vmul.f32 %v4756_v4, %v901_v19  ;;  %v911_v49 = vmul.f32 %v4756_v4, %v903_v37  ;;  %v971_v48 = vpop.permute.xlu0 %970 }
 0x1fb   : > { %v887_v6 = vadd.f32 %v883_v45, %v862_v0  ;;  %v933_v46 = vmul.f32 %v4886_v62, %v927_v27  ;;  %v616_v44 = vadd.f32 %v612_v13, %v529_v18  ;;  %v673_v36 = vmul.f32 %v8288_v41, %v4948_v34  ;;  %v8291_v45 = vld [vmem:[#allocation20_spill] sm:$0xff] }
 0x1fc   : > { %v5193_v39 = vpop.permute.xlu1 %830  ;;  %v888_v40 = vadd.f32 %v884_v1, %v863_v7  ;;  %v934_v28 = vmul.f32 %v4886_v62, %v926_v60  ;;  %v890_v8 = vadd.f32 %v886_v23, %v865_v55  ;;  %v928_v37 = vsel %vm924_vm15, %v8289_v32, %v4956_v47  ;;  %v8292_v1 = vld [vmem:[#allocation16_spill] sm:$0xff]  ;;  %v8293_v23 = vld [vmem:[#allocation27_spill] sm:$0xff] }
 0x1fd   : > { %v912_v58 = vadd.f32 %v908_v31, %v887_v6  ;;  %v635_v18 = vmul.f32 %v8291_v45, %v4679_v16  ;;  %v640_v13 = vadd.f32 %v636_v38, %v616_v44  ;;  %v760_v27 = vmul.f32 %v8292_v1, %v5069_v12 }
 0x1fe   : > { %v913_v19 = vadd.f32 %v909_v52, %v888_v40  ;;  %v672_v0 = vmul.f32 %v8288_v41, %v8293_v23  ;;  %v936_v60 = vmul.f32 %v4886_v62, %v928_v37  ;;  %v8294_v52 = vld [vmem:[#allocation23_spill] sm:$0xff] }
 0x1ff   : > { %v937_v55 = vadd.f32 %v933_v46, %v912_v58  ;;  %v677_v31 = vadd.f32 %v673_v36, %v640_v13  ;;  %v860_v36 = vmul.f32 %v8287_v59, %v5100_v26  ;;  %v639_v40 = vadd.f32 %v635_v18, %v615_v29  ;;  %v8297_v23 = vld [vmem:[#allocation67_spill] sm:$0xff] }
 0x200   : > { %v944_v15 = vpop.permute.xlu1 %943  ;;  %v938_v38 = vadd.f32 %v934_v28, %v913_v19  ;;  %v796_v19 = vmul.f32 %v8294_v52, %v5118_v50  ;;  %v833_v50 = vmul.f32 %v5193_v39, %v5144_v11  ;;  %v531_v11 = vadd.f32 %v5162_v22, %v5112_v20 }
 0x201   : > { %v952_v30 = vsel %vm949_vm9, %v5102_v24, %v944_v15  ;;  %v951_v56 = vsel %vm949_vm9, %v944_v15, %v5171_v2  ;;  %v915_v15 = vadd.f32 %v911_v49, %v890_v8  ;;  %v764_v28 = vadd.f32 %v760_v27, %v677_v31 }
 0x202   : > { %v958_v61 = vmul.f32 %v8290_v21, %v952_v30  ;;  %v959_v34 = vmul.f32 %v8290_v21, %v951_v56  ;;  %v797_v30 = vmul.f32 %v8294_v52, %v5128_v54  ;;  %v759_v54 = vmul.f32 %v8292_v1, %v5075_v33 }
 0x203   : > { %v834_v8 = vmul.f32 %v5193_v39, %v5158_v43  ;;  %v940_v37 = vadd.f32 %v936_v60, %v915_v15  ;;  %v676_v13 = vadd.f32 %v672_v0, %v639_v40  ;;  %v885_v43 = vmul.f32 %v4649_v25, %v5134_v57  ;;  %v8299_v60 = vld [vmem:[#allocation62_spill] sm:$0xff]  ;;  %v8300_v57 = vld [vmem:[#allocation29_spill] sm:$0xff]  ;;  %v8305_v40 = vld [vmem:[#allocation47_spill] sm:$0xff] }
 0x204   : > { %v5242_v35 = vpop.permute.xlu1 %947  ;;  %v962_v6 = vadd.f32 %v958_v61, %v937_v55  ;;  %v963_v46 = vadd.f32 %v959_v34, %v938_v38  ;;  %v801_v34 = vadd.f32 %v797_v30, %v764_v28  ;;  %v925_v27 = vsel %vm924_vm15, %v5005_v14, %v8289_v32 }
 0x205   : > { %v953_v47 = vsel %vm949_vm9, %v5242_v35, %v5102_v24  ;;  %v763_v55 = vadd.f32 %v759_v54, %v676_v13  ;;  %v1014_v38 = vsub.s32 3, %v8299_v60  ;;  %v864_v25 = vadd.f32 %v860_v36, %v5150_v10  ;;  %v8304_v36 = vld [vmem:[#allocation68_spill] sm:$0xff] }
 0x206   : > { %v961_v24 = vmul.f32 %v8290_v21, %v953_v47  ;;  %v838_v15 = vadd.f32 %v834_v8, %v801_v34  ;;  %v8295_v47 = vld [vmem:[#allocation66_spill] sm:$0xff]  ;;  %v910_v14 = vmul.f32 %v4756_v4, %v5187_v9  ;;  %v950_v4 = vsel %vm949_vm9, %v5171_v2, %v5242_v35  ;;  %v8307_v2 = vld [vmem:[#allocation39_spill] sm:$0xff] }
 0x207   : > { %v800_v32 = vadd.f32 %v796_v19, %v763_v55  ;;  %v889_v30 = vadd.f32 %v885_v43, %v864_v25  ;;  %v452_v54 = vmul.f32 %v8305_v40, %v8304_v36  ;;  %v960_v8 = vmul.f32 %v8290_v21, %v950_v4  ;;  %v5325_v35 = vld [vmem:[#allocation7] sm:$0xff]  ;;  %v8321_v40 = vld [vmem:[#allocation25_spill] sm:$0xff] }
 0x208   : > { %v969_v7 = vpop.permute.xlu1 %968  ;;  %v965_v59 = vadd.f32 %v961_v24, %v940_v37  ;;  %v992_v20 = vmax.f32 %v838_v15, 0.0  ;;  %v3900_v55 = vmov 12   ;;  %v1010_v25 = vsub.s32 2, %v8299_v60  ;;  %v8318_v4 = vld [vmem:[#allocation34_spill] sm:$0xff] }
 0x209   : > { %v976_v12 = vsel %vm8090_vm13, %v969_v7, %v971_v48  ;;  %v977_v49 = vsel %vm8090_vm13, %v967_v63, %v969_v7  ;;  %v614_v7 = vmul.f32 %v4579_v53, %v8300_v57  ;;  %v837_v9 = vadd.f32 %v833_v50, %v800_v32  ;;  %v3640_v32 = vld [vmem:[%s4097_s20 + $0x10] sm:$0xff] }
 0x20a   : > { %v983_v56 = vmul.f32 %v5137_v51, %v977_v49  ;;  %v984_v44 = vmul.f32 %v5137_v51, %v976_v12  ;;  %v935_v12 = vmul.f32 %v4886_v62, %v925_v27  ;;  %v8302_v49 = vld [vmem:[#allocation65_spill] sm:$0xff]  ;;  %v456_v21 = vadd.f32 %v452_v54, %v8277_v3 }
 0x20b   : > { %v618_v24 = vadd.f32 %v614_v7, %v531_v11  ;;  %v8306_v62 = vld [vmem:[#allocation33_spill] sm:$0xff]  ;;  %v8314_v3 = vmov 11   ;;  %v8316_v7 = vld [vmem:[#allocation18_spill] sm:$0xff]  ;;  %v835_v54 = vmul.f32 %v5193_v39, %v8321_v40  ;;  %v3909_v40 = vmov 22  }
 0x20c   : > { %v987_v58 = vadd.f32 %v983_v56, %v962_v6  ;;  %v988_v61 = vadd.f32 %v984_v44, %v963_v46  ;;  %v973_v45 = vpop.permute.xlu1 %972  ;;  %v8301_v6 = vld [vmem:[#allocation24_spill] sm:$0xff]  ;;  %v5315_v46 = vrot.slane %v8302_v49, %v1014_v38  ;;  %v914_v56 = vadd.f32 %v910_v14, %v889_v30 }
 0x20d   : > { %v978_v26 = vsel %vm8090_vm13, %v973_v45, %v967_v63  ;;  %v638_v10 = vmul.f32 %v8301_v6, %v4679_v16  ;;  %v975_v44 = vsel %vm8090_vm13, %v971_v48, %v973_v45  ;;  %v675_v28 = vmul.f32 %v8288_v41, %v8306_v62 }
 0x20e   : > { %v995_v29 = vmax.f32 %v987_v58, 0.0  ;;  %v996_v18 = vmax.f32 %v988_v61, 0.0  ;;  %v986_v33 = vmul.f32 %v5137_v51, %v978_v26  ;;  %8303 = vst [vmem:[#allocation38_spill] sm:$0xff] %v5315_v46  ;;  %v8308_v58 = vld [vmem:[#allocation15_spill] sm:$0xff]  ;;  %v939_v13 = vadd.f32 %v935_v12, %v914_v56 }
 0x20f   : > { %v642_v37 = vadd.f32 %v638_v10, %v618_v24  ;;  %v762_v61 = vmul.f32 %v8292_v1, %v8308_v58  ;;  %v991_v48 = vmax.f32 %v837_v9, 0.0  ;;  %v5331_v45 = vmul.f32 %v8297_v23, %v992_v20  ;;  %v8319_v20 = vld [vmem:[#allocation17_spill] sm:$0xff] }
 0x210   : > { %v5290_v63 = vmul.f32 %v8295_v47, %v995_v29  ;;  %v5293_v0 = vmul.f32 %v8297_v23, %v996_v18  ;;  %v990_v31 = vadd.f32 %v986_v33, %v965_v59  ;;  %v985_v19 = vmul.f32 %v5137_v51, %v975_v44  ;;  %v8311_v18 = vld [vmem:[#allocation69_spill] sm:$0xff]  ;;  %v8313_v51 = vld [vmem:[#allocation70_spill] sm:$0xff] }
 0x211   : > { %8309 = vst [vmem:[#allocation42_spill] sm:$0xff] %v5331_v45  ;;  %v679_v26 = vadd.f32 %v675_v28, %v642_v37  ;;  %v799_v59 = vmul.f32 %v8294_v52, %v5040_v5  ;;  %v964_v29 = vadd.f32 %v960_v8, %v939_v13  ;;  %v8312_v33 = vld [vmem:[#allocation37_spill] sm:$0xff]  ;;  %v526_v27 = vmul.f32 %v8286_v42, %v8313_v51 }
 0x212   : > { %8296 = vst [vmem:[#allocation44_spill] sm:$0xff] %v5290_v63  ;;  %8298 = vst [vmem:[#allocation21_spill] sm:$0xff] %v5293_v0  ;;  %1054 = vrot.lane.b32.xlu0 %v5293_v0, %s3838_s21  ;;  %1050 = vrot.lane.b32.xlu1 %v5290_v63, %s3838_s21  ;;  %v998_v22 = vmax.f32 %v990_v31, 0.0  ;;  %v489_v43 = vmul.f32 %v8312_v33, %v8311_v18  ;;  %v8315_v5 = vld [vmem:[#allocation45_spill] sm:$0xff]  ;;  %v5352_v31 = vmul.f32 %v8295_v47, %v991_v48  ;;  %v3903_v37 = vmov 15   ;;  %v5472_v48 = vpop.permute.xlu0 %1077 }
 0x213   : > { %v766_v50 = vadd.f32 %v762_v61, %v679_v26  ;;  %v836_v15 = vmul.f32 %v5193_v39, %v8315_v5  ;;  %v989_v38 = vadd.f32 %v985_v19, %v964_v29  ;;  %v613_v14 = vmul.f32 %v4579_v53, %v8316_v7  ;;  %v5394_v39 = vld [vmem:[#allocation7 + $0x8] sm:$0xff]  ;;  %v5466_v61 = vpop.permute.xlu1 %1045  ;;  %8323 = vst [vmem:[#allocation32_spill] sm:$0xff] %v5472_v48 }
 0x214   : > { %v5335_v34 = vmul.f32 %v5315_v46, %v998_v22  ;;  %v493_v57 = vadd.f32 %v489_v43, %v456_v21  ;;  %v637_v30 = vmul.f32 %v3640_v32, %v4679_v16  ;;  %v5364_v12 = vrot.slane %v8302_v49, %v1010_v25  ;;  %v8320_v49 = vld [vmem:[#allocation19_spill] sm:$0xff]  ;;  %8322 = vst [vmem:[#allocation35_spill] sm:$0xff] %v5466_v61 }
 0x215   : > { %v803_v11 = vadd.f32 %v799_v59, %v766_v50  ;;  %v997_v10 = vmax.f32 %v989_v38, 0.0  ;;  %v674_v53 = vmul.f32 %v8288_v41, %v8318_v4  ;;  %v761_v22 = vmul.f32 %v8292_v1, %v8319_v20 }
 0x216   : > { %1173 = vperm.xlu0 %3568, %v8307_v2   ;;  %1121 = vperm.xlu1 %3567, %v5325_v35   ;;  %8310 = vst [vmem:[#allocation36_spill] sm:$0xff] %v5335_v34  ;;  %v530_v42 = vadd.f32 %v526_v27, %v493_v57  ;;  %8317 = vst [vmem:[#allocation26_spill] sm:$0xff] %v5364_v12  ;;  %v798_v44 = vmul.f32 %v8294_v52, %v8320_v49  ;;  %v3901_v41 = vmov 13   ;;  %v3904_v58 = vmov 16   ;;  %v5484_v21 = vpop.permute.xlu0 %1125 }
 0x217   : > { %v840_v6 = vadd.f32 %v836_v15, %v803_v11  ;;  %v5374_v16 = vmul.f32 %v5364_v12, %v997_v10  ;;  %v3905_v13 = vmov 17   ;;  %v5474_v19 = vpop.permute.xlu1 %1073  ;;  %8324 = vst [vmem:[#allocation30_spill] sm:$0xff] %v5484_v21  ;;  %v3906_v43 = vmov 19  }
 0x218   : > { %v617_v60 = vadd.f32 %v613_v14, %v530_v42  ;;  %v3908_v4 = vmov 20  }
 0x219   : > { %v994_v24 = vmax.f32 %v840_v6, 0.0 }
 0x21a   : > { %1052 = vrot.lane.b32.xlu0 %v5331_v45, %s3838_s21  ;;  %1062 = vrot.lane.b32.xlu1 %v5335_v34, %s3838_s21  ;;  %v641_v9 = vadd.f32 %v637_v30, %v617_v60 }
 0x21b   : > { %3570 = vset.pattern.permute.xlu0 %v3900_v55  ;;  %3569 = vset.pattern.permute.xlu1 %v8314_v3  ;;  %v5384_v1 = vmul.f32 %v5315_v46, %v994_v24  ;;  %v5486_v26 = vpop.permute.xlu1 %1041 }
 0x21c   : > { %v678_v56 = vadd.f32 %v674_v53, %v641_v9 }
 0x21e   : > { %1102 = vrot.lane.b32.xlu0 %v5293_v0, %s3842_s23  ;;  %1048 = vrot.lane.b32.xlu1 %v5352_v31, %s3838_s21  ;;  %v765_v36 = vadd.f32 %v761_v22, %v678_v56 }
 0x220   : > { %v802_v62 = vadd.f32 %v798_v44, %v765_v36 }
 0x222   : > { %1221 = vperm.xlu0 %3570, %v8307_v2   ;;  %1098 = vrot.lane.b32.xlu1 %v5290_v63, %s3842_s23  ;;  %v839_v52 = vadd.f32 %v835_v54, %v802_v62  ;;  %v3902_v2 = vmov 14  }
 0x224   : > { %v993_v28 = vmax.f32 %v839_v52, 0.0 }
 0x226   : > { %1058 = vrot.lane.b32.xlu0 %v5374_v16, %s3838_s21  ;;  %1169 = vperm.xlu1 %3569, %v5325_v35   ;;  %v5400_v8 = vmul.f32 %v5364_v12, %v993_v28 }
 0x227   : > { %3572 = vset.pattern.permute.xlu0 %v3901_v41 }
 0x22a   : > { %1100 = vrot.lane.b32.xlu0 %v5331_v45, %s3842_s23  ;;  %1060 = vrot.lane.b32.xlu1 %v5384_v1, %s3838_s21 }
 0x22b   : > { %3571 = vset.pattern.permute.xlu1 %v3900_v55  ;;  %v3907_v55 = vmov 18  }
 0x22e   : > { %1150 = vrot.lane.b32.xlu0 %v5293_v0, %s3844_s8  ;;  %1110 = vrot.lane.b32.xlu1 %v5335_v34, %s3842_s23 }
 0x232   : > { %1269 = vperm.xlu0 %3572, %v5394_v39   ;;  %1096 = vrot.lane.b32.xlu1 %v5352_v31, %s3842_s23 }
 0x236   : > { %1056 = vrot.lane.b32.xlu0 %v5400_v8, %s3838_s21  ;;  %1146 = vrot.lane.b32.xlu1 %v5290_v63, %s3844_s8  ;;  %s8332_s21 = smov 18  }
 0x23a   : > { %1144 = vrot.lane.b32.xlu0 %v5352_v31, %s3844_s8  ;;  %1217 = vperm.xlu1 %3571, %v5325_v35  }
 0x23e   : > { %1194 = vrot.lane.b32.xlu0 %v5290_v63, %s3846_s10  ;;  %1108 = vrot.lane.b32.xlu1 %v5384_v1, %s3842_s23 }
 0x23f   : > { %3573 = vset.pattern.permute.xlu1 %v3902_v2 }
 0x242   : > { %1265 = vperm.xlu0 %3572, %v5325_v35   ;;  %1158 = vrot.lane.b32.xlu1 %v5335_v34, %s3844_s8 }
 0x246   : > { %1156 = vrot.lane.b32.xlu0 %v5384_v1, %s3844_s8  ;;  %1106 = vrot.lane.b32.xlu1 %v5374_v16, %s3842_s23 }
 0x247   : > { %3574 = vset.pattern.permute.xlu0 %v3902_v2 }
 0x24a   : > { %1104 = vrot.lane.b32.xlu0 %v5400_v8, %s3842_s23  ;;  %1148 = vrot.lane.b32.xlu1 %v5331_v45, %s3844_s8  ;;  %s8337_s23 = smov 2  }
 0x24e   : > { %1192 = vrot.lane.b32.xlu0 %v5352_v31, %s3846_s10  ;;  %1198 = vrot.lane.b32.xlu1 %v5293_v0, %s3846_s10 }
 0x252   : > { %1242 = vrot.lane.b32.xlu0 %v5290_v63, %s3848_s11  ;;  %1317 = vperm.xlu1 %3573, %v5394_v39  }
 0x256   : > { %1313 = vperm.xlu0 %3574, %v5325_v35   ;;  %1206 = vrot.lane.b32.xlu1 %v5335_v34, %s3846_s10 }
 0x257   : > { %3575 = vset.pattern.permute.xlu1 %v3903_v37 }
 0x25a   : > { %1254 = vrot.lane.b32.xlu0 %v5335_v34, %s3848_s11  ;;  %1154 = vrot.lane.b32.xlu1 %v5374_v16, %s3844_s8 }
 0x25b   : > { %3576 = vset.pattern.permute.xlu0 %v3904_v58  ;;  %v3910_v58 = vmov 21  }
 0x25e   : > { %1202 = vrot.lane.b32.xlu0 %v5374_v16, %s3846_s10  ;;  %1196 = vrot.lane.b32.xlu1 %v5331_v45, %s3846_s10 }
 0x262   : > { %1244 = vrot.lane.b32.xlu0 %v5331_v45, %s3848_s11  ;;  %1246 = vrot.lane.b32.xlu1 %v5293_v0, %s3848_s11 }
 0x266   : > { %1294 = vrot.lane.b32.xlu0 %v5293_v0, %s3850_s12  ;;  %1365 = vperm.xlu1 %3575, %v5394_v39  }
 0x26a   : > { %1437 = vperm.xlu0 %3576, %v5394_v39   ;;  %1204 = vrot.lane.b32.xlu1 %v5384_v1, %s3846_s10 }
 0x26e   : > { %1200 = vrot.lane.b32.xlu0 %v5400_v8, %s3846_s10  ;;  %1152 = vrot.lane.b32.xlu1 %v5400_v8, %s3844_s8  ;;  %s8343_s8 = smov 1   ;;  %s8352_s10 = smov 127  }
 0x272   : > { %1288 = vrot.lane.b32.xlu0 %v5352_v31, %s3850_s12  ;;  %1240 = vrot.lane.b32.xlu1 %v5352_v31, %s3848_s11 }
 0x276   : > { %1338 = vrot.lane.b32.xlu0 %v5290_v63, %s3852_s25  ;;  %1290 = vrot.lane.b32.xlu1 %v5290_v63, %s3850_s12 }
 0x27a   : > { %1433 = vperm.xlu0 %3576, %v5325_v35   ;;  %1361 = vperm.xlu1 %3575, %v5325_v35  }
 0x27e   : > { %1300 = vrot.lane.b32.xlu0 %v5384_v1, %s3850_s12  ;;  %1252 = vrot.lane.b32.xlu1 %v5384_v1, %s3848_s11 }
 0x27f   : > { %3578 = vset.pattern.permute.xlu0 %v3905_v13  ;;  %3577 = vset.pattern.permute.xlu1 %v3905_v13 }
 0x282   : > { %1248 = vrot.lane.b32.xlu0 %v5400_v8, %s3848_s11  ;;  %1302 = vrot.lane.b32.xlu1 %v5335_v34, %s3850_s12 }
 0x284   : > { %v5492_v59 = vpop.permute.xlu0 %1054  ;;  %v5494_v29 = vpop.permute.xlu1 %1050 }
 0x285   : > { %8325 = vst [vmem:[#allocation43_spill] sm:$0xff] %v5494_v29 }
 0x286   : > { %1336 = vrot.lane.b32.xlu0 %v5352_v31, %s3852_s25  ;;  %1250 = vrot.lane.b32.xlu1 %v5374_v16, %s3848_s11  ;;  %s8359_s11 = smov 126  }
 0x28a   : > { %1410 = vrot.lane.b32.xlu0 %v5290_v63, %s3854_s26  ;;  %1292 = vrot.lane.b32.xlu1 %v5331_v45, %s3850_s12 }
 0x28e   : > { %1505 = vperm.xlu0 %3578, %v5325_v35   ;;  %1342 = vrot.lane.b32.xlu1 %v5293_v0, %s3852_s25 }
 0x291   : > { %v5499_v18 = vpop.permute.xlu0 %1173  ;;  %v5501_v33 = vpop.permute.xlu1 %1121 }
 0x292   : > { %8326 = vst [vmem:[#allocation41_spill] sm:$0xff] %v5499_v18  ;;  %1422 = vrot.lane.b32.xlu0 %v5335_v34, %s3854_s26  ;;  %1509 = vperm.xlu1 %3577, %v5394_v39  }
 0x293   : > { %3580 = vset.pattern.permute.xlu0 %v3906_v43 }
 0x295   : > { %v5506_v51 = vpop.permute.xlu0 %1052  ;;  %v5508_v27 = vpop.permute.xlu1 %1062 }
 0x296   : > { %8327 = vst [vmem:[#allocation40_spill] sm:$0xff] %v5508_v27  ;;  %1346 = vrot.lane.b32.xlu0 %v5374_v16, %s3852_s25  ;;  %1350 = vrot.lane.b32.xlu1 %v5335_v34, %s3852_s25 }
 0x297   : > { %3579 = vset.pattern.permute.xlu1 %v3907_v55 }
 0x299   : > { %v5514_v3 = vpop.permute.xlu0 %1102  ;;  %v5516_v50 = vpop.permute.xlu1 %1048 }
 0x29a   : > { %1412 = vrot.lane.b32.xlu0 %v5331_v45, %s3854_s26  ;;  %1298 = vrot.lane.b32.xlu1 %v5374_v16, %s3850_s12 }
 0x29d   : > { %v5522_v5 = vpop.permute.xlu0 %1221  ;;  %v5524_v15 = vpop.permute.xlu1 %1098 }
 0x29e   : > { %8328 = vst [vmem:[#allocation49_spill] sm:$0xff] %v5522_v5  ;;  %8329 = vst [vmem:[#allocation28_spill] sm:$0xff] %v5524_v15  ;;  %1486 = vrot.lane.b32.xlu0 %v5293_v0, %s3856_s5  ;;  %1340 = vrot.lane.b32.xlu1 %v5331_v45, %s3852_s25 }
 0x2a1   : > { %v5530_v38 = vpop.permute.xlu0 %1058  ;;  %v5532_v25 = vpop.permute.xlu1 %1169 }
 0x2a2   : > { %1629 = vperm.xlu0 %3580, %v5394_v39   ;;  %1414 = vrot.lane.b32.xlu1 %v5293_v0, %s3854_s26 }
 0x2a5   : > { %v5537_v57 = vpop.permute.xlu0 %1100  ;;  %v5539_v7 = vpop.permute.xlu1 %1060 }
 0x2a6   : > { %1344 = vrot.lane.b32.xlu0 %v5400_v8, %s3852_s25  ;;  %1581 = vperm.xlu1 %3579, %v5394_v39  }
 0x2a9   : > { %v5544_v14 = vpop.permute.xlu0 %1150  ;;  %v5546_v11 = vpop.permute.xlu1 %1110 }
 0x2aa   : > { %8330 = vst [vmem:[#allocation50_spill] sm:$0xff] %v5546_v11  ;;  %1480 = vrot.lane.b32.xlu0 %v5352_v31, %s3856_s5  ;;  %1348 = vrot.lane.b32.xlu1 %v5384_v1, %s3852_s25  ;;  %s8377_s25 = smov 109  }
 0x2ad   : > { %v5552_v42 = vpop.permute.xlu0 %1269  ;;  %v5554_v32 = vpop.permute.xlu1 %1096 }
 0x2ae   : > { %8331 = vst [vmem:[#allocation48_spill] sm:$0xff] %v5552_v42  ;;  %1554 = vrot.lane.b32.xlu0 %v5290_v63, %s8332_s21  ;;  %1296 = vrot.lane.b32.xlu1 %v5400_v8, %s3850_s12  ;;  %s8370_s12 = smov 110  }
 0x2b1   : > { %v5560_v30 = vpop.permute.xlu0 %1056  ;;  %v5562_v6 = vpop.permute.xlu1 %1146 }
 0x2b2   : > { %8333 = vst [vmem:[#allocation46_spill] sm:$0xff] %v5562_v6  ;;  %1625 = vperm.xlu0 %3580, %v5325_v35   ;;  %1408 = vrot.lane.b32.xlu1 %v5352_v31, %s3854_s26 }
 0x2b5   : > { %v5567_v10 = vpop.permute.xlu0 %1144  ;;  %v5569_v60 = vpop.permute.xlu1 %1217 }
 0x2b6   : > { %1492 = vrot.lane.b32.xlu0 %v5384_v1, %s3856_s5  ;;  %1482 = vrot.lane.b32.xlu1 %v5290_v63, %s3856_s5 }
 0x2b7   : > { %3582 = vset.pattern.permute.xlu0 %v3908_v4 }
 0x2b9   : > { %v5575_v53 = vpop.permute.xlu0 %1194  ;;  %v5577_v9 = vpop.permute.xlu1 %1108 }
 0x2ba   : > { %8334 = vst [vmem:[#allocation56_spill] sm:$0xff] %v5575_v53  ;;  %1416 = vrot.lane.b32.xlu0 %v5400_v8, %s3854_s26  ;;  %1577 = vperm.xlu1 %3579, %v5325_v35  }
 0x2bd   : > { %v5582_v20 = vpop.permute.xlu0 %1265  ;;  %v5584_v22 = vpop.permute.xlu1 %1158 }
 0x2be   : > { %8335 = vst [vmem:[#allocation54_spill] sm:$0xff] %v5582_v20  ;;  %8336 = vst [vmem:[#allocation51_spill] sm:$0xff] %v5584_v22  ;;  %1552 = vrot.lane.b32.xlu0 %v5352_v31, %s8332_s21  ;;  %1420 = vrot.lane.b32.xlu1 %v5384_v1, %s3854_s26 }
 0x2bf   : > { %3581 = vset.pattern.permute.xlu1 %v3908_v4 }
 0x2c1   : > { %v5590_v24 = vpop.permute.xlu0 %1156  ;;  %v5592_v56 = vpop.permute.xlu1 %1106 }
 0x2c2   : > { %1602 = vrot.lane.b32.xlu0 %v5290_v63, %s8337_s23  ;;  %1494 = vrot.lane.b32.xlu1 %v5335_v34, %s3856_s5 }
 0x2c5   : > { %v5598_v49 = vpop.permute.xlu0 %1104  ;;  %v5600_v44 = vpop.permute.xlu1 %1148 }
 0x2c6   : > { %1673 = vperm.xlu0 %3582, %v5325_v35   ;;  %1418 = vrot.lane.b32.xlu1 %v5374_v16, %s3854_s26  ;;  %s8392_s26 = smov 108  }
 0x2c9   : > { %v5605_v41 = vpop.permute.xlu0 %1192  ;;  %v5607_v36 = vpop.permute.xlu1 %1198 }
 0x2ca   : > { %1614 = vrot.lane.b32.xlu0 %v5335_v34, %s8337_s23  ;;  %1484 = vrot.lane.b32.xlu1 %v5331_v45, %s3856_s5 }
 0x2cb   : > { %3584 = vset.pattern.permute.xlu0 %v3909_v40 }
 0x2cd   : > { %v5613_v54 = vpop.permute.xlu0 %1242  ;;  %v5615_v62 = vpop.permute.xlu1 %1317 }
 0x2ce   : > { %8338 = vst [vmem:[#allocation53_spill] sm:$0xff] %v5613_v54  ;;  %8339 = vst [vmem:[#allocation55_spill] sm:$0xff] %v5615_v62  ;;  %1562 = vrot.lane.b32.xlu0 %v5374_v16, %s8332_s21  ;;  %1558 = vrot.lane.b32.xlu1 %v5293_v0, %s8332_s21 }
 0x2d1   : > { %v5621_v52 = vpop.permute.xlu0 %1313  ;;  %v5623_v28 = vpop.permute.xlu1 %1206 }
 0x2d2   : > { %8340 = vst [vmem:[#allocation52_spill] sm:$0xff] %v5621_v52  ;;  %8341 = vst [vmem:[#allocation64_spill] sm:$0xff] %v5623_v28  ;;  %1604 = vrot.lane.b32.xlu0 %v5331_v45, %s8337_s23  ;;  %1677 = vperm.xlu1 %3581, %v5394_v39  }
 0x2d5   : > { %v5628_v2 = vpop.permute.xlu0 %1254  ;;  %v5630_v37 = vpop.permute.xlu1 %1154 }
 0x2d6   : > { %8342 = vst [vmem:[#allocation61_spill] sm:$0xff] %v5628_v2  ;;  %1654 = vrot.lane.b32.xlu0 %v5293_v0, %s8343_s8  ;;  %1566 = vrot.lane.b32.xlu1 %v5335_v34, %s8332_s21 }
 0x2d7   : > { %3583 = vset.pattern.permute.xlu1 %v3910_v58 }
 0x2d9   : > { %v5636_v13 = vpop.permute.xlu0 %1202  ;;  %v5638_v43 = vpop.permute.xlu1 %1196 }
 0x2da   : > { %1797 = vperm.xlu0 %3584, %v5394_v39   ;;  %1490 = vrot.lane.b32.xlu1 %v5374_v16, %s3856_s5 }
 0x2dd   : > { %v5643_v55 = vpop.permute.xlu0 %1244  ;;  %v5645_v4 = vpop.permute.xlu1 %1246 }
 0x2de   : > { %8344 = vst [vmem:[#allocation57_spill] sm:$0xff] %v5643_v55  ;;  %1560 = vrot.lane.b32.xlu0 %v5400_v8, %s8332_s21  ;;  %1556 = vrot.lane.b32.xlu1 %v5331_v45, %s8332_s21 }
 0x2e1   : > { %v5651_v40 = vpop.permute.xlu0 %1294  ;;  %v5653_v58 = vpop.permute.xlu1 %1365 }
 0x2e2   : > { %8345 = vst [vmem:[#allocation58_spill] sm:$0xff] %v5651_v40  ;;  %8346 = vst [vmem:[#allocation60_spill] sm:$0xff] %v5653_v58  ;;  %1648 = vrot.lane.b32.xlu0 %v5352_v31, %s8343_s8  ;;  %1606 = vrot.lane.b32.xlu1 %v5293_v0, %s8337_s23  ;;  %v3911_v58 = vmov 24  }
 0x2e5   : > { %v5659_v46 = vpop.permute.xlu0 %1437  ;;  %v5661_v12 = vpop.permute.xlu1 %1204 }
 0x2e6   : > { %8347 = vst [vmem:[#allocation59_spill] sm:$0xff] %v5659_v46  ;;  %1793 = vperm.xlu0 %3584, %v5325_v35   ;;  %1725 = vperm.xlu1 %3583, %v5394_v39  }
 0x2e9   : > { %v5665_v47 = vpop.permute.xlu0 %1200  ;;  %v5667_v23 = vpop.permute.xlu1 %1152 }
 0x2ea   : > { %1660 = vrot.lane.b32.xlu0 %v5384_v1, %s8343_s8  ;;  %1564 = vrot.lane.b32.xlu1 %v5384_v1, %s8332_s21  ;;  %s3931_s21 = smov 112  }
 0x2eb   : > { %3586 = vset.pattern.permute.xlu0 %v3911_v58 }
 0x2ed   : > { %v5673_v52 = vpop.permute.xlu0 %1288  ;;  %v5675_v46 = vpop.permute.xlu1 %1240 }
 0x2ee   : > { %8348 = vst [vmem:[#allocation63_spill] sm:$0xff] %v5673_v52  ;;  %8349 = vst [vmem:[#allocation71_spill] sm:$0xff] %v5675_v46  ;;  %1658 = vrot.lane.b32.xlu0 %v5374_v16, %s8343_s8  ;;  %1488 = vrot.lane.b32.xlu1 %v5400_v8, %s3856_s5  ;;  %s8403_s5 = smov 107   ;;  %v3921_v46 = vmov 1  }
 0x2f1   : > { %v5681_v62 = vpop.permute.xlu0 %1338  ;;  %v5683_v2 = vpop.permute.xlu1 %1290 }
 0x2f2   : > { %8350 = vst [vmem:[#allocation22_spill] sm:$0xff] %v5681_v62  ;;  %8351 = vst [vmem:[#allocation31_spill] sm:$0xff] %v5683_v2  ;;  %1778 = vrot.lane.b32.xlu0 %v5374_v16, %s8352_s10  ;;  %1600 = vrot.lane.b32.xlu1 %v5352_v31, %s8337_s23 }
 0x2f5   : > { %v5689_v58 = vpop.permute.xlu0 %1433  ;;  %v5691_v52 = vpop.permute.xlu1 %1361 }
 0x2f6   : > { %8353 = vst [vmem:[#allocation20_spill] sm:$0xff] %v5689_v58  ;;  %8354 = vst [vmem:[#allocation16_spill] sm:$0xff] %v5691_v52  ;;  %1917 = vperm.xlu0 %3586, %v5394_v39   ;;  %1650 = vrot.lane.b32.xlu1 %v5290_v63, %s8343_s8  ;;  %v3912_v58 = vmov 23  }
 0x2f9   : > { %v5696_v20 = vpop.permute.xlu0 %1300  ;;  %v5698_v62 = vpop.permute.xlu1 %1252 }
 0x2fa   : > { %8355 = vst [vmem:[#allocation27_spill] sm:$0xff] %v5696_v20  ;;  %8356 = vst [vmem:[#allocation23_spill] sm:$0xff] %v5698_v62  ;;  %1772 = vrot.lane.b32.xlu0 %v5331_v45, %s8352_s10  ;;  %1721 = vperm.xlu1 %3583, %v5325_v35  }
 0x2fd   : > { %v5703_v2 = vpop.permute.xlu0 %1248  ;;  %v5705_v40 = vpop.permute.xlu1 %1302 }
 0x2fe   : > { %8357 = vst [vmem:[#allocation62_spill] sm:$0xff] %v5703_v2  ;;  %8358 = vst [vmem:[#allocation29_spill] sm:$0xff] %v5705_v40  ;;  %1846 = vrot.lane.b32.xlu0 %v5293_v0, %s8359_s11  ;;  %1612 = vrot.lane.b32.xlu1 %v5384_v1, %s8337_s23 }
 0x2ff   : > { %3585 = vset.pattern.permute.xlu1 %v3912_v58  ;;  %v3913_v58 = vmov 26  }
 0x301   : > { %v5711_v52 = vpop.permute.xlu0 %1336  ;;  %v5713_v20 = vpop.permute.xlu1 %1250 }
 0x302   : > { %8360 = vst [vmem:[#allocation24_spill] sm:$0xff] %v5711_v52  ;;  %8361 = vst [vmem:[#allocation65_spill] sm:$0xff] %v5713_v20  ;;  %1913 = vperm.xlu0 %3586, %v5325_v35   ;;  %1662 = vrot.lane.b32.xlu1 %v5335_v34, %s8343_s8 }
 0x305   : > { %v5718_v2 = vpop.permute.xlu0 %1410  ;;  %v5720_v40 = vpop.permute.xlu1 %1292 }
 0x306   : > { %8362 = vst [vmem:[#allocation68_spill] sm:$0xff] %v5718_v2  ;;  %8363 = vst [vmem:[#allocation47_spill] sm:$0xff] %v5720_v40  ;;  %1768 = vrot.lane.b32.xlu0 %v5352_v31, %s8352_s10  ;;  %1610 = vrot.lane.b32.xlu1 %v5374_v16, %s8337_s23 }
 0x307   : > { %3588 = vset.pattern.permute.xlu0 %v3913_v58 }
 0x309   : > { %v5726_v52 = vpop.permute.xlu0 %1505  ;;  %v5728_v20 = vpop.permute.xlu1 %1342 }
 0x30a   : > { %8364 = vst [vmem:[#allocation33_spill] sm:$0xff] %v5726_v52  ;;  %8365 = vst [vmem:[#allocation39_spill] sm:$0xff] %v5728_v20  ;;  %1782 = vrot.lane.b32.xlu0 %v5335_v34, %s8352_s10  ;;  %1652 = vrot.lane.b32.xlu1 %v5331_v45, %s8343_s8 }
 0x30d   : > { %v5734_v2 = vpop.permute.xlu0 %1422  ;;  %v5736_v40 = vpop.permute.xlu1 %1509 }
 0x30e   : > { %8366 = vst [vmem:[#allocation15_spill] sm:$0xff] %v5734_v2  ;;  %8367 = vst [vmem:[#allocation69_spill] sm:$0xff] %v5736_v40  ;;  %1848 = vrot.lane.b32.xlu0 %v5400_v8, %s8359_s11  ;;  %1869 = vperm.xlu1 %3585, %v5394_v39  }
 0x311   : > { %v5741_v58 = vpop.permute.xlu0 %1346  ;;  %v5743_v52 = vpop.permute.xlu1 %1350 }
 0x312   : > { %8368 = vst [vmem:[#allocation37_spill] sm:$0xff] %v5741_v58  ;;  %8369 = vst [vmem:[#allocation70_spill] sm:$0xff] %v5743_v52  ;;  %1898 = vrot.lane.b32.xlu0 %v5374_v16, %s8370_s12  ;;  %1608 = vrot.lane.b32.xlu1 %v5400_v8, %s8337_s23 }
 0x315   : > { %v5749_v20 = vpop.permute.xlu0 %1412  ;;  %v5751_v2 = vpop.permute.xlu1 %1298 }
 0x316   : > { %8371 = vst [vmem:[#allocation45_spill] sm:$0xff] %v5749_v20  ;;  %8372 = vst [vmem:[#allocation18_spill] sm:$0xff] %v5751_v2  ;;  %2037 = vperm.xlu0 %3588, %v5394_v39   ;;  %1774 = vrot.lane.b32.xlu1 %v5293_v0, %s8352_s10  ;;  %v3914_v20 = vmov 25   ;;  %v3915_v2 = vmov 0  }
 0x319   : > { %v5756_v40 = vpop.permute.xlu0 %1486  ;;  %v5758_v58 = vpop.permute.xlu1 %1340 }
 0x31a   : > { %8373 = vst [vmem:[#allocation34_spill] sm:$0xff] %v5756_v40  ;;  %8374 = vst [vmem:[#allocation17_spill] sm:$0xff] %v5758_v58  ;;  %1892 = vrot.lane.b32.xlu0 %v5331_v45, %s8370_s12  ;;  %1865 = vperm.xlu1 %3585, %v5325_v35  }
 0x31d   : > { %v5763_v52 = vpop.permute.xlu0 %1629  ;;  %v5765_v55 = vpop.permute.xlu1 %1414 }
 0x31e   : > { %8375 = vst [vmem:[#allocation19_spill] sm:$0xff] %v5763_v52  ;;  %8376 = vst [vmem:[#allocation25_spill] sm:$0xff] %v5765_v55  ;;  %1942 = vrot.lane.b32.xlu0 %v5293_v0, %s8377_s25  ;;  %1770 = vrot.lane.b32.xlu1 %v5290_v63, %s8352_s10 }
 0x31f   : > { %3587 = vset.pattern.permute.xlu1 %v3914_v20 }
 0x321   : > { %v5771_v40 = vpop.permute.xlu0 %1344  ;;  %v5773_v58 = vpop.permute.xlu1 %1581 }
 0x322   : > { %8378 = vst [vmem:[#allocation72_spill] sm:$0xff] %v5771_v40  ;;  %8379 = vst [vmem:[#allocation73_spill] sm:$0xff] %v5773_v58  ;;  %2033 = vperm.xlu0 %3588, %v5325_v35   ;;  %1656 = vrot.lane.b32.xlu1 %v5400_v8, %s8343_s8 }
 0x325   : > { %v5778_v52 = vpop.permute.xlu0 %1480  ;;  %v5780_v55 = vpop.permute.xlu1 %1348 }
 0x326   : > { %8380 = vst [vmem:[#allocation74_spill] sm:$0xff] %v5778_v52  ;;  %8381 = vst [vmem:[#allocation75_spill] sm:$0xff] %v5780_v55  ;;  %3589 = vset.pattern.permute.xlu0 %v3915_v2  ;;  %1776 = vrot.lane.b32.xlu1 %v5400_v8, %s8352_s10 }
 0x327   : > { %1389 = vperm.xlu0 %3589, %v5394_v39  }
 0x329   : > { %v5785_v20 = vpop.permute.xlu0 %1554  ;;  %v5787_v40 = vpop.permute.xlu1 %1296 }
 0x32a   : > { %8382 = vst [vmem:[#allocation76_spill] sm:$0xff] %v5785_v20  ;;  %8383 = vst [vmem:[#allocation77_spill] sm:$0xff] %v5787_v40  ;;  %1850 = vrot.lane.b32.xlu1 %v5374_v16, %s8359_s11  ;;  %v3916_v20 = vmov 34  }
 0x32b   : > { %1938 = vrot.lane.b32.xlu0 %v5290_v63, %s8377_s25 }
 0x32d   : > { %v5793_v58 = vpop.permute.xlu0 %1625  ;;  %v5795_v52 = vpop.permute.xlu1 %1408 }
 0x32e   : > { %8384 = vst [vmem:[#allocation78_spill] sm:$0xff] %v5793_v58  ;;  %8385 = vst [vmem:[#allocation79_spill] sm:$0xff] %v5795_v52  ;;  %1965 = vperm.xlu1 %3587, %v5394_v39  }
 0x32f   : > { %1385 = vperm.xlu0 %3589, %v5325_v35  }
 0x331   : > { %v5799_v2 = vpop.permute.xlu0 %1492  ;;  %v5801_v55 = vpop.permute.xlu1 %1482 }
 0x332   : > { %8386 = vst [vmem:[#allocation80_spill] sm:$0xff] %v5799_v2  ;;  %8387 = vst [vmem:[#allocation81_spill] sm:$0xff] %v5801_v55  ;;  %1842 = vrot.lane.b32.xlu1 %v5290_v63, %s8359_s11 }
 0x333   : > { %1902 = vrot.lane.b32.xlu0 %v5335_v34, %s8370_s12 }
 0x334   : > { %3594 = vset.pattern.permute.xlu0 %v3916_v20 }
 0x335   : > { %v5807_v40 = vpop.permute.xlu0 %1416  ;;  %v5809_v58 = vpop.permute.xlu1 %1577 }
 0x336   : > { %8388 = vst [vmem:[#allocation82_spill] sm:$0xff] %v5807_v40  ;;  %8389 = vst [vmem:[#allocation83_spill] sm:$0xff] %v5809_v58  ;;  %1844 = vrot.lane.b32.xlu1 %v5331_v45, %s8359_s11 }
 0x337   : > { %1944 = vrot.lane.b32.xlu0 %v5400_v8, %s8377_s25 }
 0x339   : > { %v5815_v2 = vpop.permute.xlu0 %1552  ;;  %v5817_v55 = vpop.permute.xlu1 %1420 }
 0x33a   : > { %8390 = vst [vmem:[#allocation84_spill] sm:$0xff] %v5815_v2  ;;  %8391 = vst [vmem:[#allocation85_spill] sm:$0xff] %v5817_v55  ;;  %1894 = vrot.lane.b32.xlu1 %v5293_v0, %s8370_s12  ;;  %v3917_v2 = vmov 28   ;;  %v3918_v55 = vmov 27  }
 0x33b   : > { %2018 = vrot.lane.b32.xlu0 %v5374_v16, %s8392_s26 }
 0x33d   : > { %v5823_v52 = vpop.permute.xlu0 %1602  ;;  %v5825_v40 = vpop.permute.xlu1 %1494 }
 0x33e   : > { %8393 = vst [vmem:[#allocation86_spill] sm:$0xff] %v5823_v52  ;;  %8394 = vst [vmem:[#allocation87_spill] sm:$0xff] %v5825_v40  ;;  %1961 = vperm.xlu1 %3587, %v5325_v35  }
 0x33f   : > { %1032 = vperm.xlu0 %3594, %v5325_v35  }
 0x341   : > { %v5829_v58 = vpop.permute.xlu0 %1673  ;;  %v5831_v62 = vpop.permute.xlu1 %1418 }
 0x342   : > { %8395 = vst [vmem:[#allocation88_spill] sm:$0xff] %v5829_v58  ;;  %8396 = vst [vmem:[#allocation89_spill] sm:$0xff] %v5831_v62  ;;  %1840 = vrot.lane.b32.xlu1 %v5352_v31, %s8359_s11 }
 0x343   : > { %3595 = vset.pattern.permute.xlu0 %v3917_v2  ;;  %3590 = vset.pattern.permute.xlu1 %v3918_v55 }
 0x344   : > { %2181 = vperm.xlu0 %3595, %v5394_v39  }
 0x345   : > { %v5836_v52 = vpop.permute.xlu0 %1614  ;;  %v5838_v40 = vpop.permute.xlu1 %1484 }
 0x346   : > { %8397 = vst [vmem:[#allocation90_spill] sm:$0xff] %v5836_v52  ;;  %8398 = vst [vmem:[#allocation91_spill] sm:$0xff] %v5838_v40  ;;  %1890 = vrot.lane.b32.xlu1 %v5290_v63, %s8370_s12 }
 0x348   : > { %1900 = vrot.lane.b32.xlu0 %v5384_v1, %s8370_s12 }
 0x349   : > { %v5844_v58 = vpop.permute.xlu0 %1562  ;;  %v5846_v62 = vpop.permute.xlu1 %1558 }
 0x34a   : > { %8399 = vst [vmem:[#allocation92_spill] sm:$0xff] %v5844_v58  ;;  %8400 = vst [vmem:[#allocation93_spill] sm:$0xff] %v5846_v62  ;;  %1780 = vrot.lane.b32.xlu1 %v5384_v1, %s8352_s10 }
 0x34c   : > { %2012 = vrot.lane.b32.xlu0 %v5331_v45, %s8392_s26 }
 0x34d   : > { %v5852_v2 = vpop.permute.xlu0 %1604  ;;  %v5854_v52 = vpop.permute.xlu1 %1677 }
 0x34e   : > { %8401 = vst [vmem:[#allocation94_spill] sm:$0xff] %v5852_v2  ;;  %8402 = vst [vmem:[#allocation95_spill] sm:$0xff] %v5854_v52  ;;  %1854 = vrot.lane.b32.xlu1 %v5335_v34, %s8359_s11 }
 0x350   : > { %2086 = vrot.lane.b32.xlu0 %v5293_v0, %s8403_s5 }
 0x351   : > { %v5860_v40 = vpop.permute.xlu0 %1654  ;;  %v5862_v58 = vpop.permute.xlu1 %1566 }
 0x352   : > { %8404 = vst [vmem:[#allocation96_spill] sm:$0xff] %v5860_v40  ;;  %8405 = vst [vmem:[#allocation97_spill] sm:$0xff] %v5862_v58  ;;  %1896 = vrot.lane.b32.xlu1 %v5400_v8, %s8370_s12  ;;  %v7983_v58 = vmov 3  }
 0x354   : > { %2177 = vperm.xlu0 %3595, %v5325_v35  }
 0x355   : > { %v5867_v62 = vpop.permute.xlu0 %1797  ;;  %v5869_v2 = vpop.permute.xlu1 %1490 }
 0x356   : > { %8406 = vst [vmem:[#allocation98_spill] sm:$0xff] %v5867_v62  ;;  %8407 = vst [vmem:[#allocation99_spill] sm:$0xff] %v5869_v2  ;;  %1946 = vrot.lane.b32.xlu1 %v5374_v16, %s8377_s25 }
 0x358   : > { %2082 = vrot.lane.b32.xlu0 %v5290_v63, %s8403_s5 }
 0x359   : > { %v5875_v52 = vpop.permute.xlu0 %1560  ;;  %v5877_v40 = vpop.permute.xlu1 %1556  ;;  %3600 = vset.pattern.permute.xlu0 %v7983_v58  ;;  %v3920_v58 = vmov 29  }
 0x35a   : > { %8408 = vst [vmem:[#allocation100_spill] sm:$0xff] %v5875_v52  ;;  %8409 = vst [vmem:[#allocation101_spill] sm:$0xff] %v5877_v40  ;;  %2109 = vperm.xlu1 %3590, %v5394_v39  }
 0x35c   : > { %1701 = vperm.xlu0 %3600, %v5394_v39  }
 0x35d   : > { %v5882_v62 = vpop.permute.xlu0 %1648  ;;  %v5884_v2 = vpop.permute.xlu1 %1606 }
 0x35e   : > { %8410 = vst [vmem:[#allocation102_spill] sm:$0xff] %v5882_v62  ;;  %8411 = vst [vmem:[#allocation103_spill] sm:$0xff] %v5884_v2  ;;  %1888 = vrot.lane.b32.xlu1 %v5352_v31, %s8370_s12 }
 0x35f   : > { %3591 = vset.pattern.permute.xlu1 %v3916_v20 }
 0x360   : > { %2084 = vrot.lane.b32.xlu0 %v5331_v45, %s8403_s5 }
 0x361   : > { %v5890_v52 = vpop.permute.xlu0 %1793  ;;  %v5892_v40 = vpop.permute.xlu1 %1725  ;;  %3601 = vset.pattern.permute.xlu0 %v3920_v58 }
 0x362   : > { %8412 = vst [vmem:[#allocation104_spill] sm:$0xff] %v5890_v52  ;;  %8413 = vst [vmem:[#allocation105_spill] sm:$0xff] %v5892_v40  ;;  %1037 = vperm.xlu1 %3591, %v5394_v39  }
 0x364   : > { %2158 = vrot.lane.b32.xlu0 %v5293_v0, %s3874_s6 }
 0x365   : > { %v5897_v62 = vpop.permute.xlu0 %1660  ;;  %v5899_v2 = vpop.permute.xlu1 %1564 }
 0x366   : > { %8414 = vst [vmem:[#allocation106_spill] sm:$0xff] %v5897_v62  ;;  %8415 = vst [vmem:[#allocation107_spill] sm:$0xff] %v5899_v2  ;;  %3592 = vset.pattern.permute.xlu1 %v3921_v46  ;;  %v7995_v2 = vmov 4  }
 0x367   : > { %1461 = vperm.xlu1 %3592, %v5394_v39  }
 0x368   : > { %2225 = vperm.xlu0 %3601, %v5325_v35  }
 0x369   : > { %v5903_v20 = vpop.permute.xlu0 %1658  ;;  %v5905_v52 = vpop.permute.xlu1 %1488 }
 0x36a   : > { %8416 = vst [vmem:[#allocation108_spill] sm:$0xff] %v5903_v20  ;;  %8417 = vst [vmem:[#allocation109_spill] sm:$0xff] %v5905_v52 }
 0x36b   : > { %1852 = vrot.lane.b32.xlu1 %v5384_v1, %s8359_s11  ;;  %s3193_s11 = scalar_lea.sflag [#allocation4], %s4093_s9 }
 0x36c   : > { %2154 = vrot.lane.b32.xlu0 %v5290_v63, %s3874_s6  ;;  %3593 = vset.pattern.permute.xlu1 %v3918_v55 }
 0x36d   : > { %v5911_v40 = vpop.permute.xlu0 %1778  ;;  %v5913_v62 = vpop.permute.xlu1 %1600  ;;  %3604 = vset.pattern.permute.xlu0 %v7995_v2 }
 0x36e   : > { %8418 = vst [vmem:[#allocation110_spill] sm:$0xff] %v5911_v40  ;;  %8419 = vst [vmem:[#allocation111_spill] sm:$0xff] %v5913_v62  ;;  %v7998_v62 = vmov 30  }
 0x36f   : > { %1940 = vrot.lane.b32.xlu1 %v5331_v45, %s8377_s25 }
 0x370   : > { %1749 = vperm.xlu0 %3604, %v5394_v39  }
 0x371   : > { %v5919_v20 = vpop.permute.xlu0 %1917  ;;  %v5921_v52 = vpop.permute.xlu1 %1650 }
 0x372   : > { %8420 = vst [vmem:[#allocation112_spill] sm:$0xff] %v5919_v20  ;;  %8421 = vst [vmem:[#allocation113_spill] sm:$0xff] %v5921_v52 }
 0x373   : > { %2014 = vrot.lane.b32.xlu1 %v5293_v0, %s8392_s26 }
 0x374   : > { %2156 = vrot.lane.b32.xlu0 %v5331_v45, %s3874_s6 }
 0x375   : > { %v5927_v40 = vpop.permute.xlu0 %1772  ;;  %3605 = vset.pattern.permute.xlu0 %v7998_v62  ;;  %v5930_v55 = vpop.permute.xlu1 %1721 }
 0x376   : > { %8422 = vst [vmem:[#allocation114_spill] sm:$0xff] %v5927_v40  ;;  %8423 = vst [vmem:[#allocation115_spill] sm:$0xff] %v5930_v55 }
 0x377   : > { %2105 = vperm.xlu1 %3593, %v5325_v35  }
 0x378   : > { %2206 = vrot.lane.b32.xlu0 %v5293_v0, %s3877_s14 }
 0x379   : > { %v5935_v2 = vpop.permute.xlu0 %1846  ;;  %v5937_v20 = vpop.permute.xlu1 %1612 }
 0x37a   : > { %8424 = vst [vmem:[#allocation116_spill] sm:$0xff] %v5935_v2  ;;  %8425 = vst [vmem:[#allocation117_spill] sm:$0xff] %v5937_v20  ;;  %v8005_v2 = vmov 5   ;;  %v3925_v20 = vmov 2  }
 0x37b   : > { %1936 = vrot.lane.b32.xlu1 %v5352_v31, %s8377_s25 }
 0x37c   : > { %2273 = vperm.xlu0 %3605, %v5325_v35   ;;  %3596 = vset.pattern.permute.xlu1 %v3921_v46 }
 0x37d   : > { %v5942_v40 = vpop.permute.xlu0 %1913  ;;  %v5944_v62 = vpop.permute.xlu1 %1662 }
 0x37e   : > { %8426 = vst [vmem:[#allocation118_spill] sm:$0xff] %v5942_v40  ;;  %8427 = vst [vmem:[#allocation119_spill] sm:$0xff] %v5944_v62 }
 0x37f   : > { %2010 = vrot.lane.b32.xlu1 %v5290_v63, %s8392_s26 }
 0x380   : > { %2202 = vrot.lane.b32.xlu0 %v5290_v63, %s3877_s14 }
 0x381   : > { %v5950_v55 = vpop.permute.xlu0 %1768  ;;  %3608 = vset.pattern.permute.xlu0 %v8005_v2  ;;  %v5953_v52 = vpop.permute.xlu1 %1610  ;;  %v8010_v2 = vmov 31  }
 0x382   : > { %8428 = vst [vmem:[#allocation120_spill] sm:$0xff] %v5950_v55 }
 0x383   : > { %1457 = vperm.xlu1 %3596, %v5325_v35  }
 0x384   : > { %1821 = vperm.xlu0 %3608, %v5394_v39  }
 0x385   : > { %v5957_v46 = vpop.permute.xlu0 %1782  ;;  %v5959_v40 = vpop.permute.xlu1 %1652 }
 0x386   : > { %8429 = vst [vmem:[#allocation121_spill] sm:$0xff] %v5957_v46  ;;  %8430 = vst [vmem:[#allocation122_spill] sm:$0xff] %v5959_v40 }
 0x387   : > { %3597 = vset.pattern.permute.xlu1 %v3925_v20 }
 0x388   : > { %2204 = vrot.lane.b32.xlu0 %v5331_v45, %s3877_s14  ;;  %1533 = vperm.xlu1 %3597, %v5394_v39  }
 0x389   : > { %v5964_v55 = vpop.permute.xlu0 %1848  ;;  %3609 = vset.pattern.permute.xlu0 %v8010_v2  ;;  %v5967_v62 = vpop.permute.xlu1 %1869 }
 0x38a   : > { %8431 = vst [vmem:[#allocation123_spill] sm:$0xff] %v5964_v55  ;;  %8432 = vst [vmem:[#allocation124_spill] sm:$0xff] %v5967_v62 }
 0x38c   : > { %2254 = vrot.lane.b32.xlu0 %v5293_v0, %s3879_s13  ;;  %1950 = vrot.lane.b32.xlu1 %v5335_v34, %s8377_s25 }
 0x38d   : > { %v5973_v46 = vpop.permute.xlu0 %1898  ;;  %v5975_v40 = vpop.permute.xlu1 %1608  ;;  %3598 = vset.pattern.permute.xlu1 %v3920_v58 }
 0x38e   : > { %8433 = vst [vmem:[#allocation125_spill] sm:$0xff] %v5973_v46  ;;  %8434 = vst [vmem:[#allocation126_spill] sm:$0xff] %v5975_v40  ;;  %v8017_v46 = vmov 6   ;;  %v8021_v40 = vmov 32  }
 0x390   : > { %2321 = vperm.xlu0 %3609, %v5325_v35   ;;  %2016 = vrot.lane.b32.xlu1 %v5400_v8, %s8392_s26 }
 0x391   : > { %v5980_v55 = vpop.permute.xlu0 %2037  ;;  %v5982_v2 = vpop.permute.xlu1 %1774 }
 0x392   : > { %8435 = vst [vmem:[#allocation127_spill] sm:$0xff] %v5980_v55  ;;  %8436 = vst [vmem:[#allocation128_spill] sm:$0xff] %v5982_v2 }
 0x394   : > { %2250 = vrot.lane.b32.xlu0 %v5290_v63, %s3879_s13  ;;  %2090 = vrot.lane.b32.xlu1 %v5374_v16, %s8403_s5 }
 0x395   : > { %v5988_v62 = vpop.permute.xlu0 %1892  ;;  %3612 = vset.pattern.permute.xlu0 %v8017_v46  ;;  %v5991_v58 = vpop.permute.xlu1 %1865 }
 0x396   : > { %8437 = vst [vmem:[#allocation129_spill] sm:$0xff] %v5988_v62  ;;  %8438 = vst [vmem:[#allocation130_spill] sm:$0xff] %v5991_v58 }
 0x398   : > { %1989 = vperm.xlu0 %3612, %v5394_v39   ;;  %2229 = vperm.xlu1 %3598, %v5394_v39  }
 0x399   : > { %v5995_v55 = vpop.permute.xlu0 %1942  ;;  %v5997_v2 = vpop.permute.xlu1 %1770 }
 0x39a   : > { %8439 = vst [vmem:[#allocation131_spill] sm:$0xff] %v5995_v55  ;;  %8440 = vst [vmem:[#allocation132_spill] sm:$0xff] %v5997_v2  ;;  %v8447_v2 = vmov 30  }
 0x39c   : > { %2252 = vrot.lane.b32.xlu0 %v5331_v45, %s3879_s13  ;;  %2008 = vrot.lane.b32.xlu1 %v5352_v31, %s8392_s26 }
 0x39d   : > { %v6003_v62 = vpop.permute.xlu0 %2033  ;;  %3613 = vset.pattern.permute.xlu0 %v8021_v40  ;;  %v6006_v46 = vpop.permute.xlu1 %1656  ;;  %3599 = vset.pattern.permute.xlu1 %v3925_v20  ;;  %v8026_v20 = vmov 33  }
 0x39e   : > { %8441 = vst [vmem:[#allocation133_spill] sm:$0xff] %v6003_v62  ;;  %8442 = vst [vmem:[#allocation134_spill] sm:$0xff] %v6006_v46 }
 0x3a0   : > { %2302 = vrot.lane.b32.xlu0 %v5293_v0, %s3882_s29  ;;  %1529 = vperm.xlu1 %3599, %v5325_v35  }
 0x3a1   : > { %v6011_v58 = vpop.permute.xlu1 %1776 }
 0x3a2   : > { %8443 = vst [vmem:[#allocation135_spill] sm:$0xff] %v6011_v58  ;;  %v6013_v55 = vpop.permute.xlu0 %1389 }
 0x3a3   : > { %8444 = vst [vmem:[#allocation136_spill] sm:$0xff] %v6013_v55 }
 0x3a4   : > { %2369 = vperm.xlu0 %3613, %v5325_v35   ;;  %1948 = vrot.lane.b32.xlu1 %v5384_v1, %s8377_s25 }
 0x3a5   : > { %v6018_v62 = vpop.permute.xlu1 %1850  ;;  %3602 = vset.pattern.permute.xlu1 %v8447_v2 }
 0x3a6   : > { %8445 = vst [vmem:[#allocation137_spill] sm:$0xff] %v6018_v62  ;;  %v6020_v40 = vpop.permute.xlu0 %1938 }
 0x3a7   : > { %8446 = vst [vmem:[#allocation138_spill] sm:$0xff] %v6020_v40 }
 0x3a8   : > { %2298 = vrot.lane.b32.xlu0 %v5290_v63, %s3882_s29  ;;  %2022 = vrot.lane.b32.xlu1 %v5335_v34, %s8392_s26 }
 0x3a9   : > { %3616 = vset.pattern.permute.xlu0 %v8026_v20  ;;  %v6028_v58 = vpop.permute.xlu1 %1965 }
 0x3aa   : > { %8448 = vst [vmem:[#allocation139_spill] sm:$0xff] %v6028_v58  ;;  %v6030_v55 = vpop.permute.xlu0 %1385 }
 0x3ab   : > { %8449 = vst [vmem:[#allocation140_spill] sm:$0xff] %v6030_v55 }
 0x3ac   : > { %2300 = vrot.lane.b32.xlu0 %v5331_v45, %s3882_s29  ;;  %2088 = vrot.lane.b32.xlu1 %v5400_v8, %s8403_s5 }
 0x3ad   : > { %v6036_v2 = vpop.permute.xlu1 %1842 }
 0x3ae   : > { %8450 = vst [vmem:[#allocation141_spill] sm:$0xff] %v6036_v2  ;;  %v6038_v62 = vpop.permute.xlu0 %1902  ;;  %v3930_v2 = vmov 7  }
 0x3af   : > { %8451 = vst [vmem:[#allocation142_spill] sm:$0xff] %v6038_v62 }
 0x3b0   : > { %2350 = vrot.lane.b32.xlu0 %v5293_v0, %s3885_s30  ;;  %2162 = vrot.lane.b32.xlu1 %v5374_v16, %s3874_s6 }
 0x3b1   : > { %v6044_v20 = vpop.permute.xlu1 %1844 }
 0x3b2   : > { %8452 = vst [vmem:[#allocation143_spill] sm:$0xff] %v6044_v20  ;;  %v6046_v58 = vpop.permute.xlu0 %1944 }
 0x3b3   : > { %8453 = vst [vmem:[#allocation144_spill] sm:$0xff] %v6046_v58  ;;  %v8458_v58 = vmov 3  }
 0x3b4   : > { %2417 = vperm.xlu0 %3616, %v5325_v35   ;;  %2277 = vperm.xlu1 %3602, %v5394_v39  }
 0x3b5   : > { %v6050_v55 = vpop.permute.xlu1 %1894 }
 0x3b6   : > { %8454 = vst [vmem:[#allocation145_spill] sm:$0xff] %v6050_v55  ;;  %v6052_v40 = vpop.permute.xlu0 %2018 }
 0x3b7   : > { %8455 = vst [vmem:[#allocation146_spill] sm:$0xff] %v6052_v40 }
 0x3b8   : > { %3617 = vset.pattern.permute.xlu0 %v3930_v2  ;;  %2080 = vrot.lane.b32.xlu1 %v5352_v31, %s8403_s5 }
 0x3b9   : > { %2061 = vperm.xlu0 %3617, %v5394_v39   ;;  %v6057_v62 = vpop.permute.xlu1 %1961  ;;  %3603 = vset.pattern.permute.xlu1 %v8458_v58  ;;  %v1069_v58 = vsel %vm279_vm0, %v5494_v29, %v5492_v59 }
 0x3ba   : > { %8456 = vst [vmem:[#allocation147_spill] sm:$0xff] %v6057_v62  ;;  %v6059_v20 = vpop.permute.xlu0 %1032  ;;  %v8462_v62 = vmov 31   ;;  %v1085_v29 = vmul.f32 %v5472_v48, %v1069_v58 }
 0x3bb   : > { %8457 = vst [vmem:[#allocation148_spill] sm:$0xff] %v6059_v20  ;;  %v1117_v20 = vsel %vm304_vm1, %v5524_v15, %v5514_v3 }
 0x3bc   : > { %1697 = vperm.xlu1 %3603, %v5325_v35   ;;  %v1133_v0 = vmul.f32 %v5484_v21, %v1117_v20  ;;  %v1165_v20 = vsel %vm329_vm2, %v5562_v6, %v5544_v14 }
 0x3bd   : > { %2057 = vperm.xlu0 %3617, %v5325_v35   ;;  %v6064_v55 = vpop.permute.xlu1 %1840  ;;  %v1181_v46 = vmul.f32 %v5499_v18, %v1165_v20  ;;  %v1114_v20 = vsel %vm304_vm1, %v5537_v57, %v5598_v49 }
 0x3be   : > { %8459 = vst [vmem:[#allocation149_spill] sm:$0xff] %v6064_v55  ;;  %v1116_v55 = vsel %vm304_vm1, %v5554_v32, %v5537_v57  ;;  %v1163_v57 = vsel %vm329_vm2, %v5544_v14, %v5630_v37  ;;  %v1130_v14 = vmul.f32 %v5501_v33, %v1114_v20  ;;  %v8472_v20 = vmov 4  }
 0x3bf   : > { %v6066_v40 = vpop.permute.xlu0 %2181 }
 0x3c0   : > { %8460 = vst [vmem:[#allocation150_spill] sm:$0xff] %v6066_v40  ;;  %2020 = vrot.lane.b32.xlu1 %v5384_v1, %s8392_s26  ;;  %v1068_v40 = vsel %vm279_vm0, %v5516_v50, %v5506_v51 }
 0x3c1   : > { %2310 = vrot.lane.b32.xlu0 %v5335_v34, %s3882_s29  ;;  %v6072_v2 = vpop.permute.xlu1 %1890  ;;  %3606 = vset.pattern.permute.xlu1 %v8462_v62  ;;  %v1067_v62 = vsel %vm279_vm0, %v5492_v59, %v5530_v38  ;;  %v1081_v15 = vmul.f32 %v5474_v19, %v1068_v40  ;;  %v1065_v59 = vsel %vm279_vm0, %v5530_v38, %v5508_v27 }
 0x3c2   : > { %8461 = vst [vmem:[#allocation151_spill] sm:$0xff] %v6072_v2  ;;  %v1066_v40 = vsel %vm279_vm0, %v5506_v51, %v5560_v30  ;;  %v1118_v38 = vsel %vm304_vm1, %v5577_v9, %v5554_v32  ;;  %v1093_v51 = vadd.f32 %v1085_v29, %v5466_v61  ;;  %v1087_v32 = vmul.f32 %v5472_v48, %v1065_v59 }
 0x3c3   : > { %v6079_v35 = vpop.permute.xlu0 %1900  ;;  %v1128_v6 = vmul.f32 %v5501_v33, %v1118_v38  ;;  %v1115_v29 = vsel %vm304_vm1, %v5514_v3, %v5592_v56 }
 0x3c4   : > { %8463 = vst [vmem:[#allocation152_spill] sm:$0xff] %v6079_v35  ;;  %2094 = vrot.lane.b32.xlu1 %v5335_v34, %s8403_s5  ;;  %v1070_v35 = vsel %vm279_vm0, %v5539_v7, %v5516_v50  ;;  %v1086_v50 = vmul.f32 %v5472_v48, %v1067_v62  ;;  %v1082_v62 = vmul.f32 %v5474_v19, %v1066_v40 }
 0x3c5   : > { %2352 = vrot.lane.b32.xlu0 %v5400_v8, %s3885_s30  ;;  %v6102_v2 = vpop.permute.xlu1 %1780  ;;  %v1080_v27 = vmul.f32 %v5474_v19, %v1070_v35  ;;  %v1129_v35 = vmul.f32 %v5501_v33, %v1116_v55  ;;  %v1089_v55 = vadd.f32 %v1081_v15, %v5486_v26  ;;  %v1141_v59 = vadd.f32 %v1133_v0, %v1093_v51 }
 0x3c6   : > { %8464 = vst [vmem:[#allocation153_spill] sm:$0xff] %v6102_v2  ;;  %v1095_v3 = vadd.f32 %v1087_v32, %v5466_v61  ;;  %v1113_v0 = vsel %vm304_vm1, %v5592_v56, %v5546_v11  ;;  %v1164_v51 = vsel %vm329_vm2, %v5567_v10, %v5600_v44 }
 0x3c7   : > { %v6113_v58 = vpop.permute.xlu0 %2012  ;;  %v1088_v40 = vadd.f32 %v1080_v27, %v5486_v26  ;;  %v1137_v15 = vadd.f32 %v1129_v35, %v1089_v55  ;;  %v1090_v27 = vadd.f32 %v1082_v62, %v5486_v26  ;;  %v1189_v35 = vadd.f32 %v1181_v46, %v1141_v59 }
 0x3c8   : > { %8465 = vst [vmem:[#allocation154_spill] sm:$0xff] %v6113_v58  ;;  %v1064_v58 = vsel %vm279_vm0, %v5560_v30, %v5539_v7  ;;  %2160 = vrot.lane.b32.xlu1 %v5400_v8, %s3874_s6  ;;  %v1166_v7 = vsel %vm329_vm2, %v5590_v24, %v5567_v10  ;;  %v1135_v62 = vmul.f32 %v5484_v21, %v1113_v0 }
 0x3c9   : > { %2402 = vrot.lane.b32.xlu0 %v5374_v16, %s3887_s7  ;;  %v6145_v30 = vpop.permute.xlu1 %1854  ;;  %v1083_v48 = vmul.f32 %v5474_v19, %v1064_v58  ;;  %v1176_v38 = vmul.f32 %v5532_v25, %v1166_v7  ;;  %v1134_v19 = vmul.f32 %v5484_v21, %v1115_v29  ;;  %v1161_v10 = vsel %vm329_vm2, %v5630_v37, %v5584_v22  ;;  %v8516_v21 = vld [vmem:[#allocation79_spill] sm:$0xff]  ;;  %v8517_v22 = vld [vmem:[#allocation85_spill] sm:$0xff] }
 0x3ca   : > { %8466 = vst [vmem:[#allocation155_spill] sm:$0xff] %v6145_v30  ;;  %v1094_v30 = vadd.f32 %v1086_v50, %v5466_v61  ;;  %v1136_v50 = vadd.f32 %v1128_v6, %v1088_v40  ;;  %v1213_v6 = vsel %vm354_vm3, %v5575_v53, %v5607_v36  ;;  %v1177_v46 = vmul.f32 %v5532_v25, %v1164_v51 }
 0x3cb   : > { %v6153_v2 = vpop.permute.xlu0 %2086  ;;  %v1091_v56 = vadd.f32 %v1083_v48, %v5486_v26  ;;  %v1112_v26 = vsel %vm304_vm1, %v5598_v49, %v5577_v9  ;;  %v1229_v55 = vmul.f32 %v5522_v5, %v1213_v6  ;;  %v1182_v37 = vmul.f32 %v5499_v18, %v1163_v57 }
 0x3cc   : > { %8467 = vst [vmem:[#allocation156_spill] sm:$0xff] %v6153_v2  ;;  %2210 = vrot.lane.b32.xlu1 %v5374_v16, %s3877_s14  ;;  %v1184_v7 = vadd.f32 %v1176_v38, %v1136_v50  ;;  %v1142_v48 = vadd.f32 %v1134_v19, %v1094_v30  ;;  %v1162_v9 = vsel %vm329_vm2, %v5600_v44, %v5667_v23 }
 0x3cd   : > { %2394 = vrot.lane.b32.xlu0 %v5290_v63, %s3887_s7  ;;  %v6171_v58 = vpop.permute.xlu1 %1896  ;;  %v1183_v30 = vmul.f32 %v5499_v18, %v1161_v10  ;;  %v1209_v59 = vsel %vm354_vm3, %v5636_v13, %v5623_v28  ;;  %v1212_v40 = vsel %vm354_vm3, %v5605_v41, %v5638_v43  ;;  %v1143_v44 = vadd.f32 %v1135_v62, %v1095_v3  ;;  %v8498_v28 = vld [vmem:[#allocation60_spill] sm:$0xff] }
 0x3ce   : > { %8468 = vst [vmem:[#allocation157_spill] sm:$0xff] %v6171_v58  ;;  %v1131_v38 = vmul.f32 %v5501_v33, %v1112_v26  ;;  %v1214_v0 = vsel %vm354_vm3, %v5661_v12, %v5605_v41  ;;  %v1160_v3 = vsel %vm329_vm2, %v5667_v23, %v5590_v24  ;;  %v1178_v33 = vmul.f32 %v5532_v25, %v1162_v9  ;;  %v6267_v9 = vld [vmem:[#allocation7] sm:$0xff] }
 0x3cf   : > { %v6182_v32 = vpop.permute.xlu0 %2177  ;;  %v1185_v41 = vadd.f32 %v1177_v46, %v1137_v15  ;;  %v1231_v51 = vmul.f32 %v5522_v5, %v1209_v59  ;;  %v1225_v6 = vmul.f32 %v5569_v60, %v1212_v40  ;;  %v1237_v62 = vadd.f32 %v1229_v55, %v1189_v35  ;;  %v8474_v46 = vld [vmem:[#allocation23_spill] sm:$0xff]  ;;  %v8477_v40 = vld [vmem:[#allocation57_spill] sm:$0xff] }
 0x3d0   : > { %8469 = vst [vmem:[#allocation158_spill] sm:$0xff] %v6182_v32  ;;  %2325 = vperm.xlu1 %3606, %v5394_v39   ;;  %v1211_v39 = vsel %vm354_vm3, %v5607_v36, %v5636_v13  ;;  %v1261_v36 = vsel %vm379_vm4, %v5613_v54, %v5645_v4  ;;  %v1138_v13 = vadd.f32 %v1130_v14, %v1090_v27  ;;  %v8473_v14 = vld [vmem:[#allocation71_spill] sm:$0xff]  ;;  %v8531_v32 = vld [vmem:[#allocation80_spill] sm:$0xff] }
 0x3d1   : > { %2308 = vrot.lane.b32.xlu0 %v5384_v1, %s3882_s29  ;;  %v6207_v29 = vpop.permute.xlu1 %1946  ;;  %v1230_v19 = vmul.f32 %v5522_v5, %v1211_v39  ;;  %v1277_v27 = vmul.f32 %v5552_v42, %v1261_v36  ;;  %v1190_v10 = vadd.f32 %v1182_v37, %v1142_v48  ;;  %v1191_v26 = vadd.f32 %v1183_v30, %v1143_v44  ;;  %v8495_v5 = vld [vmem:[#allocation22_spill] sm:$0xff] }
 0x3d2   : > { %v1224_v23 = vmul.f32 %v5569_v60, %v1214_v0  ;;  %v1210_v24 = vsel %vm354_vm3, %v5638_v43, %v5665_v47  ;;  %v1179_v15 = vmul.f32 %v5532_v25, %v1160_v3  ;;  %v1262_v39 = vsel %vm379_vm4, %v8474_v46, %v8473_v14  ;;  %8475 = vst [vmem:[#allocation71_spill] sm:$0xff] %v6267_v9  ;;  %v8479_v0 = vld [vmem:[#allocation58_spill] sm:$0xff] }
 0x3d3   : > { %v6219_v49 = vpop.permute.xlu0 %2082  ;;  %v1139_v35 = vadd.f32 %v1131_v38, %v1091_v56  ;;  %v1238_v48 = vadd.f32 %v1230_v19, %v1190_v10  ;;  %v1208_v43 = vsel %vm354_vm3, %v5665_v47, %v5661_v12  ;;  %v1186_v25 = vadd.f32 %v1178_v33, %v1138_v13  ;;  %v8480_v19 = vld [vmem:[#allocation31_spill] sm:$0xff]  ;;  %v8481_v12 = vld [vmem:[#allocation54_spill] sm:$0xff] }
 0x3d4   : > { %8470 = vst [vmem:[#allocation159_spill] sm:$0xff] %v6219_v49  ;;  %2152 = vrot.lane.b32.xlu1 %v5352_v31, %s3874_s6  ;;  %v1239_v37 = vadd.f32 %v1231_v51, %v1191_v26  ;;  %v1233_v30 = vadd.f32 %v1225_v6, %v1185_v41  ;;  %v1285_v59 = vadd.f32 %v1277_v27, %v1237_v62  ;;  %v8483_v6 = vld [vmem:[#allocation62_spill] sm:$0xff]  ;;  %v8484_v27 = vld [vmem:[#allocation61_spill] sm:$0xff]  ;;  %v8485_v10 = vmov 32   ;;  %v6311_v26 = vld [vmem:[#allocation8] sm:$0xff] }
 0x3d5   : > { %2396 = vrot.lane.b32.xlu0 %v5331_v45, %s3887_s7  ;;  %v6249_v50 = vpop.permute.xlu1 %2109  ;;  %3607 = vset.pattern.permute.xlu1 %v8472_v20  ;;  %v1260_v36 = vsel %vm379_vm4, %v8473_v14, %v8477_v40  ;;  %v1232_v56 = vadd.f32 %v1224_v23, %v1184_v7  ;;  %v1226_v38 = vmul.f32 %v5569_v60, %v1210_v24  ;;  %v8482_v20 = vld [vmem:[#allocation65_spill] sm:$0xff]  ;;  %v8487_v23 = vld [vmem:[#allocation55_spill] sm:$0xff] }
 0x3d6   : > { %8471 = vst [vmem:[#allocation160_spill] sm:$0xff] %v6249_v50  ;;  %v1309_v47 = vsel %vm404_vm5, %v8480_v19, %v8479_v0  ;;  %v1272_v13 = vmul.f32 %v8481_v12, %v1262_v39  ;;  %v1227_v3 = vmul.f32 %v5569_v60, %v1208_v43  ;;  %v1187_v33 = vadd.f32 %v1179_v15, %v1139_v35  ;;  %v8488_v15 = vld [vmem:[#allocation63_spill] sm:$0xff]  ;;  %v8490_v43 = vld [vmem:[#allocation18_spill] sm:$0xff] }
 0x3d7   : > { %v6255_v57 = vpop.permute.xlu0 %1701  ;;  %v1259_v41 = vsel %vm379_vm4, %v5645_v4, %v8482_v20  ;;  %v1273_v7 = vmul.f32 %v8481_v12, %v1260_v36  ;;  %v1234_v51 = vadd.f32 %v1226_v38, %v1186_v25  ;;  %v1258_v60 = vsel %vm379_vm4, %v8477_v40, %v8483_v6  ;;  %8486 = vst [vmem:[#allocation58_spill] sm:$0xff] %v6311_v26  ;;  %v8489_v14 = vld [vmem:[#allocation27_spill] sm:$0xff] }
 0x3d8   : > { %1745 = vperm.xlu1 %3607, %v6267_v9   ;;  %v1257_v62 = vsel %vm379_vm4, %v8482_v20, %v8484_v27  ;;  %v1325_v24 = vmul.f32 %v8487_v23, %v1309_v47  ;;  %v1310_v39 = vsel %vm404_vm5, %v8489_v14, %v8488_v15  ;;  %v1256_v35 = vsel %vm379_vm4, %v8483_v6, %v8474_v46  ;;  %v8492_v47 = vld [vmem:[#allocation47_spill] sm:$0xff] }
 0x3d9   : > { %2392 = vrot.lane.b32.xlu0 %v5352_v31, %s3887_s7  ;;  %v6276_v55 = vpop.permute.xlu1 %1888  ;;  %v1307_v25 = vsel %vm404_vm5, %v8479_v0, %v8490_v43  ;;  %v1280_v36 = vadd.f32 %v1272_v13, %v1232_v56  ;;  %v1278_v38 = vmul.f32 %v5552_v42, %v1259_v41  ;;  %v1308_v20 = vsel %vm404_vm5, %v8488_v15, %v8492_v47  ;;  %v8494_v0 = vld [vmem:[#allocation39_spill] sm:$0xff]  ;;  %v8496_v13 = vld [vmem:[#allocation52_spill] sm:$0xff] }
 0x3da   : > { %8476 = vst [vmem:[#allocation23_spill] sm:$0xff] %v6276_v55  ;;  %v1274_v6 = vmul.f32 %v8481_v12, %v1258_v60  ;;  %v1279_v19 = vmul.f32 %v5552_v42, %v1257_v62  ;;  %v6343_v56 = vsel %vm429_vm6, %v8495_v5, %v8494_v0  ;;  %v1320_v41 = vmul.f32 %v8496_v13, %v1310_v39  ;;  %v8499_v39 = vld [vmem:[#allocation17_spill] sm:$0xff] }
 0x3db   : > { %v6282_v44 = vpop.permute.xlu0 %2084  ;;  %v1235_v15 = vadd.f32 %v1227_v3, %v1187_v33  ;;  %v1326_v60 = vmul.f32 %v8487_v23, %v1307_v25  ;;  %v1281_v62 = vadd.f32 %v1273_v7, %v1233_v30  ;;  %v1333_v42 = vadd.f32 %v1325_v24, %v1285_v59  ;;  %v8500_v3 = vld [vmem:[#allocation24_spill] sm:$0xff]  ;;  %v8501_v7 = vld [vmem:[#allocation37_spill] sm:$0xff] }
 0x3dc   : > { %8478 = vst [vmem:[#allocation57_spill] sm:$0xff] %v6282_v44  ;;  %2092 = vrot.lane.b32.xlu1 %v5384_v1, %s8403_s5  ;;  %v1286_v61 = vadd.f32 %v1278_v38, %v1238_v48  ;;  %v1373_v53 = vmul.f32 %v8498_v28, %v6343_v56  ;;  %v1328_v30 = vadd.f32 %v1320_v41, %v1280_v36  ;;  %v8503_v38 = vld [vmem:[#allocation70_spill] sm:$0xff]  ;;  %v8505_v36 = vld [vmem:[#allocation68_spill] sm:$0xff] }
 0x3dd   : > { %2406 = vrot.lane.b32.xlu0 %v5335_v34, %s3887_s7  ;;  %v6308_v4 = vpop.permute.xlu1 %1037  ;;  %3610 = vset.pattern.permute.xlu1 %v8485_v10  ;;  %v8493_v10 = vld [vmem:[#allocation29_spill] sm:$0xff]  ;;  %v1282_v59 = vadd.f32 %v1274_v6, %v1234_v51  ;;  %v1287_v33 = vadd.f32 %v1279_v19, %v1239_v37  ;;  %v6369_v24 = vsel %vm429_vm6, %v8494_v0, %v8501_v7 }
 0x3de   : > { %v1305_v46 = vsel %vm404_vm5, %v8490_v43, %v8493_v10  ;;  %v1275_v43 = vmul.f32 %v8481_v12, %v1256_v35  ;;  %v1321_v10 = vmul.f32 %v8496_v13, %v1308_v20  ;;  %v6363_v12 = vsel %vm429_vm6, %v8500_v3, %v8499_v39  ;;  %v8502_v35 = vld [vmem:[#allocation77_spill] sm:$0xff] }
 0x3df   : > { %v6326_v40 = vpop.permute.xlu0 %2158  ;;  %v1327_v27 = vmul.f32 %v8487_v23, %v1305_v46  ;;  %v1306_v48 = vsel %vm404_vm5, %v8492_v47, %v8502_v35  ;;  %v6381_v37 = vsel %vm429_vm6, %v8501_v7, %v8503_v38  ;;  %v1334_v19 = vadd.f32 %v1326_v60, %v1286_v61  ;;  %v8504_v51 = vld [vmem:[#allocation25_spill] sm:$0xff]  ;;  %v8506_v47 = vld [vmem:[#allocation16_spill] sm:$0xff]  ;;  %v8509_v7 = vld [vmem:[#allocation75_spill] sm:$0xff] }
 0x3e0   : > { %8491 = vst [vmem:[#allocation54_spill] sm:$0xff] %v6326_v40  ;;  %2166 = vrot.lane.b32.xlu1 %v5335_v34, %s3874_s6  ;;  %v1283_v25 = vadd.f32 %v1275_v43, %v1235_v15  ;;  %v6387_v20 = vsel %vm466_vm7, %v8505_v36, %v8504_v51  ;;  %v1329_v46 = vadd.f32 %v1321_v10, %v1281_v62  ;;  %v8510_v62 = vld [vmem:[#allocation15_spill] sm:$0xff] }
 0x3e1   : > { %2458 = vrot.lane.b32.xlu0 %v6311_v26, %s3931_s21  ;;  %v1335_v6 = vadd.f32 %v1327_v27, %v1287_v33  ;;  %v1369_v0 = vmul.f32 %v8506_v47, %v6363_v12  ;;  %v1304_v41 = vsel %vm404_vm5, %v8502_v35, %v8489_v14  ;;  %v1381_v61 = vadd.f32 %v1373_v53, %v1333_v42  ;;  %v8514_v35 = vld [vmem:[#allocation72_spill] sm:$0xff] }
 0x3e2   : > { %v6353_v54 = vpop.permute.xlu1 %1461  ;;  %v1374_v60 = vmul.f32 %v8498_v28, %v6369_v24  ;;  %v6405_v27 = vsel %vm429_vm6, %v8509_v7, %v8500_v3  ;;  %v1322_v10 = vmul.f32 %v8496_v13, %v1306_v48  ;;  %v6412_v14 = vsel %vm466_vm7, %v8510_v62, %v8505_v36  ;;  %v8513_v3 = vld [vmem:[#allocation59_spill] sm:$0xff] }
 0x3e3   : > { %v6355_v18 = vpop.permute.xlu0 %2225  ;;  %8511 = vst [vmem:[#allocation27_spill] sm:$0xff] %v6412_v14  ;;  %v6418_v42 = vsel %vm429_vm6, %v8503_v38, %v8495_v5  ;;  %v1375_v53 = vmul.f32 %v8498_v28, %v6381_v37  ;;  %v1445_v33 = vmul.f32 %v8513_v3, %v6387_v20  ;;  %v6430_v48 = vsel %vm429_vm6, %v8499_v39, %v8514_v35 }
 0x3e4   : > { %8497 = vst [vmem:[#allocation65_spill] sm:$0xff] %v6355_v18  ;;  %2208 = vrot.lane.b32.xlu1 %v5400_v8, %s3877_s14  ;;  %8512 = vst [vmem:[#allocation18_spill] sm:$0xff] %v6418_v42  ;;  %v6436_v5 = vsel %vm429_vm6, %v8514_v35, %v8509_v7  ;;  %v1323_v38 = vmul.f32 %v8496_v13, %v1304_v41  ;;  %v1382_v36 = vadd.f32 %v1374_v60, %v1334_v19  ;;  %v8520_v35 = vld [vmem:[#allocation82_spill] sm:$0xff]  ;;  %v8521_v13 = vld [vmem:[#allocation45_spill] sm:$0xff] }
 0x3e5   : > { %v6439_v28 = vadd.f32 %v1369_v0, %v1329_v46  ;;  %v1368_v23 = vmul.f32 %v8506_v47, %v6405_v27  ;;  %v6447_v39 = vsel %vm466_vm7, %v8517_v22, %v8516_v21  ;;  %v1383_v11 = vadd.f32 %v1375_v53, %v1335_v6  ;;  %v8523_v46 = vld [vmem:[#allocation89_spill] sm:$0xff] }
 0x3e6   : > { %v6395_v15 = vpop.permute.xlu1 %1852  ;;  %8518 = vst [vmem:[#allocation39_spill] sm:$0xff] %v6447_v39  ;;  %v1330_v7 = vadd.f32 %v1322_v10, %v1282_v59  ;;  %v6457_v19 = vsel %vm466_vm7, %v8521_v13, %v8520_v35  ;;  %v6463_v0 = vsel %vm466_vm7, %v8523_v46, %v8510_v62  ;;  %v6469_v6 = vsel %vm466_vm7, %v8504_v51, %v8523_v46  ;;  %v6483_v62 = vld [vmem:[#allocation7 + $0x8] sm:$0xff] }
 0x3e7   : > { %8507 = vst [vmem:[#allocation62_spill] sm:$0xff] %v6395_v15  ;;  %v6397_v43 = vpop.permute.xlu0 %2154  ;;  %8515 = vst [vmem:[#allocation47_spill] sm:$0xff] %v6439_v28  ;;  %v6471_v41 = vadd.f32 %v1445_v33, %v1381_v61  ;;  %v1370_v59 = vmul.f32 %v8506_v47, %v6430_v48  ;;  %v1371_v60 = vmul.f32 %v8506_v47, %v6436_v5  ;;  %v8526_v61 = vld [vmem:[#allocation20_spill] sm:$0xff]  ;;  %v8527_v33 = vld [vmem:[#allocation87_spill] sm:$0xff]  ;;  %vm8546_vm6 = vcmp.lt.s32.totalorder %v4553_v17, 18 }
 0x3e8   : > { %8508 = vst [vmem:[#allocation63_spill] sm:$0xff] %v6397_v43  ;;  %2258 = vrot.lane.b32.xlu1 %v5374_v16, %s3879_s13  ;;  %8522 = vst [vmem:[#allocation52_spill] sm:$0xff] %v6457_v19  ;;  %v6481_v10 = vsel %vm466_vm7, %v8520_v35, %v8517_v22  ;;  %v1331_v51 = vadd.f32 %v1323_v38, %v1283_v25  ;;  %v1440_v53 = vmul.f32 %v8526_v61, %v6447_v39  ;;  %v8528_v46 = vld [vmem:[#allocation99_spill] sm:$0xff]  ;;  %v8529_v47 = vld [vmem:[#allocation34_spill] sm:$0xff] }
 0x3e9   : > { %8524 = vst [vmem:[#allocation17_spill] sm:$0xff] %v6471_v41  ;;  %8525 = vst [vmem:[#allocation24_spill] sm:$0xff] %v6481_v10  ;;  %v6492_v26 = vsel %vm503_vm8, %v8528_v46, %v8527_v33  ;;  %v6498_v22 = vsel %vm503_vm8, %v8529_v47, %v8528_v46  ;;  %v8530_v35 = vld [vmem:[#allocation74_spill] sm:$0xff]  ;;  %v1442_v38 = vmul.f32 %v8526_v61, %v6457_v19  ;;  %v8536_v41 = vld [vmem:[#allocation69_spill] sm:$0xff] }
 0x3ea   : > { %v6449_v18 = vpop.permute.xlu1 %1940  ;;  %v6504_v25 = vsel %vm503_vm8, %v8531_v32, %v8530_v35  ;;  %v1446_v40 = vmul.f32 %v8513_v3, %v6469_v6  ;;  %v1447_v50 = vmul.f32 %v8513_v3, %v6463_v0  ;;  %v1376_v46 = vadd.f32 %v1368_v23, %v1328_v30  ;;  %v8539_v30 = vld [vmem:[#allocation91_spill] sm:$0xff]  ;;  %v8545_v19 = vld [vmem:[#allocation93_spill] sm:$0xff]  ;;  %vm8553_vm13 = vmmov %vm8546_vm6 }
 0x3eb   : > { %8519 = vst [vmem:[#allocation22_spill] sm:$0xff] %v6449_v18  ;;  %v6451_v43 = vpop.permute.xlu0 %1749  ;;  %8532 = vst [vmem:[#allocation37_spill] sm:$0xff] %v6504_v25  ;;  %v6520_v44 = vsel %vm466_vm7, %v8516_v21, %v8521_v13  ;;  %v1378_v45 = vadd.f32 %v1370_v59, %v1330_v7  ;;  %v1443_v18 = vmul.f32 %v8526_v61, %v6481_v10  ;;  %v8541_v7 = vld [vmem:[#allocation33_spill] sm:$0xff]  ;;  %v8543_v61 = vmov 5   ;;  %v8544_v10 = vld [vmem:[#allocation92_spill] sm:$0xff] }
 0x3ec   : > { %2373 = vperm.xlu1 %3610, %v6483_v62   ;;  %8535 = vst [vmem:[#allocation25_spill] sm:$0xff] %v6520_v44  ;;  %v1518_v28 = vmul.f32 %v8536_v41, %v6498_v22  ;;  %v1519_v3 = vmul.f32 %v8536_v41, %v6492_v26  ;;  %v1512_v13 = vmul.f32 %v8541_v7, %v6504_v25  ;;  %v8542_v59 = vld [vmem:[#allocation81_spill] sm:$0xff]  ;;  %vm8550_vm7 = vmmov %vm8546_vm6 }
 0x3ed   : > { %v1448_v41 = vadd.f32 %v1440_v53, %v1376_v46  ;;  %v1450_v55 = vadd.f32 %v1442_v38, %v1378_v45  ;;  %v1454_v58 = vadd.f32 %v1446_v40, %v1382_v36  ;;  %v1571_v44 = vsel %vm8546_vm6, %v8545_v19, %v8544_v10  ;;  %v8549_v15 = vld [vmem:[#allocation97_spill] sm:$0xff]  ;;  %v8556_v46 = vld [vmem:[#allocation90_spill] sm:$0xff] }
 0x3ee   : > { %v6512_v49 = vpop.permute.xlu1 %2014  ;;  %v8552_v53 = vld [vmem:[#allocation101_spill] sm:$0xff]  ;;  %v6575_v36 = vsel %vm503_vm8, %v8527_v33, %v8542_v59  ;;  %v8558_v33 = vld [vmem:[#allocation103_spill] sm:$0xff] }
 0x3ef   : > { %8533 = vst [vmem:[#allocation77_spill] sm:$0xff] %v6512_v49  ;;  %v6514_v2 = vpop.permute.xlu0 %2156  ;;  %v8537_v49 = vld [vmem:[#allocation109_spill] sm:$0xff]  ;;  %8554 = vst [vmem:[#allocation72_spill] sm:$0xff] %v6575_v36  ;;  %v6584_v38 = vadd.f32 %v1512_v13, %v1448_v41 }
 0x3f0   : > { %8534 = vst [vmem:[#allocation70_spill] sm:$0xff] %v6514_v2  ;;  %v6532_v23 = vsel %vm503_vm8, %v8537_v49, %v8531_v32  ;;  %v6538_v21 = vsel %vm503_vm8, %v8539_v30, %v8537_v49  ;;  %2200 = vrot.lane.b32.xlu1 %v5352_v31, %s3877_s14  ;;  %v6548_v2 = vsel %vm503_vm8, %v8542_v59, %v8529_v47 }
 0x3f1   : > { %8538 = vst [vmem:[#allocation68_spill] sm:$0xff] %v6532_v23  ;;  %8540 = vst [vmem:[#allocation16_spill] sm:$0xff] %v6538_v21  ;;  %v1379_v32 = vadd.f32 %v1371_v60, %v1331_v51  ;;  %3611 = vset.pattern.permute.xlu1 %v8543_v61  ;;  %v1455_v49 = vadd.f32 %v1447_v50, %v1383_v11  ;;  %v1569_v60 = vsel %vm8550_vm7, %v8544_v10, %v8549_v15  ;;  %v8551_v51 = vld [vmem:[#allocation100_spill] sm:$0xff] }
 0x3f2   : > { %v6555_v39 = vpop.permute.xlu1 %2105  ;;  %v1570_v45 = vsel %vm8553_vm13, %v8552_v53, %v8551_v51  ;;  %v1514_v11 = vmul.f32 %v8541_v7, %v6538_v21  ;;  %v1515_v50 = vmul.f32 %v8541_v7, %v6532_v23  ;;  %v1526_v61 = vadd.f32 %v1518_v28, %v1454_v58  ;;  %v8560_v58 = vld [vmem:[#allocation73_spill] sm:$0xff]  ;;  %v8567_v15 = vld [vmem:[#allocation108_spill] sm:$0xff] }
 0x3f3   : > { %8547 = vst [vmem:[#allocation75_spill] sm:$0xff] %v6555_v39  ;;  %v6557_v25 = vpop.permute.xlu0 %2206  ;;  %v1451_v40 = vadd.f32 %v1443_v18, %v1379_v32  ;;  %v1527_v10 = vadd.f32 %v1519_v3, %v1455_v49  ;;  %v6582_v47 = vsel %vm503_vm8, %v8530_v35, %v8539_v30  ;;  %vm8557_vm13 = vcmp.lt.s32.totalorder %v4553_v17, 2  ;;  %v8561_v32 = vld [vmem:[#allocation83_spill] sm:$0xff]  ;;  %vm8563_vm8 = vmmov %vm8550_vm7 }
 0x3f4   : > { %8548 = vst [vmem:[#allocation15_spill] sm:$0xff] %v6557_v25  ;;  %1817 = vperm.xlu1 %3611, %v6267_v9   ;;  %8555 = vst [vmem:[#allocation79_spill] sm:$0xff] %v6582_v47  ;;  %v1617_v18 = vsel %vm8557_vm13, %v5953_v52, %v8556_v46  ;;  %v1590_v3 = vmul.f32 %v8560_v58, %v1571_v44  ;;  %v1591_v59 = vmul.f32 %v8560_v58, %v1569_v60  ;;  %v8562_v35 = vld [vmem:[#allocation107_spill] sm:$0xff]  ;;  %v8566_v46 = vld [vmem:[#allocation84_spill] sm:$0xff] }
 0x3f5   : > { %vm8559_vm6 = vmmov %vm8557_vm13  ;;  %v1586_v49 = vmul.f32 %v8561_v32, %v1570_v45  ;;  %v1568_v41 = vsel %vm8563_vm8, %v8551_v51, %v8562_v35  ;;  %v8568_v44 = vld [vmem:[#allocation96_spill] sm:$0xff]  ;;  %vm8569_vm13 = vcmp.lt.s32.totalorder %v4553_v17, 1  ;;  %v1522_v45 = vadd.f32 %v1514_v11, %v1450_v55  ;;  %v8570_v51 = vld [vmem:[#allocation19_spill] sm:$0xff] }
 0x3f6   : > { %v1619_v28 = vsel %vm8559_vm6, %v8558_v33, %v5953_v52  ;;  %v6601_v30 = vpop.permute.xlu1 %1936  ;;  %v1574_v52 = vsel %vm8550_vm7, %v8562_v35, %v8566_v46  ;;  %v6613_v60 = vsel %vm8569_vm13, %v8568_v44, %v8567_v15  ;;  %v1523_v25 = vadd.f32 %v1515_v50, %v1451_v40  ;;  %v8572_v11 = vld [vmem:[#allocation126_spill] sm:$0xff]  ;;  %vm8577_vm8 = vmmov %vm8569_vm13 }
 0x3f7   : > { %8564 = vst [vmem:[#allocation85_spill] sm:$0xff] %v6601_v30  ;;  %v6603_v13 = vpop.permute.xlu0 %2273  ;;  %v1598_v39 = vadd.f32 %v1590_v3, %v1526_v61  ;;  %v1599_v33 = vadd.f32 %v1591_v59, %v1527_v10  ;;  %v1638_v58 = vmul.f32 %v8570_v51, %v1619_v28  ;;  %v1639_v7 = vmul.f32 %v8570_v51, %v1617_v18  ;;  %v8573_v50 = vld [vmem:[#allocation94_spill] sm:$0xff]  ;;  %v8575_v18 = vld [vmem:[#allocation95_spill] sm:$0xff]  ;;  %vm8579_vm7 = vmmov %vm8559_vm6 }
 0x3f8   : > { %8565 = vst [vmem:[#allocation82_spill] sm:$0xff] %v6603_v13  ;;  %2164 = vrot.lane.b32.xlu1 %v5384_v1, %s3874_s6  ;;  %v8571_v13 = vld [vmem:[#allocation105_spill] sm:$0xff]  ;;  %v1587_v55 = vmul.f32 %v8561_v32, %v1568_v41  ;;  %v1618_v40 = vsel %vm8559_vm6, %v8573_v50, %v8572_v11  ;;  %v8574_v61 = vmov 33   ;;  %v6634_v10 = vmul.f32 %v8561_v32, %v1574_v52  ;;  %v8576_v3 = vld [vmem:[#allocation119_spill] sm:$0xff]  ;;  %vm8583_vm13 = vmmov %vm8577_vm8  ;;  %s3940_s6 = smov 37  }
 0x3f9   : > { %v6621_v35 = vmul.f32 %v8571_v13, %v5374_v16  ;;  %v6625_v46 = vmul.f32 %v8571_v13, %v5335_v34  ;;  %3614 = vset.pattern.permute.xlu1 %v8574_v61  ;;  %v1686_v28 = vmul.f32 %v8575_v18, %v6613_v60  ;;  %v1665_v59 = vsel %vm8577_vm8, %v8567_v15, %v8576_v3  ;;  %v8578_v13 = vld [vmem:[#allocation117_spill] sm:$0xff]  ;;  %v8584_v32 = vld [vmem:[#allocation111_spill] sm:$0xff]  ;;  %v8586_v30 = vld [vmem:[#allocation78_spill] sm:$0xff] }
 0x3fa   : > { %v1616_v41 = vsel %vm8579_vm7, %v8572_v11, %v8578_v13  ;;  %v6646_v51 = vpop.permute.xlu1 %2010  ;;  %v8582_v52 = vld [vmem:[#allocation113_spill] sm:$0xff]  ;;  %v6660_v15 = vsel %vm8559_vm6, %v8578_v13, %v8584_v32  ;;  %v1594_v53 = vadd.f32 %v1586_v49, %v1522_v45  ;;  %v1595_v19 = vadd.f32 %v1587_v55, %v1523_v25  ;;  %v8587_v32 = vld [vmem:[#allocation106_spill] sm:$0xff]  ;;  %vm8589_vm7 = vmmov %vm8577_vm8 }
 0x3fb   : > { %8580 = vst [vmem:[#allocation45_spill] sm:$0xff] %v6646_v51  ;;  %v6648_v50 = vpop.permute.xlu0 %2202  ;;  %v6654_v61 = vsel %vm8583_vm13, %v8582_v52, %v8568_v44  ;;  %v6666_v11 = vsel %vm8577_vm8, %v8576_v3, %v8582_v52  ;;  %v1647_v51 = vadd.f32 %v1639_v7, %v1599_v33  ;;  %v1634_v23 = vmul.f32 %v8586_v30, %v1618_v40  ;;  %v8588_v49 = vld [vmem:[#allocation134_spill] sm:$0xff]  ;;  %vm8592_vm13 = vmmov %vm8589_vm7  ;;  %v8594_v7 = vld [vmem:[#allocation136_spill] sm:$0xff] }
 0x3fc   : > { %8581 = vst [vmem:[#allocation89_spill] sm:$0xff] %v6648_v50  ;;  %8585 = vst [vmem:[#allocation87_spill] sm:$0xff] %v6666_v11  ;;  %v1646_v50 = vadd.f32 %v1638_v58, %v1598_v39  ;;  %2214 = vrot.lane.b32.xlu1 %v5335_v34, %s3877_s14  ;;  %v1687_v44 = vmul.f32 %v8575_v18, %v1665_v59  ;;  %v1635_v13 = vmul.f32 %v8586_v30, %v1616_v41  ;;  %v8591_v45 = vld [vmem:[#allocation122_spill] sm:$0xff] }
 0x3fd   : > { %v6677_v25 = vsel %vm8589_vm7, %v8588_v49, %v8587_v32  ;;  %v6683_v39 = vsel %vm8592_vm13, %v8591_v45, %v8588_v49  ;;  %v1396_v33 = vmul.f32 %v8594_v7, %v6418_v42  ;;  %v1397_v58 = vmul.f32 %v8594_v7, %v6343_v56 }
 0x3fe   : > { %8590 = vst [vmem:[#allocation99_spill] sm:$0xff] %v6677_v25  ;;  %8593 = vst [vmem:[#allocation34_spill] sm:$0xff] %v6683_v39  ;;  %v1398_v55 = vmul.f32 %v8594_v7, %v6369_v24  ;;  %v1399_v40 = vmul.f32 %v8594_v7, %v6381_v37  ;;  %v6693_v3 = vpop.permute.xlu1 %1457  ;;  %v1468_v52 = vmul.f32 %v6353_v54, %v6412_v14  ;;  %v8595_v37 = vld [vmem:[#allocation121_spill] sm:$0xff]  ;;  %v8596_v7 = vld [vmem:[#allocation110_spill] sm:$0xff]  ;;  %vm8597_vm6 = vcmp.lt.s32.totalorder %v4553_v17, 127 }
 0x3ff   : > { %v1822_v41 = vpop.permute.xlu0 %1821  ;;  %v1469_v49 = vmul.f32 %v6353_v54, %v6387_v20  ;;  %v1470_v42 = vmul.f32 %v6353_v54, %v6469_v6  ;;  %v1471_v56 = vmul.f32 %v6353_v54, %v6463_v0  ;;  %v6703_v18 = vadd.f32 %v1686_v28, %v1646_v50  ;;  %v8598_v50 = vld [vmem:[#allocation128_spill] sm:$0xff]  ;;  %vm8599_vm8 = vmmov %vm8597_vm6 }
 0x400   : > { %v6705_v24 = vadd.f32 %v1687_v44, %v1647_v51  ;;  %v6711_v45 = vsel %vm8597_vm6, %v8596_v7, %v8595_v37  ;;  %v1642_v14 = vadd.f32 %v1634_v23, %v1594_v53  ;;  %2256 = vrot.lane.b32.xlu1 %v5400_v8, %s3879_s13  ;;  %v1404_v20 = vadd.f32 %v1396_v33, %v6308_v4  ;;  %v8601_v23 = vld [vmem:[#allocation88_spill] sm:$0xff]  ;;  %vm8605_vm7 = vmmov %vm8597_vm6 }
 0x401   : > { %v1405_v6 = vadd.f32 %v1397_v58, %v6308_v4  ;;  %v1406_v54 = vadd.f32 %v1398_v55, %v6308_v4  ;;  %v1407_v0 = vadd.f32 %v1399_v40, %v6308_v4  ;;  %v1643_v51 = vadd.f32 %v1635_v13, %v1595_v19  ;;  %vm8607_vm13 = vmmov %vm8597_vm6 }
 0x402   : > { %v6723_v28 = vsel %vm8599_vm8, %v8598_v50, %v8596_v7  ;;  %v1682_v53 = vmul.f32 %v8601_v23, %v6683_v39  ;;  %v1683_v44 = vmul.f32 %v8601_v23, %v6677_v25  ;;  %v1476_v58 = vadd.f32 %v1468_v52, %v1404_v20  ;;  %v8648_v39 = vld [vmem:[#allocation141_spill] sm:$0xff] }
 0x403   : > { %8600 = vst [vmem:[#allocation74_spill] sm:$0xff] %v6723_v28  ;;  %v6729_v33 = vpop.permute.xlu0 %2204  ;;  %v1477_v21 = vadd.f32 %v1469_v49, %v1405_v6  ;;  %v1478_v55 = vadd.f32 %v1470_v42, %v1406_v54  ;;  %v1479_v47 = vadd.f32 %v1471_v56, %v1407_v0  ;;  %v1534_v4 = vpop.permute.xlu1 %1533  ;;  %v1708_v25 = vmul.f32 %v6255_v57, %v6666_v11 }
 0x404   : > { %8602 = vst [vmem:[#allocation80_spill] sm:$0xff] %v6729_v33  ;;  %v1540_v19 = vmul.f32 %v1534_v4, %v6575_v36  ;;  %v1541_v13 = vmul.f32 %v1534_v4, %v6548_v2  ;;  %v1542_v40 = vmul.f32 %v1534_v4, %v6498_v22  ;;  %v1543_v7 = vmul.f32 %v1534_v4, %v6492_v26  ;;  %v8604_v26 = vld [vmem:[#allocation132_spill] sm:$0xff] }
 0x405   : > { %2306 = vrot.lane.b32.xlu1 %v5374_v16, %s3882_s29  ;;  %v1709_v52 = vmul.f32 %v6255_v57, %v6654_v61  ;;  %v1710_v42 = vmul.f32 %v6255_v57, %v6613_v60  ;;  %v1711_v49 = vmul.f32 %v6255_v57, %v1665_v59  ;;  %v6750_v0 = vsel %vm8605_vm7, %v8604_v26, %v8598_v50  ;;  %v8608_v60 = vld [vmem:[#allocation21_spill] sm:$0xff] }
 0x406   : > { %v1548_v56 = vadd.f32 %v1540_v19, %v1476_v58  ;;  %v1549_v20 = vadd.f32 %v1541_v13, %v1477_v21  ;;  %v1550_v6 = vadd.f32 %v1542_v40, %v1478_v55  ;;  %v1551_v22 = vadd.f32 %v1543_v7, %v1479_v47  ;;  %8606 = vst [vmem:[#allocation91_spill] sm:$0xff] %v6750_v0 }
 0x407   : > { %v6744_v54 = vpop.permute.xlu0 %2254  ;;  %v1791_v4 = vsel %vm8607_vm13, %v8595_v37, %v8604_v26  ;;  %v1756_v57 = vmul.f32 %v6451_v43, %v5290_v63  ;;  %v1757_v21 = vmul.f32 %v6451_v43, %v8608_v60  ;;  %v1951_v47 = vpop.permute.xlu1 %1950  ;;  %v1690_v50 = vadd.f32 %v1682_v53, %v1642_v14  ;;  %v8611_v53 = vld [vmem:[#allocation102_spill] sm:$0xff] }
 0x408   : > { %8603 = vst [vmem:[#allocation109_spill] sm:$0xff] %v6744_v54  ;;  %v1716_v59 = vadd.f32 %v1708_v25, %v1548_v56  ;;  %v1717_v58 = vadd.f32 %v1709_v52, %v1549_v20  ;;  %v1718_v55 = vadd.f32 %v1710_v42, %v1550_v6  ;;  %v1719_v19 = vadd.f32 %v1711_v49, %v1551_v22  ;;  %v8613_v20 = vld [vmem:[#allocation115_spill] sm:$0xff] }
 0x409   : > { %2421 = vperm.xlu1 %3614, %v6483_v62   ;;  %v1691_v13 = vadd.f32 %v1683_v44, %v1643_v51  ;;  %v1758_v40 = vmul.f32 %v6451_v43, %v5374_v16  ;;  %v1759_v37 = vmul.f32 %v6451_v43, %v5335_v34  ;;  %v1828_v7 = vmul.f32 %v1822_v41, %v6750_v0 }
 0x40a   : > { %v1829_v26 = vmul.f32 %v1822_v41, %v6723_v28  ;;  %v1764_v25 = vadd.f32 %v1756_v57, %v1716_v59  ;;  %v1765_v52 = vadd.f32 %v1757_v21, %v1717_v58  ;;  %v1830_v42 = vmul.f32 %v1822_v41, %v6711_v45 }
 0x40b   : > { %v6767_v11 = vpop.permute.xlu0 %2321  ;;  %v1831_v49 = vmul.f32 %v1822_v41, %v1791_v4  ;;  %v6770_v56 = vpop.permute.xlu1 %2016  ;;  %v1766_v14 = vadd.f32 %v1758_v40, %v1718_v55  ;;  %v1767_v51 = vadd.f32 %v1759_v37, %v1719_v19  ;;  %vm8612_vm6 = vcmp.lt.s32.totalorder %v4553_v17, 1 }
 0x40c   : > { %8609 = vst [vmem:[#allocation81_spill] sm:$0xff] %v6767_v11  ;;  %8610 = vst [vmem:[#allocation92_spill] sm:$0xff] %v6770_v56  ;;  %v6776_v43 = vsel %vm8612_vm6, %v8587_v32, %v8611_v53  ;;  %v6780_v44 = vadd.f32 %v6634_v10, %v6584_v38  ;;  %v1730_v6 = vmul.f32 %v8613_v20, %v5400_v8  ;;  %v8614_v57 = vmov 6   ;;  %v8615_v10 = vld [vmem:[#allocation98_spill] sm:$0xff] }
 0x40d   : > { %2248 = vrot.lane.b32.xlu1 %v5352_v31, %s3879_s13  ;;  %v1836_v41 = vadd.f32 %v1828_v7, %v1764_v25  ;;  %v1731_v22 = vmul.f32 %v8613_v20, %v5384_v1  ;;  %v1837_v21 = vadd.f32 %v1829_v26, %v1765_v52  ;;  %v1838_v59 = vadd.f32 %v1830_v42, %v1766_v14  ;;  %v8617_v7 = vld [vmem:[#allocation131_spill] sm:$0xff]  ;;  %v8623_v42 = vld [vmem:[#allocation142_spill] sm:$0xff]  ;;  %vm8630_vm6 = vmmov %vm8607_vm13 }
 0x40e   : > { %3615 = vset.pattern.permute.xlu1 %v8614_v57  ;;  %v1839_v32 = vadd.f32 %v1831_v49, %v1767_v51  ;;  %v6791_v58 = vmul.f32 %v8586_v30, %v6660_v15  ;;  %v6795_v38 = vadd.f32 %v6621_v35, %v6703_v18  ;;  %v6799_v55 = vmul.f32 %v8615_v10, %v6711_v45  ;;  %v8618_v15 = vld [vmem:[#allocation138_spill] sm:$0xff]  ;;  %v8622_v45 = vld [vmem:[#allocation140_spill] sm:$0xff]  ;;  %v8624_v49 = vld [vmem:[#allocation125_spill] sm:$0xff] }
 0x40f   : > { %v6803_v19 = vadd.f32 %v6625_v46, %v6705_v24  ;;  %v6805_v40 = vpop.permute.xlu0 %2250  ;;  %v6808_v37 = vmul.f32 %v8615_v10, %v1791_v4  ;;  %vm8619_vm8 = vcmp.lt.s32.totalorder %v4553_v17, 109  ;;  %v1738_v35 = vadd.f32 %v1730_v6, %v1690_v50  ;;  %v6816_v25 = vpop.permute.xlu1 %2090  ;;  %v8627_v14 = vld [vmem:[#allocation135_spill] sm:$0xff]  ;;  %v8633_v51 = vld [vmem:[#allocation62_spill] sm:$0xff]  ;;  %v8636_v57 = vld [vmem:[#allocation149_spill] sm:$0xff] }
 0x410   : > { %8616 = vst [vmem:[#allocation100_spill] sm:$0xff] %v6805_v40  ;;  %v6814_v26 = vsel %vm8619_vm8, %v8618_v15, %v8617_v7  ;;  %v1739_v18 = vadd.f32 %v1731_v22, %v1691_v13  ;;  %8621 = vst [vmem:[#allocation108_spill] sm:$0xff] %v6816_v25  ;;  %v1392_v52 = vmul.f32 %v8622_v45, %v6405_v27  ;;  %vm8625_vm7 = vcmp.lt.s32.totalorder %v4553_v17, 110  ;;  %v8626_v13 = vld [vmem:[#allocation153_spill] sm:$0xff]  ;;  %v8634_v6 = vld [vmem:[#allocation123_spill] sm:$0xff] }
 0x411   : > { %8620 = vst [vmem:[#allocation107_spill] sm:$0xff] %v6814_v26  ;;  %v1393_v46 = vmul.f32 %v8622_v45, %v6363_v12  ;;  %v1394_v24 = vmul.f32 %v8622_v45, %v6430_v48  ;;  %v1395_v4 = vmul.f32 %v8622_v45, %v6436_v5  ;;  %1985 = vperm.xlu1 %3615, %v6267_v9   ;;  %v8629_v12 = vld [vmem:[#allocation120_spill] sm:$0xff] }
 0x412   : > { %v6831_v50 = vsel %vm8625_vm7, %v8624_v49, %v8623_v42  ;;  %v6837_v27 = vsel %vm8607_vm13, %v8627_v14, %v8626_v13  ;;  %v6843_v48 = vsel %vm8630_vm6, %v8626_v13, %v8629_v12  ;;  %v6849_v5 = vsel %vm8619_vm8, %v8617_v7, %v6207_v29  ;;  %vm8638_vm6 = vmmov %vm8619_vm8  ;;  %v8642_v9 = vld [vmem:[#allocation104_spill] sm:$0xff] }
 0x413   : > { %8628 = vst [vmem:[#allocation96_spill] sm:$0xff] %v6837_v27  ;;  %8631 = vst [vmem:[#allocation126_spill] sm:$0xff] %v6843_v48  ;;  %vm8635_vm7 = vcmp.lt.s32.totalorder %v4553_v17, 126  ;;  %v6862_v13 = vsel %vm8638_vm6, %v6207_v29, %v1951_v47  ;;  %v1990_v11 = vpop.permute.xlu0 %1989  ;;  %v6872_v54 = vpop.permute.xlu1 %2229  ;;  %v1802_v29 = vmul.f32 %v8642_v9, %v6837_v27  ;;  %v1803_v25 = vmul.f32 %v8642_v9, %v6843_v48  ;;  %v8650_v48 = vld [vmem:[#allocation130_spill] sm:$0xff]  ;;  %v8668_v14 = vld [vmem:[#allocation68_spill] sm:$0xff] }
 0x414   : > { %8632 = vst [vmem:[#allocation119_spill] sm:$0xff] %v6849_v5  ;;  %v1856_v22 = vsel %vm8635_vm7, %v8634_v6, %v8633_v51  ;;  %vm8637_vm13 = vmmov %vm8635_vm7  ;;  %v1996_v0 = vmul.f32 %v1990_v11, %v6814_v26  ;;  %v1997_v40 = vmul.f32 %v1990_v11, %v6849_v5  ;;  %v1998_v36 = vmul.f32 %v1990_v11, %v6862_v13  ;;  %v8667_v6 = vld [vmem:[#allocation16_spill] sm:$0xff] }
 0x415   : > { %v1862_v45 = vsel %vm8637_vm13, %v8633_v51, %v8636_v57  ;;  %vm8639_vm8 = vmmov %vm8638_vm6  ;;  %8640 = vst [vmem:[#allocation117_spill] sm:$0xff] %v6872_v54  ;;  %v8641_v51 = vld [vmem:[#allocation148_spill] sm:$0xff]  ;;  %2212 = vrot.lane.b32.xlu1 %v5384_v1, %s3877_s14  ;;  %v3932_v27 = vmov 8   ;;  %v1874_v49 = vmul.f32 %v8650_v48, %v1856_v22  ;;  %vm8658_vm6 = vcmp.lt.s32.totalorder %v4553_v17, 110 }
 0x416   : > { %v6867_v7 = vsel %vm8639_vm8, %v1951_v47, %v8618_v15  ;;  %v1400_v33 = vadd.f32 %v1392_v52, %v8641_v51  ;;  %v8643_v47 = vld [vmem:[#allocation155_spill] sm:$0xff]  ;;  %v8644_v15 = vld [vmem:[#allocation137_spill] sm:$0xff]  ;;  %v6886_v5 = vadd.f32 %v1996_v0, %v1836_v41  ;;  %v6888_v54 = vadd.f32 %v1997_v40, %v1837_v21  ;;  %3618 = vset.pattern.permute.xlu1 %v3932_v27  ;;  %vm8649_vm13 = vmmov %vm8635_vm7 }
 0x417   : > { %v1999_v56 = vmul.f32 %v1990_v11, %v6867_v7  ;;  %v1857_v26 = vsel %vm8635_vm7, %v8644_v15, %v8643_v47  ;;  %v6890_v52 = vadd.f32 %v1998_v36, %v1838_v59  ;;  %v1863_v11 = vsel %vm8649_vm13, %v8643_v47, %v8648_v39  ;;  %v6900_v15 = vpop.permute.xlu0 %2252  ;;  %v8653_v0 = vld [vmem:[#allocation39_spill] sm:$0xff]  ;;  %v8654_v36 = vld [vmem:[#allocation25_spill] sm:$0xff]  ;;  %v8655_v59 = vld [vmem:[#allocation52_spill] sm:$0xff] }
 0x418   : > { %8645 = vst [vmem:[#allocation113_spill] sm:$0xff] %v6886_v5  ;;  %8646 = vst [vmem:[#allocation78_spill] sm:$0xff] %v6888_v54  ;;  %v1875_v10 = vmul.f32 %v8650_v48, %v1862_v45  ;;  %v1464_v41 = vmul.f32 %v6693_v3, %v8653_v0  ;;  %v1465_v21 = vmul.f32 %v6693_v3, %v8654_v36  ;;  %v8656_v27 = vld [vmem:[#allocation24_spill] sm:$0xff]  ;;  %v6910_v5 = vpop.permute.xlu1 %2008  ;;  %v8657_v54 = vld [vmem:[#allocation151_spill] sm:$0xff]  ;;  %vm8673_vm13 = vcmp.lt.s32.totalorder %v4553_v17, 109 }
 0x419   : > { %8647 = vst [vmem:[#allocation106_spill] sm:$0xff] %v6890_v52  ;;  %v6898_v28 = vadd.f32 %v1999_v56, %v1839_v32  ;;  %8652 = vst [vmem:[#allocation136_spill] sm:$0xff] %v6900_v15  ;;  %v1466_v40 = vmul.f32 %v6693_v3, %v8655_v59  ;;  %v1467_v47 = vmul.f32 %v6693_v3, %v8656_v27  ;;  %2262 = vrot.lane.b32.xlu1 %v5335_v34, %s3879_s13  ;;  %v8659_v39 = vld [vmem:[#allocation124_spill] sm:$0xff] }
 0x41a   : > { %v1401_v22 = vadd.f32 %v1393_v46, %v8641_v51  ;;  %v1402_v56 = vadd.f32 %v1394_v24, %v8641_v51  ;;  %v1810_v32 = vadd.f32 %v1802_v29, %v1738_v35  ;;  %v1811_v45 = vadd.f32 %v1803_v25, %v1739_v18  ;;  %v8660_v15 = vld [vmem:[#allocation152_spill] sm:$0xff]  ;;  %v8661_v46 = vld [vmem:[#allocation157_spill] sm:$0xff]  ;;  %vm8662_vm8 = vmmov %vm8658_vm6 }
 0x41b   : > { %8651 = vst [vmem:[#allocation134_spill] sm:$0xff] %v6898_v28  ;;  %v1403_v0 = vadd.f32 %v1395_v4, %v8641_v51  ;;  %v1911_v59 = vsel %vm8658_vm6, %v8623_v42, %v8657_v54  ;;  %v1878_v3 = vmul.f32 %v8659_v39, %v1857_v26  ;;  %v1879_v27 = vmul.f32 %v8659_v39, %v1863_v11  ;;  %v8663_v18 = vld [vmem:[#allocation23_spill] sm:$0xff]  ;;  %vm8664_vm7 = vmmov %vm8658_vm6  ;;  %v6931_v51 = vpop.permute.xlu0 %2302  ;;  %v8665_v11 = vld [vmem:[#allocation37_spill] sm:$0xff] }
 0x41c   : > { %v1904_v35 = vsel %vm8662_vm8, %v8661_v46, %v8660_v15  ;;  %v1910_v25 = vsel %vm8664_vm7, %v8660_v15, %v8663_v18  ;;  %v1882_v24 = vadd.f32 %v1874_v49, %v1810_v32  ;;  %v1883_v4 = vadd.f32 %v1875_v10, %v1811_v45  ;;  %v1530_v34 = vpop.permute.xlu1 %1529  ;;  %v8666_v28 = vld [vmem:[#allocation79_spill] sm:$0xff]  ;;  %v8669_v49 = vld [vmem:[#allocation118_spill] sm:$0xff]  ;;  %vm8676_vm6 = vmmov %vm8673_vm13 }
 0x41d   : > { %v1472_v29 = vadd.f32 %v1464_v41, %v1400_v33  ;;  %v1473_v42 = vadd.f32 %v1465_v21, %v1401_v22  ;;  %v1474_v54 = vadd.f32 %v1466_v40, %v1402_v56  ;;  %v1475_v26 = vadd.f32 %v1467_v47, %v1403_v0  ;;  %2304 = vrot.lane.b32.xlu1 %v5400_v8, %s3882_s29  ;;  %v8671_v47 = vld [vmem:[#allocation112_spill] sm:$0xff] }
 0x41e   : > { %v1536_v39 = vmul.f32 %v1530_v34, %v8665_v11  ;;  %v1537_v52 = vmul.f32 %v1530_v34, %v8666_v28  ;;  %v1538_v46 = vmul.f32 %v1530_v34, %v8667_v6  ;;  %v1539_v60 = vmul.f32 %v1530_v34, %v8668_v14 }
 0x41f   : > { %v1814_v10 = vadd.f32 %v6799_v55, %v6795_v38  ;;  %v1815_v33 = vadd.f32 %v6808_v37, %v6803_v19  ;;  %v1922_v15 = vmul.f32 %v8669_v49, %v1904_v35  ;;  %v1923_v41 = vmul.f32 %v8669_v49, %v1910_v25  ;;  %v6953_v14 = vpop.permute.xlu0 %2369  ;;  %v8681_v25 = vld [vmem:[#allocation69_spill] sm:$0xff] }
 0x420   : > { %v6945_v21 = vadd.f32 %v1536_v39, %v1472_v29  ;;  %v6947_v40 = vadd.f32 %v1537_v52, %v1473_v42  ;;  %v6949_v6 = vadd.f32 %v1538_v46, %v1474_v54  ;;  %v6951_v34 = vadd.f32 %v1539_v60, %v1475_v26  ;;  %8670 = vst [vmem:[#allocation121_spill] sm:$0xff] %v6953_v14  ;;  %v1949_v22 = vpop.permute.xlu1 %1948  ;;  %v8672_v39 = vld [vmem:[#allocation144_spill] sm:$0xff]  ;;  %v8675_v54 = vld [vmem:[#allocation85_spill] sm:$0xff]  ;;  %v8697_v14 = vld [vmem:[#allocation114_spill] sm:$0xff] }
 0x421   : > { %v1926_v38 = vmul.f32 %v8671_v47, %v6831_v50  ;;  %v1927_v55 = vmul.f32 %v8671_v47, %v1911_v59  ;;  %v1886_v19 = vadd.f32 %v1878_v3, %v1814_v10  ;;  %v1887_v37 = vadd.f32 %v1879_v27, %v1815_v33  ;;  %2354 = vrot.lane.b32.xlu1 %v5374_v16, %s3885_s30  ;;  %v8678_v50 = vld [vmem:[#allocation139_spill] sm:$0xff]  ;;  %v8680_v46 = vld [vmem:[#allocation20_spill] sm:$0xff]  ;;  %v8686_v33 = vld [vmem:[#allocation101_spill] sm:$0xff] }
 0x422   : > { %v1930_v56 = vadd.f32 %v1922_v15, %v1882_v24  ;;  %v1931_v32 = vadd.f32 %v1923_v41, %v1883_v4  ;;  %v6961_v52 = vsel %vm8673_vm13, %v8672_v39, %v1949_v22  ;;  %v6966_v60 = vsel %vm8676_vm6, %v1949_v22, %v8675_v54  ;;  %v8679_v59 = vld [vmem:[#allocation147_spill] sm:$0xff]  ;;  %v8682_v4 = vld [vmem:[#allocation93_spill] sm:$0xff]  ;;  %v8683_v16 = vld [vmem:[#allocation76_spill] sm:$0xff] }
 0x423   : > { %8674 = vst [vmem:[#allocation110_spill] sm:$0xff] %v6961_v52  ;;  %8677 = vst [vmem:[#allocation128_spill] sm:$0xff] %v6966_v60  ;;  %v1974_v45 = vmul.f32 %v8678_v50, %v6862_v13  ;;  %v1975_v0 = vmul.f32 %v8678_v50, %v6867_v7  ;;  %v1970_v3 = vmul.f32 %v8679_v59, %v6961_v52  ;;  %vm8684_vm8 = vcmp.lt.s32.totalorder %v4553_v17, 18  ;;  %v6988_v29 = vpop.permute.xlu0 %2298  ;;  %v8687_v15 = vld [vmem:[#allocation84_spill] sm:$0xff]  ;;  %v8689_v22 = vld [vmem:[#allocation146_spill] sm:$0xff] }
 0x424   : > { %v1971_v27 = vmul.f32 %v8679_v59, %v6966_v60  ;;  %v1441_v35 = vmul.f32 %v8680_v46, %v8654_v36  ;;  %v1517_v24 = vmul.f32 %v8681_v25, %v6548_v2  ;;  %v1573_v13 = vsel %vm8684_vm8, %v8683_v16, %v8682_v4  ;;  %8685 = vst [vmem:[#allocation88_spill] sm:$0xff] %v6988_v29  ;;  %v2023_v36 = vpop.permute.xlu1 %2022  ;;  %vm8688_vm7 = vmmov %vm8684_vm8  ;;  %v8693_v46 = vld [vmem:[#allocation73_spill] sm:$0xff]  ;;  %v8706_v25 = vld [vmem:[#allocation143_spill] sm:$0xff] }
 0x425   : > { %v1640_v7 = vadd.f32 %v6791_v58, %v6780_v44  ;;  %v1934_v42 = vadd.f32 %v1926_v38, %v1886_v19  ;;  %v1935_v26 = vadd.f32 %v1927_v55, %v1887_v37  ;;  %v6990_v11 = vadd.f32 %v1970_v3, %v1930_v56  ;;  %v8690_v58 = vld [vmem:[#allocation45_spill] sm:$0xff]  ;;  %2296 = vrot.lane.b32.xlu1 %v5352_v31, %s3882_s29  ;;  %v8691_v37 = vld [vmem:[#allocation127_spill] sm:$0xff] }
 0x426   : > { %v6992_v10 = vadd.f32 %v1971_v27, %v1931_v32  ;;  %v1572_v2 = vsel %vm8688_vm7, %v8687_v15, %v8686_v33  ;;  %v1680_v41 = vmul.f32 %v8601_v23, %v6776_v43  ;;  %v7003_v44 = vsel %vm775_vm12, %v8689_v22, %v2023_v36  ;;  %v8692_v3 = vld [vmem:[#allocation33_spill] sm:$0xff]  ;;  %v8694_v33 = vld [vmem:[#allocation103_spill] sm:$0xff]  ;;  %v8695_v15 = vld [vmem:[#allocation86_spill] sm:$0xff] }
 0x427   : > { %v7008_v38 = vsel %vm775_vm12, %v2023_v36, %v8690_v58  ;;  %v1982_v55 = vadd.f32 %v1974_v45, %v1934_v42  ;;  %v1983_v19 = vadd.f32 %v1975_v0, %v1935_v26  ;;  %v2046_v56 = vmul.f32 %v8691_v37, %v7003_v44  ;;  %v7029_v0 = vpop.permute.xlu0 %2300  ;;  %v8700_v42 = vld [vmem:[#allocation94_spill] sm:$0xff]  ;;  %v8701_v26 = vld [vmem:[#allocation111_spill] sm:$0xff]  ;;  %v8704_v52 = vld [vmem:[#allocation17_spill] sm:$0xff] }
 0x428   : > { %v2047_v32 = vmul.f32 %v8691_v37, %v7008_v38  ;;  %v1513_v27 = vmul.f32 %v8692_v3, %v8666_v28  ;;  %v1589_v4 = vmul.f32 %v8693_v46, %v1573_v13  ;;  %vm8696_vm13 = vcmp.lt.s32.totalorder %v4553_v17, 2  ;;  %8699 = vst [vmem:[#allocation132_spill] sm:$0xff] %v7029_v0  ;;  %v7039_v29 = vpop.permute.xlu1 %2088 }
 0x429   : > { %v1621_v36 = vsel %vm8696_vm13, %v8695_v15, %v8694_v33  ;;  %vm8698_vm6 = vcmp.lt.s32.totalorder %v4553_v17, 127  ;;  %vm8702_vm8 = vmmov %vm8696_vm13  ;;  %v1688_v3 = vadd.f32 %v1680_v41, %v1640_v7  ;;  %v7035_v13 = vadd.f32 %v2046_v56, %v1982_v55  ;;  %v8703_v33 = vld [vmem:[#allocation47_spill] sm:$0xff]  ;;  %2346 = vrot.lane.b32.xlu1 %v5290_v63, %s3885_s30 }
 0x42a   : > { %v7027_v45 = vsel %vm8698_vm6, %v8629_v12, %v8697_v14  ;;  %v1620_v28 = vsel %vm8702_vm8, %v8701_v26, %v8700_v42  ;;  %v7037_v58 = vadd.f32 %v2047_v32, %v1983_v19  ;;  %v1449_v60 = vadd.f32 %v1441_v35, %v8703_v33  ;;  %v8705_v12 = vld [vmem:[#allocation83_spill] sm:$0xff]  ;;  %v8709_v19 = vld [vmem:[#allocation122_spill] sm:$0xff] }
 0x42b   : > { %v1525_v15 = vadd.f32 %v1517_v24, %v8704_v52  ;;  %v1585_v46 = vmul.f32 %v8705_v12, %v1572_v2  ;;  %vm8707_vm7 = vcmp.lt.s32.totalorder %v4553_v17, 126  ;;  %v8708_v7 = vld [vmem:[#allocation19_spill] sm:$0xff]  ;;  %v1728_v55 = vmul.f32 %v8613_v20, %v5352_v31  ;;  %v7064_v32 = vpop.permute.xlu0 %2350 }
 0x42c   : > { %v1860_v0 = vsel %vm8707_vm7, %v8636_v57, %v8706_v25  ;;  %v1637_v41 = vmul.f32 %v8708_v7, %v1621_v36  ;;  %v1800_v35 = vmul.f32 %v8642_v9, %v7027_v45  ;;  %vm8710_vm13 = vcmp.lt.s32.totalorder %v4553_v17, 1  ;;  %v8711_v57 = vld [vmem:[#allocation129_spill] sm:$0xff]  ;;  %8713 = vst [vmem:[#allocation102_spill] sm:$0xff] %v7064_v32  ;;  %v8714_v42 = vld [vmem:[#allocation95_spill] sm:$0xff]  ;;  %v7069_v63 = vpop.permute.xlu1 %2162  ;;  %v8735_v32 = vld [vmem:[#allocation116_spill] sm:$0xff] }
 0x42d   : > { %v1668_v52 = vsel %vm8710_vm13, %v8611_v53, %v8709_v19  ;;  %v1521_v24 = vadd.f32 %v1513_v27, %v1449_v60  ;;  %v1633_v2 = vmul.f32 %v8586_v30, %v1620_v28  ;;  %vm8712_vm6 = vcmp.lt.s32.totalorder %v4553_v17, 110  ;;  %v8715_v30 = vld [vmem:[#allocation22_spill] sm:$0xff]  ;;  %2133 = vperm.xlu1 %3618, %v6483_v62  }
 0x42e   : > { %v1908_v56 = vsel %vm8712_vm6, %v8663_v18, %v8711_v57  ;;  %v1597_v36 = vadd.f32 %v1589_v4, %v1525_v15  ;;  %v1685_v26 = vmul.f32 %v8714_v42, %v6654_v61  ;;  %v1736_v33 = vadd.f32 %v1728_v55, %v1688_v3  ;;  %v8717_v28 = vld [vmem:[#allocation154_spill] sm:$0xff]  ;;  %v8741_v42 = vld [vmem:[#allocation125_spill] sm:$0xff] }
 0x42f   : > { %v1872_v12 = vmul.f32 %v8650_v48, %v1860_v0  ;;  %v1593_v53 = vadd.f32 %v1585_v46, %v1521_v24  ;;  %v1681_v60 = vmul.f32 %v8601_v23, %v1668_v52  ;;  %vm8716_vm8 = vcmp.lt.s32.totalorder %v4553_v17, 109  ;;  %v7086_v23 = vpop.permute.xlu0 %2417  ;;  %v8744_v7 = vld [vmem:[#allocation134_spill] sm:$0xff] }
 0x430   : > { %v7076_v27 = vsel %vm8716_vm8, %v8675_v54, %v8715_v30  ;;  %v1645_v18 = vadd.f32 %v1637_v41, %v1597_v36  ;;  %v1808_v4 = vadd.f32 %v1800_v35, %v1736_v33  ;;  %v1920_v61 = vmul.f32 %v8669_v49, %v1908_v56  ;;  %8719 = vst [vmem:[#allocation131_spill] sm:$0xff] %v7086_v23  ;;  %v7090_v55 = vpop.permute.xlu1 %2277  ;;  %v8720_v41 = vld [vmem:[#allocation21_spill] sm:$0xff]  ;;  %v8723_v36 = vld [vmem:[#allocation42_spill] sm:$0xff]  ;;  %v8724_v33 = vld [vmem:[#allocation135_spill] sm:$0xff] }
 0x431   : > { %v1641_v15 = vadd.f32 %v1633_v2, %v1593_v53  ;;  %v7084_v46 = vsel %vm775_vm12, %v6910_v5, %v8717_v28  ;;  %v1968_v54 = vmul.f32 %v8679_v59, %v7076_v27  ;;  %2260 = vrot.lane.b32.xlu1 %v5384_v1, %s3879_s13  ;;  %v8721_v35 = vld [vmem:[#allocation105_spill] sm:$0xff]  ;;  %vm8725_vm7 = vcmp.lt.s32.totalorder %v4553_v17, 127 }
 0x432   : > { %8718 = vst [vmem:[#allocation115_spill] sm:$0xff] %v7084_v46  ;;  %v1693_v0 = vadd.f32 %v1685_v26, %v1645_v18  ;;  %v1880_v3 = vadd.f32 %v1872_v12, %v1808_v4  ;;  %v1733_v19 = vmul.f32 %v8721_v35, %v8720_v41  ;;  %v8722_v2 = vld [vmem:[#allocation133_spill] sm:$0xff]  ;;  %v1729_v26 = vmul.f32 %v8613_v20, %v8723_v36 }
 0x433   : > { %v1689_v62 = vadd.f32 %v1681_v60, %v1641_v15  ;;  %v2040_v56 = vmul.f32 %v8722_v2, %v7084_v46  ;;  %v7104_v12 = vsel %vm8725_vm7, %v8697_v14, %v8724_v33  ;;  %vm8728_vm13 = vcmp.lt.s32.totalorder %v4553_v17, 126  ;;  %v8729_v23 = vld [vmem:[#allocation57_spill] sm:$0xff] }
 0x434   : > { %v1928_v24 = vadd.f32 %v1920_v61, %v1880_v3  ;;  %v1741_v53 = vadd.f32 %v1733_v19, %v1693_v0  ;;  %v7106_v18 = vpop.permute.xlu1 %2080  ;;  %v7108_v4 = vpop.permute.xlu0 %2061  ;;  %v8727_v61 = vld [vmem:[#allocation123_spill] sm:$0xff]  ;;  %v1801_v0 = vmul.f32 %v8642_v9, %v7104_v12  ;;  %vm8736_vm6 = vmmov %vm8728_vm13  ;;  %v8737_v35 = vld [vmem:[#allocation157_spill] sm:$0xff]  ;;  %vm8738_vm8 = vcmp.lt.s32.totalorder %v4553_v17, 110 }
 0x435   : > { %8726 = vst [vmem:[#allocation138_spill] sm:$0xff] %v7108_v4  ;;  %v1737_v15 = vadd.f32 %v1729_v26, %v1689_v62  ;;  %v1858_v3 = vsel %vm8728_vm13, %v8706_v25, %v8727_v61  ;;  %v7118_v20 = vsel %vm812_vm11, %v7106_v18, %v8729_v23  ;;  %v2070_v14 = vmul.f32 %v7108_v4, %v7003_v44  ;;  %v8731_v62 = vld [vmem:[#allocation75_spill] sm:$0xff]  ;;  %v8733_v26 = vld [vmem:[#allocation98_spill] sm:$0xff]  ;;  %v8734_v61 = vld [vmem:[#allocation137_spill] sm:$0xff] }
 0x436   : > { %v1976_v60 = vadd.f32 %v1968_v54, %v1928_v24  ;;  %8730 = vst [vmem:[#allocation140_spill] sm:$0xff] %v7118_v20  ;;  %2348 = vrot.lane.b32.xlu1 %v8723_v36, %s3885_s30  ;;  %v2112_v19 = vmul.f32 %v8731_v62, %v7118_v20  ;;  %v2071_v25 = vmul.f32 %v7108_v4, %v7008_v38  ;;  %v8732_v24 = vld [vmem:[#allocation74_spill] sm:$0xff]  ;;  %v8742_v38 = vld [vmem:[#allocation145_spill] sm:$0xff]  ;;  %vm8743_vm7 = vmmov %vm8738_vm8  ;;  %vm8748_vm13 = vcmp.lt.s32.totalorder %v4553_v17, 109 }
 0x437   : > { %v1805_v33 = vmul.f32 %v8733_v26, %v8732_v24  ;;  %v1859_v44 = vsel %vm8736_vm6, %v8735_v32, %v8734_v61  ;;  %v1906_v9 = vsel %vm8738_vm8, %v8711_v57, %v8737_v35  ;;  %v1873_v20 = vmul.f32 %v8650_v48, %v1858_v3  ;;  %v8745_v57 = vld [vmem:[#allocation34_spill] sm:$0xff]  ;;  %v8747_v3 = vld [vmem:[#allocation124_spill] sm:$0xff] }
 0x438   : > { %v2048_v54 = vadd.f32 %v2040_v56, %v1976_v60  ;;  %v8739_v56 = vld [vmem:[#allocation106_spill] sm:$0xff]  ;;  %v1907_v24 = vsel %vm8743_vm7, %v8742_v38, %v8741_v42  ;;  %v1698_v26 = vpop.permute.xlu1 %1697  ;;  %v7151_v61 = vadd.f32 %v2071_v25, %v8744_v7  ;;  %v1809_v48 = vadd.f32 %v1801_v0, %v1737_v15 }
 0x439   : > { %v7141_v60 = vadd.f32 %v2070_v14, %v8739_v56  ;;  %v1704_v32 = vmul.f32 %v1698_v26, %v6776_v43  ;;  %v1705_v46 = vmul.f32 %v1698_v26, %v1668_v52  ;;  %v1706_v35 = vmul.f32 %v1698_v26, %v8745_v57  ;;  %v8746_v14 = vld [vmem:[#allocation99_spill] sm:$0xff]  ;;  %v8756_v57 = vld [vmem:[#allocation108_spill] sm:$0xff] }
 0x43a   : > { %v7148_v4 = vadd.f32 %v2112_v19, %v2048_v54  ;;  %v1707_v56 = vmul.f32 %v1698_v26, %v8746_v14  ;;  %2398 = vrot.lane.b32.xlu1 %v8720_v41, %s3887_s7  ;;  %v1921_v42 = vmul.f32 %v8669_v49, %v1906_v9  ;;  %v7164_v7 = vsel %vm8748_vm13, %v8715_v30, %v8672_v39  ;;  %v8750_v30 = vld [vmem:[#allocation92_spill] sm:$0xff]  ;;  %v8759_v14 = vld [vmem:[#allocation159_spill] sm:$0xff] }
 0x43b   : > { %8740 = vst [vmem:[#allocation142_spill] sm:$0xff] %v7141_v60  ;;  %v1877_v60 = vmul.f32 %v8747_v3, %v1859_v44  ;;  %8749 = vst [vmem:[#allocation153_spill] sm:$0xff] %v7164_v7  ;;  %v7167_v43 = vadd.f32 %v1704_v32, %v6945_v21  ;;  %v7170_v52 = vadd.f32 %v1705_v46, %v6947_v40  ;;  %v8752_v46 = vld [vmem:[#allocation119_spill] sm:$0xff]  ;;  %vm8763_vm6 = vcmp.lt.s32.totalorder %v4553_v17, 106 }
 0x43c   : > { %v7173_v54 = vadd.f32 %v1706_v35, %v6949_v6  ;;  %v7176_v41 = vadd.f32 %v1707_v56, %v6951_v34  ;;  %v1813_v15 = vadd.f32 %v1805_v33, %v1741_v53  ;;  %v1881_v49 = vadd.f32 %v1873_v20, %v1809_v48  ;;  %v2021_v19 = vpop.permute.xlu1 %2020  ;;  %v8753_v20 = vld [vmem:[#allocation77_spill] sm:$0xff]  ;;  %v8757_v35 = vld [vmem:[#allocation156_spill] sm:$0xff]  ;;  %vm8765_vm8 = vmmov %vm8763_vm6 }
 0x43d   : > { %v1925_v0 = vmul.f32 %v8671_v47, %v1907_v24  ;;  %v1969_v39 = vmul.f32 %v8679_v59, %v7164_v7  ;;  %v7185_v21 = vsel %vm775_vm12, %v8717_v28, %v8750_v30  ;;  %v7190_v40 = vsel %vm775_vm12, %v8750_v30, %v2021_v19  ;;  %v8761_v48 = vld [vmem:[#allocation160_spill] sm:$0xff]  ;;  %vm8771_vm7 = vmmov %vm8763_vm6 }
 0x43e   : > { %8751 = vst [vmem:[#allocation120_spill] sm:$0xff] %v7185_v21  ;;  %v7195_v6 = vsel %vm775_vm12, %v2021_v19, %v6910_v5  ;;  %2344 = vrot.lane.b32.xlu1 %v5352_v31, %s3885_s30  ;;  %v1885_v34 = vadd.f32 %v1877_v60, %v1813_v15  ;;  %v2042_v59 = vmul.f32 %v8722_v2, %v7190_v40  ;;  %vm8776_vm13 = vmmov %vm8763_vm6 }
 0x43f   : > { %v2043_v32 = vmul.f32 %v8722_v2, %v7195_v6  ;;  %v1929_v28 = vadd.f32 %v1921_v42, %v1881_v49  ;;  %v1973_v53 = vmul.f32 %v8678_v50, %v8752_v46  ;;  %v7209_v5 = vsel %vm775_vm12, %v8753_v20, %v8689_v22 }
 0x440   : > { %8754 = vst [vmem:[#allocation62_spill] sm:$0xff] %v7209_v5  ;;  %v7215_v25 = vsel %vm812_vm11, %v8729_v23, %v7039_v29  ;;  %v1933_v26 = vadd.f32 %v1925_v0, %v1885_v34  ;;  %v2041_v33 = vmul.f32 %v8722_v2, %v7185_v21  ;;  %v2050_v44 = vadd.f32 %v2042_v59, %v6990_v11  ;;  %v2095_v60 = vpop.permute.xlu1 %2094  ;;  %v8760_v11 = vld [vmem:[#allocation71_spill] sm:$0xff]  ;;  %v8762_v0 = vld [vmem:[#allocation54_spill] sm:$0xff] }
 0x441   : > { %8755 = vst [vmem:[#allocation149_spill] sm:$0xff] %v7215_v25  ;;  %v2051_v9 = vadd.f32 %v2043_v32, %v6992_v10  ;;  %v1977_v24 = vadd.f32 %v1969_v39, %v1929_v28  ;;  %v7225_v22 = vsel %vm812_vm11, %v8757_v35, %v8756_v57  ;;  %v7230_v23 = vsel %vm812_vm11, %v8756_v57, %v2095_v60  ;;  %v8764_v28 = vld [vmem:[#allocation70_spill] sm:$0xff] }
 0x442   : > { %8758 = vst [vmem:[#allocation148_spill] sm:$0xff] %v7225_v22  ;;  %v7235_v2 = vsel %vm812_vm11, %v2095_v60, %v8759_v14  ;;  %2129 = vperm.xlu1 %3618, %v8760_v11   ;;  %v2045_v10 = vmul.f32 %v8691_v37, %v7209_v5  ;;  %v2113_v56 = vmul.f32 %v8731_v62, %v7215_v25  ;;  %v8768_v57 = vld [vmem:[#allocation158_spill] sm:$0xff] }
 0x443   : > { %v2118_v42 = vmul.f32 %v8761_v48, %v7230_v23  ;;  %v2119_v15 = vmul.f32 %v8761_v48, %v7235_v2  ;;  %v1981_v49 = vadd.f32 %v1973_v53, %v1933_v26  ;;  %v2171_v19 = vsel %vm8763_vm6, %v8762_v0, %v7069_v63  ;;  %v8766_v53 = vld [vmem:[#allocation36_spill] sm:$0xff] }
 0x444   : > { %v2049_v39 = vadd.f32 %v2041_v33, %v1977_v24  ;;  %v2117_v30 = vmul.f32 %v8761_v48, %v7225_v22  ;;  %v7254_v32 = vpop.permute.xlu1 %2160  ;;  %v8767_v33 = vld [vmem:[#allocation150_spill] sm:$0xff] }
 0x445   : > { %v2126_v34 = vadd.f32 %v2118_v42, %v7035_v13  ;;  %v2127_v59 = vadd.f32 %v2119_v15, %v7037_v58  ;;  %v2170_v46 = vsel %vm8765_vm8, %v8764_v28, %v7254_v32  ;;  %v2053_v26 = vadd.f32 %v2045_v10, %v1981_v49  ;;  %v8769_v58 = vld [vmem:[#allocation15_spill] sm:$0xff]  ;;  %vm8788_vm8 = vmmov %vm8763_vm6 }
 0x446   : > { %2358 = vrot.lane.b32.xlu1 %v8766_v53, %s3885_s30  ;;  %v2121_v60 = vadd.f32 %v2113_v56, %v2049_v39  ;;  %v2189_v24 = vmul.f32 %v8767_v33, %v2171_v19  ;;  %v2185_v11 = vmul.f32 %v8768_v57, %v2170_v46  ;;  %v8770_v53 = vld [vmem:[#allocation117_spill] sm:$0xff]  ;;  %v8144_v19 = vmov 0.0  }
 0x447   : > { %v2125_v22 = vadd.f32 %v2117_v30, %v2053_v26  ;;  %2527 = vmatprep.mubr.f32.mxu0 %v8144_v19  ;;  %2598 = vmatprep.mubr.f32.mxu1 %v8144_v19 }
 0x448   : > { %v2193_v13 = vadd.f32 %v2185_v11, %v2121_v60  ;;  %v7264_v42 = vpop.permute.xlu1 %2210 }
 0x449   : > { %v2219_v15 = vsel %vm874_vm10, %v8769_v58, %v7264_v42  ;;  %v2197_v25 = vadd.f32 %v2189_v24, %v2125_v22 }
 0x44a   : > { %2400 = vrot.lane.b32.xlu1 %v5400_v8, %s3887_s7  ;;  %v2237_v10 = vmul.f32 %v8770_v53, %v2219_v15 }
 0x44c   : > { %v2245_v56 = vadd.f32 %v2237_v10, %v2197_v25  ;;  %v7273_v49 = vpop.permute.xlu1 %2325 }
 0x44e   : > { %2356 = vrot.lane.b32.xlu1 %v5384_v1, %s3885_s30  ;;  %s3935_s30 = smov 96  }
 0x450   : > { %v2153_v39 = vpop.permute.xlu1 %2152 }
 0x451   : > { %v2172_v30 = vsel %vm8771_vm7, %v2153_v39, %v8764_v28  ;;  %vm8789_vm7 = vmmov %vm8763_vm6 }
 0x452   : > { %2404 = vrot.lane.b32.xlu1 %v5384_v1, %s3887_s7  ;;  %v2184_v25 = vmul.f32 %v8768_v57, %v2172_v30  ;;  %s3331_s7 = sshll.u32 %s3988_s19, 7  ;;  %s3941_s19 = smov [#allocation10]  }
 0x453   : > { %s7764_s10 = scalar_lea.hbm %s7806_s4, %s3331_s7  ;;  %s3760_s25 = sshll.u32 %s3941_s19, 4  ;;  %s3761_s25 = int_to_ptr.vmem [resolvable:$false] %s3760_s25 }
 0x454   : > { %v2192_v22 = vadd.f32 %v2184_v25, %v7148_v4  ;;  %v1746_v46 = vpop.permute.xlu1 %1745  ;;  %v8777_v25 = vld [vmem:[#allocation63_spill] sm:$0xff]  ;;  %s3762_s26 = scalar_lea.vmem %s3761_s25, 256 }
 0x455   : > { %v1752_v26 = vmul.f32 %v1746_v46, %v5352_v31  ;;  %v1753_v60 = vmul.f32 %v1746_v46, %v8723_v36  ;;  %v1754_v24 = vmul.f32 %v1746_v46, %v5400_v8  ;;  %v1755_v11 = vmul.f32 %v1746_v46, %v5384_v1 }
 0x456   : > { %v3934_v36 = vmov 72  }
 0x457   : > { %v1760_v15 = vadd.f32 %v1752_v26, %v7167_v43  ;;  %v1761_v28 = vadd.f32 %v1753_v60, %v7170_v52  ;;  %v1762_v10 = vadd.f32 %v1754_v24, %v7173_v54  ;;  %v1763_v19 = vadd.f32 %v1755_v11, %v7176_v41  ;;  %3619 = vset.pattern.permute.xlu1 %v3934_v36  ;;  %v8774_v43 = vld [vmem:[#allocation58_spill] sm:$0xff]  ;;  %v8778_v24 = vld [vmem:[#allocation80_spill] sm:$0xff]  ;;  %v8780_v36 = vld [vmem:[#allocation109_spill] sm:$0xff] }
 0x458   : > { %v2093_v30 = vpop.permute.xlu1 %2092  ;;  %2761 = vrot.lane.b32.xlu0 %v8774_v43, %s3935_s30  ;;  %v7309_v41 = vld [vmem:[#allocation7] sm:$0xff] }
 0x459   : > { %v7297_v4 = vsel %vm812_vm11, %v7039_v29, %v2093_v30  ;;  %v7302_v31 = vsel %vm812_vm11, %v2093_v30, %v7106_v18  ;;  %8775 = vst [vmem:[#allocation130_spill] sm:$0xff] %v7309_v41  ;;  %2750 = vperm.xlu1 %3619, %v7309_v41   ;;  %v8779_v30 = vld [vmem:[#allocation65_spill] sm:$0xff] }
 0x45a   : > { %8772 = vst [vmem:[#allocation104_spill] sm:$0xff] %v7297_v4  ;;  %8773 = vst [vmem:[#allocation155_spill] sm:$0xff] %v7302_v31  ;;  %v2114_v1 = vmul.f32 %v8731_v62, %v7297_v4  ;;  %v2115_v8 = vmul.f32 %v8731_v62, %v7302_v31 }
 0x45c   : > { %v2122_v52 = vadd.f32 %v2114_v1, %v2050_v44  ;;  %v2123_v54 = vadd.f32 %v2115_v8, %v2051_v9  ;;  %v2167_v29 = vpop.permute.xlu1 %2166 }
 0x45d   : > { %v2169_v18 = vsel %vm8776_vm13, %v7069_v63, %v2167_v29  ;;  %v2175_v62 = vsel %vm8763_vm6, %v2167_v29, %v8777_v25 }
 0x45e   : > { %v2190_v46 = vmul.f32 %v8767_v33, %v2169_v18  ;;  %v2191_v26 = vmul.f32 %v8767_v33, %v2175_v62 }
 0x460   : > { %v2198_v60 = vadd.f32 %v2190_v46, %v2126_v34  ;;  %v2199_v44 = vadd.f32 %v2191_v26, %v2127_v59  ;;  %v7320_v9 = vpop.permute.xlu1 %2208 }
 0x461   : > { %v2218_v11 = vsel %vm874_vm10, %v8778_v24, %v7320_v9 }
 0x462   : > { %v2233_v1 = vmul.f32 %v8779_v30, %v2218_v11 }
 0x464   : > { %v2241_v63 = vadd.f32 %v2233_v1, %v2193_v13  ;;  %v7327_v8 = vpop.permute.xlu1 %2258 }
 0x465   : > { %v2267_v43 = vsel %vm899_vm14, %v8780_v36, %v7327_v8 }
 0x466   : > { %v2285_v34 = vmul.f32 %v7090_v55, %v2267_v43  ;;  %v8783_v43 = vld [vmem:[#allocation96_spill] sm:$0xff] }
 0x468   : > { %v2293_v59 = vadd.f32 %v2285_v34, %v2245_v56  ;;  %v7334_v29 = vpop.permute.xlu1 %2373  ;;  %v8784_v34 = vld [vmem:[#allocation126_spill] sm:$0xff] }
 0x469   : > { %8781 = vst [vmem:[#allocation39_spill] sm:$0xff] %v7334_v29  ;;  %v8787_v29 = vld [vmem:[#allocation40_spill] sm:$0xff] }
 0x46c   : > { %v7336_v18 = vpop.permute.xlu1 %2200 }
 0x46d   : > { %v2220_v62 = vsel %vm874_vm10, %v7336_v18, %v8778_v24  ;;  %v8786_v24 = vld [vmem:[#allocation43_spill] sm:$0xff] }
 0x46e   : > { %v2232_v13 = vmul.f32 %v8779_v30, %v2220_v62 }
 0x470   : > { %v7343_v46 = vadd.f32 %v2232_v13, %v2192_v22  ;;  %v1818_v26 = vpop.permute.xlu1 %1817  ;;  %v1071_v22 = vsel %vm279_vm0, %v8787_v29, %v8786_v24  ;;  %v8797_v24 = vld [vmem:[#allocation56_spill] sm:$0xff]  ;;  %vm8814_vm0 = vcmp.lt.s32.totalorder %v4553_v17, 18 }
 0x471   : > { %v1824_v11 = vmul.f32 %v1818_v26, %v7027_v45  ;;  %v1825_v1 = vmul.f32 %v1818_v26, %v7104_v12  ;;  %v1826_v56 = vmul.f32 %v1818_v26, %v8783_v43  ;;  %v1827_v41 = vmul.f32 %v1818_v26, %v8784_v34 }
 0x472   : > { %8782 = vst [vmem:[#allocation25_spill] sm:$0xff] %v7343_v46  ;;  %v8811_v46 = vld [vmem:[#allocation18_spill] sm:$0xff] }
 0x473   : > { %v1832_v31 = vadd.f32 %v1824_v11, %v1760_v15  ;;  %v7349_v4 = vadd.f32 %v1825_v1, %v1761_v28  ;;  %v1834_v5 = vadd.f32 %v1826_v56, %v1762_v10  ;;  %v1835_v21 = vadd.f32 %v1827_v41, %v1763_v19  ;;  %v8790_v28 = vld [vmem:[#allocation28_spill] sm:$0xff]  ;;  %v8791_v10 = vld [vmem:[#allocation50_spill] sm:$0xff]  ;;  %v8794_v1 = vld [vmem:[#allocation51_spill] sm:$0xff] }
 0x474   : > { %v2165_v7 = vpop.permute.xlu1 %2164  ;;  %v1119_v19 = vsel %vm304_vm1, %v8791_v10, %v8790_v28  ;;  %v8792_v41 = vld [vmem:[#allocation32_spill] sm:$0xff]  ;;  %v8796_v56 = vld [vmem:[#allocation30_spill] sm:$0xff]  ;;  %vm8822_vm1 = vcmp.lt.s32.totalorder %v4553_v17, 2 }
 0x475   : > { %8785 = vst [vmem:[#allocation52_spill] sm:$0xff] %v7349_v4  ;;  %v2168_v45 = vsel %vm8788_vm8, %v7254_v32, %v2165_v7  ;;  %v2174_v12 = vsel %vm8789_vm7, %v2165_v7, %v2153_v39  ;;  %v1084_v13 = vmul.f32 %v8792_v41, %v1071_v22  ;;  %v8793_v32 = vld [vmem:[#allocation46_spill] sm:$0xff]  ;;  %v8795_v39 = vld [vmem:[#allocation89_spill] sm:$0xff]  ;;  %v1132_v34 = vmul.f32 %v8796_v56, %v1119_v19  ;;  %v8798_v22 = vld [vmem:[#allocation64_spill] sm:$0xff] }
 0x476   : > { %v2186_v62 = vmul.f32 %v8768_v57, %v2168_v45  ;;  %v2187_v15 = vmul.f32 %v8768_v57, %v2174_v12  ;;  %v1167_v7 = vsel %vm329_vm2, %v8794_v1, %v8793_v32  ;;  %v1215_v45 = vsel %vm354_vm3, %v8798_v22, %v8797_v24  ;;  %v8799_v12 = vld [vmem:[#allocation35_spill] sm:$0xff]  ;;  %v8801_v19 = vld [vmem:[#allocation53_spill] sm:$0xff]  ;;  %v8803_v1 = vld [vmem:[#allocation136_spill] sm:$0xff] }
 0x477   : > { %v8808_v22 = vld [vmem:[#allocation48_spill] sm:$0xff]  ;;  %vm8836_vm2 = vcmp.lt.s32.totalorder %v4553_v17, 126  ;;  %vm8839_vm3 = vcmp.lt.s32.totalorder %v4553_v17, 110  ;;  %vm2763_vm8 = vcmask 64512   ;;  %vm3938_vm7 = vmmov 0  }
 0x478   : > { %v7367_v26 = vadd.f32 %v2186_v62, %v2122_v52  ;;  %v7369_v29 = vadd.f32 %v2187_v15, %v2123_v54  ;;  %v2215_v11 = vpop.permute.xlu1 %2214  ;;  %v1092_v62 = vadd.f32 %v1084_v13, %v8799_v12  ;;  %v8800_v15 = vld [vmem:[#allocation41_spill] sm:$0xff]  ;;  %v8812_v4 = vld [vmem:[#allocation60_spill] sm:$0xff] }
 0x479   : > { %v2217_v57 = vsel %vm874_vm10, %v7264_v42, %v2215_v11  ;;  %v2223_v43 = vsel %vm874_vm10, %v2215_v11, %v8795_v39  ;;  %v1180_v28 = vmul.f32 %v8800_v15, %v1167_v7  ;;  %v8802_v11 = vld [vmem:[#allocation61_spill] sm:$0xff]  ;;  %v8805_v7 = vld [vmem:[#allocation82_spill] sm:$0xff] }
 0x47a   : > { %v2238_v52 = vmul.f32 %v8770_v53, %v2217_v57  ;;  %v2239_v54 = vmul.f32 %v8770_v53, %v2223_v43  ;;  %v1263_v32 = vsel %vm379_vm4, %v8802_v11, %v8801_v19  ;;  %v1140_v43 = vadd.f32 %v1132_v34, %v1092_v62  ;;  %v8804_v13 = vld [vmem:[#allocation49_spill] sm:$0xff]  ;;  %v8810_v62 = vld [vmem:[#allocation55_spill] sm:$0xff]  ;;  %vm8842_vm4 = vmmov %vm8763_vm6 }
 0x47b   : > { %v1228_v56 = vmul.f32 %v8804_v13, %v1215_v45  ;;  %v1276_v12 = vmul.f32 %v8808_v22, %v1263_v32  ;;  %v8817_v22 = vld [vmem:[#allocation72_spill] sm:$0xff] }
 0x47c   : > { %v7390_v42 = vadd.f32 %v2238_v52, %v2198_v60  ;;  %v7392_v10 = vadd.f32 %v2239_v54, %v2199_v44  ;;  %v7394_v41 = vpop.permute.xlu1 %2256  ;;  %v8806_v52 = vld [vmem:[#allocation31_spill] sm:$0xff]  ;;  %v8807_v44 = vld [vmem:[#allocation29_spill] sm:$0xff]  ;;  %v1188_v24 = vadd.f32 %v1180_v28, %v1140_v43 }
 0x47d   : > { %v2266_v57 = vsel %vm899_vm14, %v8803_v1, %v7394_v41  ;;  %v1311_v54 = vsel %vm404_vm5, %v8807_v44, %v8806_v52  ;;  %v1372_v1 = vmul.f32 %v8812_v4, %v8811_v46  ;;  %v8815_v44 = vld [vmem:[#allocation27_spill] sm:$0xff]  ;;  %v7434_v4 = vpop.permute.xlu0 %2057  ;;  %vm8848_vm5 = vcmp.lt.s32.totalorder %v4553_v17, 86 }
 0x47e   : > { %v2281_v60 = vmul.f32 %v8805_v7, %v2266_v57  ;;  %v1236_v34 = vadd.f32 %v1228_v56, %v1188_v24  ;;  %v1324_v45 = vmul.f32 %v8810_v62, %v1311_v54  ;;  %v8816_v54 = vld [vmem:[#allocation59_spill] sm:$0xff]  ;;  %vm8869_vm13 = vmmov %vm8848_vm5 }
 0x47f   : > { %v1444_v24 = vmul.f32 %v8816_v54, %v8815_v44  ;;  %vm8871_vm6 = vmmov %vm8848_vm5 }
 0x480   : > { %v7411_v15 = vadd.f32 %v2281_v60, %v2241_v63  ;;  %v2307_v19 = vpop.permute.xlu1 %2306  ;;  %v1284_v13 = vadd.f32 %v1276_v12, %v1236_v34  ;;  %v8813_v60 = vld [vmem:[#allocation97_spill] sm:$0xff] }
 0x481   : > { %v2315_v11 = vsel %vm924_vm15, %v6931_v51, %v2307_v19  ;;  %v1575_v56 = vsel %vm8814_vm0, %v8813_v60, %v8683_v16  ;;  %v8818_v12 = vld [vmem:[#allocation69_spill] sm:$0xff]  ;;  %v8824_v60 = vld [vmem:[#allocation128_spill] sm:$0xff]  ;;  %vm3189_vm0 = vcmp.lt.s32.totalorder %v4553_v17, 8 }
 0x482   : > { %8809 = vst [vmem:[#allocation24_spill] sm:$0xff] %v7411_v15  ;;  %v2333_v57 = vmul.f32 %v7273_v49, %v2315_v11  ;;  %v1332_v63 = vadd.f32 %v1324_v45, %v1284_v13  ;;  %v1516_v11 = vmul.f32 %v8818_v12, %v8817_v22  ;;  %v8821_v45 = vld [vmem:[#allocation90_spill] sm:$0xff] }
 0x483   : > { %v8823_v13 = vld [vmem:[#allocation110_spill] sm:$0xff] }
 0x484   : > { %v7420_v52 = vpop.permute.xlu1 %2421  ;;  %v7422_v28 = vadd.f32 %v2333_v57, %v2293_v59  ;;  %v1380_v32 = vadd.f32 %v1372_v1, %v1332_v63  ;;  %v8819_v59 = vld [vmem:[#allocation73_spill] sm:$0xff]  ;;  %v8820_v1 = vld [vmem:[#allocation86_spill] sm:$0xff] }
 0x485   : > { %v1588_v34 = vmul.f32 %v8819_v59, %v1575_v56  ;;  %v1623_v57 = vsel %vm8822_vm1, %v8821_v45, %v8820_v1  ;;  %v8826_v1 = vld [vmem:[#allocation19_spill] sm:$0xff] }
 0x486   : > { %v1452_v46 = vadd.f32 %v1444_v24, %v1380_v32  ;;  %v8825_v32 = vld [vmem:[#allocation115_spill] sm:$0xff]  ;;  %v2066_v24 = vmul.f32 %v7434_v4, %v7190_v40  ;;  %v1636_v45 = vmul.f32 %v8826_v1, %v1623_v57  ;;  %v8833_v1 = vld [vmem:[#allocation98_spill] sm:$0xff] }
 0x487   : > { %v2064_v56 = vmul.f32 %v7434_v4, %v8825_v32 }
 0x488   : > { %v7424_v43 = vpop.permute.xlu1 %2248  ;;  %v1524_v54 = vadd.f32 %v1516_v11, %v1452_v46 }
 0x48a   : > { %v1596_v15 = vadd.f32 %v1588_v34, %v1524_v54 }
 0x48c   : > { %v7437_v62 = vpop.permute.xlu1 %1985 }
 0x48d   : > { %v1992_v16 = vmul.f32 %v7437_v62, %v7076_v27  ;;  %v1994_v63 = vmul.f32 %v7437_v62, %v8823_v13  ;;  %v1995_v44 = vmul.f32 %v7437_v62, %v8824_v60  ;;  %v2067_v27 = vmul.f32 %v7434_v4, %v7195_v6 }
 0x48f   : > { %v2000_v22 = vadd.f32 %v1992_v16, %v1832_v31  ;;  %v2002_v12 = vadd.f32 %v1994_v63, %v1834_v5  ;;  %v2003_v59 = vadd.f32 %v1995_v44, %v1835_v21  ;;  %v8827_v21 = vld [vmem:[#allocation87_spill] sm:$0xff]  ;;  %v2311_v16 = vpop.permute.xlu0 %2310  ;;  %v1644_v63 = vadd.f32 %v1636_v45, %v1596_v15 }
 0x490   : > { %v2213_v13 = vpop.permute.xlu1 %2212  ;;  %v8828_v5 = vld [vmem:[#allocation95_spill] sm:$0xff]  ;;  %v2313_v54 = vsel %vm924_vm15, %v2307_v19, %v2311_v16  ;;  %v8834_v19 = vld [vmem:[#allocation116_spill] sm:$0xff] }
 0x491   : > { %v2216_v11 = vsel %vm874_vm10, %v7320_v9, %v2213_v13  ;;  %v2222_v46 = vsel %vm874_vm10, %v2213_v13, %v7336_v18  ;;  %v7462_v60 = vadd.f32 %v2064_v56, %v2000_v22  ;;  %v7464_v40 = vadd.f32 %v2066_v24, %v2002_v12  ;;  %v8829_v56 = vld [vmem:[#allocation100_spill] sm:$0xff] }
 0x492   : > { %v1684_v31 = vmul.f32 %v8828_v5, %v8827_v21  ;;  %v2234_v34 = vmul.f32 %v8779_v30, %v2216_v11  ;;  %v2235_v6 = vmul.f32 %v8779_v30, %v2222_v46  ;;  %v7470_v57 = vadd.f32 %v2067_v27, %v2003_v59  ;;  %v8830_v22 = vld [vmem:[#allocation44_spill] sm:$0xff]  ;;  %v8832_v59 = vld [vmem:[#allocation91_spill] sm:$0xff]  ;;  %v8835_v27 = vld [vmem:[#allocation141_spill] sm:$0xff] }
 0x493   : > { %v1804_v45 = vmul.f32 %v8833_v1, %v8832_v59  ;;  %v8837_v13 = vld [vmem:[#allocation88_spill] sm:$0xff]  ;;  %v2334_v21 = vmul.f32 %v7273_v49, %v2313_v54 }
 0x494   : > { %v2242_v9 = vadd.f32 %v2234_v34, %v7367_v26  ;;  %v7474_v44 = vadd.f32 %v2235_v6, %v7369_v29  ;;  %v2263_v18 = vpop.permute.xlu1 %2262  ;;  %v1692_v24 = vadd.f32 %v1684_v31, %v1644_v63  ;;  %v8831_v29 = vld [vmem:[#allocation105_spill] sm:$0xff]  ;;  %v2319_v11 = vsel %vm924_vm15, %v2311_v16, %v8837_v13  ;;  %v8838_v6 = vld [vmem:[#allocation151_spill] sm:$0xff] }
 0x495   : > { %v2265_v32 = vsel %vm899_vm14, %v7327_v8, %v2263_v18  ;;  %v2271_v30 = vsel %vm899_vm14, %v2263_v18, %v8829_v56  ;;  %v1732_v12 = vmul.f32 %v8831_v29, %v8830_v22  ;;  %v1861_v8 = vsel %vm8836_vm2, %v8835_v27, %v8834_v19  ;;  %v7507_v18 = vpop.permute.xlu0 %2352 }
 0x496   : > { %v2286_v15 = vmul.f32 %v7090_v55, %v2265_v32  ;;  %v2287_v26 = vmul.f32 %v7090_v55, %v2271_v30  ;;  %v2335_v46 = vmul.f32 %v7273_v49, %v2319_v11  ;;  %v1909_v63 = vsel %vm8839_vm3, %v8838_v6, %v8742_v38 }
 0x497   : > { %v1740_v32 = vadd.f32 %v1732_v12, %v1692_v24  ;;  %v1876_v16 = vmul.f32 %v8747_v3, %v1861_v8  ;;  %v8841_v3 = vld [vmem:[#allocation107_spill] sm:$0xff]  ;;  %v7534_v19 = vsel %vm812_vm11, %v8759_v14, %v8757_v35  ;;  %vm8862_vm11 = vmmov %vm8848_vm5 }
 0x498   : > { %v2294_v5 = vadd.f32 %v2286_v15, %v7390_v42  ;;  %v2295_v31 = vadd.f32 %v2287_v26, %v7392_v10  ;;  %v7501_v34 = vpop.permute.xlu1 %2304  ;;  %v1924_v42 = vmul.f32 %v8671_v47, %v1909_v63  ;;  %v8840_v26 = vld [vmem:[#allocation45_spill] sm:$0xff]  ;;  %v1972_v59 = vmul.f32 %v8678_v50, %v8841_v3 }
 0x499   : > { %v1812_v54 = vadd.f32 %v1804_v45, %v1740_v32  ;;  %v2029_v38 = vsel %vm775_vm12, %v8840_v26, %v8753_v20  ;;  %v7521_v29 = vpop.permute.xlu0 %2402  ;;  %v2116_v8 = vmul.f32 %v8761_v48, %v7534_v19  ;;  %v2173_v50 = vsel %vm8842_vm4, %v8777_v25, %v8762_v0  ;;  %vm8863_vm12 = vmmov %vm8848_vm5 }
 0x49a   : > { %v7510_v30 = vadd.f32 %v2335_v46, %v2295_v31  ;;  %v7512_v22 = vadd.f32 %v2334_v21, %v2294_v5  ;;  %v2044_v1 = vmul.f32 %v8691_v37, %v2029_v38  ;;  %v2221_v46 = vsel %vm874_vm10, %v8795_v39, %v8769_v58  ;;  %v8843_v21 = vld [vmem:[#allocation142_spill] sm:$0xff]  ;;  %vm8849_vm10 = vmmov %vm8848_vm5 }
 0x49b   : > { %v1884_v15 = vadd.f32 %v1876_v16, %v1812_v54  ;;  %v2188_v0 = vmul.f32 %v8767_v33, %v2173_v50  ;;  %v2317_v33 = vsel %vm924_vm15, %v8837_v13, %v6931_v51  ;;  %v8845_v51 = vld [vmem:[#allocation39_spill] sm:$0xff] }
 0x49c   : > { %v7515_v10 = vpop.permute.xlu1 %2354 }
 0x49d   : > { %v1932_v24 = vadd.f32 %v1924_v42, %v1884_v15  ;;  %v7536_v20 = vpop.permute.xlu0 %2394  ;;  %v8846_v15 = vld [vmem:[#allocation153_spill] sm:$0xff] }
 0x49e   : > { %v1993_v26 = vmul.f32 %v7437_v62, %v8846_v15 }
 0x49f   : > { %v1980_v45 = vadd.f32 %v1972_v59, %v1932_v24  ;;  %v8847_v59 = vld [vmem:[#allocation136_spill] sm:$0xff] }
 0x4a0   : > { %v7523_v12 = vpop.permute.xlu1 %2296 }
 0x4a1   : > { %v2052_v27 = vadd.f32 %v2044_v1, %v1980_v45  ;;  %v7554_v48 = vpop.permute.xlu0 %2308 }
 0x4a3   : > { %v2124_v14 = vadd.f32 %v2116_v8, %v2052_v27 }
 0x4a4   : > { %v7528_v47 = vpop.permute.xlu1 %2346 }
 0x4a5   : > { %v2196_v39 = vadd.f32 %v2188_v0, %v2124_v14  ;;  %v7588_v16 = vpop.permute.xlu0 %2396 }
 0x4a8   : > { %v7540_v11 = vpop.permute.xlu1 %2133 }
 0x4a9   : > { %v2142_v37 = vmul.f32 %v7540_v11, %v7230_v23  ;;  %v2143_v35 = vmul.f32 %v7540_v11, %v7235_v2  ;;  %v2236_v23 = vmul.f32 %v8770_v53, %v2221_v46  ;;  %v2269_v2 = vsel %vm899_vm14, %v8829_v56, %v8780_v36  ;;  %v8844_v53 = vld [vmem:[#allocation102_spill] sm:$0xff]  ;;  %v7607_v50 = vpop.permute.xlu0 %2392 }
 0x4aa   : > { %v2284_v6 = vmul.f32 %v7090_v55, %v2269_v2  ;;  %v2363_v63 = vsel %vm949_vm9, %v8844_v53, %v7515_v10  ;;  %v2365_v36 = vsel %vm949_vm9, %v7528_v47, %v8844_v53  ;;  %v2332_v55 = vmul.f32 %v7273_v49, %v2317_v33 }
 0x4ab   : > { %v7557_v5 = vadd.f32 %v2142_v37, %v8843_v21  ;;  %v7560_v31 = vadd.f32 %v2143_v35, %v7151_v61  ;;  %v2381_v13 = vmul.f32 %v8845_v51, %v2363_v63  ;;  %v2380_v42 = vmul.f32 %v8845_v51, %v2365_v36  ;;  %v8850_v35 = vld [vmem:[#allocation52_spill] sm:$0xff]  ;;  %v8854_v36 = vld [vmem:[#allocation62_spill] sm:$0xff] }
 0x4ac   : > { %v2261_v25 = vpop.permute.xlu1 %2260  ;;  %v2268_v49 = vsel %vm899_vm14, %v7424_v43, %v8847_v59  ;;  %v2001_v14 = vadd.f32 %v1993_v26, %v8850_v35  ;;  %v8857_v26 = vld [vmem:[#allocation140_spill] sm:$0xff] }
 0x4ad   : > { %v2264_v58 = vsel %vm899_vm14, %v7394_v41, %v2261_v25  ;;  %v2244_v41 = vadd.f32 %v2236_v23, %v2196_v39  ;;  %v2389_v27 = vadd.f32 %v2381_v13, %v7422_v28  ;;  %v2280_v37 = vmul.f32 %v8805_v7, %v2268_v49  ;;  %v8851_v23 = vld [vmem:[#allocation132_spill] sm:$0xff]  ;;  %v8856_v13 = vld [vmem:[#allocation81_spill] sm:$0xff] }
 0x4ae   : > { %v2282_v61 = vmul.f32 %v8805_v7, %v2264_v58  ;;  %v2316_v2 = vsel %vm924_vm15, %v7523_v12, %v8851_v23  ;;  %v8852_v58 = vld [vmem:[#allocation120_spill] sm:$0xff]  ;;  %v2314_v53 = vsel %vm924_vm15, %v8851_v23, %v7501_v34 }
 0x4af   : > { %v2292_v54 = vadd.f32 %v2284_v6, %v2244_v41  ;;  %v2065_v28 = vmul.f32 %v7434_v4, %v8852_v58  ;;  %v2328_v4 = vmul.f32 %v8856_v13, %v2316_v2  ;;  %v8859_v49 = vld [vmem:[#allocation104_spill] sm:$0xff] }
 0x4b0   : > { %v7586_v56 = vadd.f32 %v2282_v61, %v2242_v9  ;;  %v2349_v32 = vpop.permute.xlu1 %2348  ;;  %v8853_v61 = vld [vmem:[#allocation138_spill] sm:$0xff] }
 0x4b1   : > { %v2340_v3 = vadd.f32 %v2332_v55, %v2292_v54  ;;  %v2068_v33 = vmul.f32 %v8853_v61, %v2029_v38  ;;  %v2069_v41 = vmul.f32 %v8853_v61, %v8854_v36  ;;  %v8855_v55 = vld [vmem:[#allocation25_spill] sm:$0xff]  ;;  %v2073_v15 = vadd.f32 %v2065_v28, %v2001_v14  ;;  %v2407_v38 = vpop.permute.xlu0 %2406 }
 0x4b2   : > { %v2288_v54 = vadd.f32 %v2280_v37, %v8855_v55  ;;  %v8861_v37 = vld [vmem:[#allocation121_spill] sm:$0xff] }
 0x4b3   : > { %v2388_v8 = vadd.f32 %v2380_v42, %v2340_v3  ;;  %v8858_v3 = vld [vmem:[#allocation149_spill] sm:$0xff] }
 0x4b4   : > { %v2399_v24 = vpop.permute.xlu1 %2398  ;;  %v2336_v58 = vadd.f32 %v2328_v4, %v2288_v54 }
 0x4b5   : > { %v2411_v9 = vsel %vm8848_vm5, %v2399_v24, %v7521_v29  ;;  %v2413_v1 = vsel %vm8849_vm10, %v7536_v20, %v2399_v24 }
 0x4b6   : > { %v2428_v45 = vmul.f32 %v7420_v52, %v2413_v1  ;;  %v2429_v62 = vmul.f32 %v7420_v52, %v2411_v9  ;;  %v8860_v1 = vld [vmem:[#allocation155_spill] sm:$0xff] }
 0x4b8   : > { %v7611_v46 = vpop.permute.xlu1 %2344  ;;  %v2437_v21 = vadd.f32 %v2429_v62, %v2389_v27  ;;  %v2436_v0 = vadd.f32 %v2428_v45, %v2388_v8  ;;  %v2329_v27 = vmul.f32 %v8856_v13, %v2314_v53  ;;  %v2270_v62 = vsel %vm899_vm14, %v2261_v25, %v7424_v43  ;;  %vm8864_vm14 = vmmov %vm8848_vm5  ;;  %v8866_v53 = vld [vmem:[#allocation24_spill] sm:$0xff] }
 0x4b9   : > { %v2364_v63 = vsel %vm949_vm9, %v7611_v46, %v2349_v32  ;;  %v2362_v8 = vsel %vm949_vm9, %v2349_v32, %v7507_v18  ;;  %v2412_v43 = vsel %vm8862_vm11, %v7607_v50, %v7588_v16  ;;  %v2409_v25 = vsel %vm8863_vm12, %v7521_v29, %v2407_v38  ;;  %v8865_v32 = vld [vmem:[#allocation78_spill] sm:$0xff] }
 0x4ba   : > { %v2454_v39 = vmax.f32 %v2437_v21, 0.0  ;;  %v2453_v6 = vmax.f32 %v2436_v0, 0.0  ;;  %v2376_v35 = vmul.f32 %v8861_v37, %v2364_v63  ;;  %v2077_v2 = vadd.f32 %v2069_v41, %v8865_v32  ;;  %v8867_v41 = vld [vmem:[#allocation148_spill] sm:$0xff] }
 0x4bb   : > { %v2377_v29 = vmul.f32 %v8861_v37, %v2362_v8  ;;  %v2337_v63 = vadd.f32 %v2329_v27, %v8866_v53  ;;  %v2430_v36 = vmul.f32 %v7420_v52, %v2409_v25 }
 0x4bc   : > { %2491 = vmatprep.subr.mxu0 %v2454_v39 }
 0x4bd   : > { %v2130_v42 = vpop.permute.xlu1 %2129  ;;  %2492 = vmatpush1.msra.mxu0 %v2453_v6 }
 0x4be   : > { %v2136_v24 = vmul.f32 %v2130_v42, %v8857_v26  ;;  %v2137_v59 = vmul.f32 %v2130_v42, %v8858_v3  ;;  %v2138_v9 = vmul.f32 %v2130_v42, %v8859_v49  ;;  %v2139_v45 = vmul.f32 %v2130_v42, %v8860_v1  ;;  %v8868_v42 = vld [vmem:[#allocation131_spill] sm:$0xff]  ;;  %v8870_v3 = vld [vmem:[#allocation113_spill] sm:$0xff] }
 0x4c0   : > { %v7644_v14 = vadd.f32 %v2136_v24, %v7462_v60  ;;  %v7647_v21 = vadd.f32 %v2138_v9, %v7464_v40  ;;  %v7649_v0 = vadd.f32 %v2137_v59, %v2073_v15  ;;  %v7652_v23 = vadd.f32 %v2139_v45, %v7470_v57 }
 0x4c1   : > { %v2415_v60 = vsel %vm8864_vm14, %v2407_v38, %v7536_v20  ;;  %v2359_v40 = vpop.permute.xlu1 %2358  ;;  %v2283_v57 = vmul.f32 %v8805_v7, %v2270_v62  ;;  %v2312_v7 = vsel %vm924_vm15, %v7501_v34, %v7554_v48  ;;  %v2424_v34 = vmul.f32 %v8868_v42, %v2412_v43  ;;  %v2459_v43 = vpop.permute.xlu0 %2458 }
 0x4c2   : > { %v2361_v28 = vsel %vm949_vm9, %v7515_v10, %v2359_v40  ;;  %v2367_v39 = vsel %vm949_vm9, %v2359_v40, %v7528_v47  ;;  %v2431_v61 = vmul.f32 %v7420_v52, %v2415_v60  ;;  %v2384_v10 = vadd.f32 %v2376_v35, %v2336_v58 }
 0x4c3   : > { %v2382_v6 = vmul.f32 %v8845_v51, %v2361_v28  ;;  %v2383_v20 = vmul.f32 %v8845_v51, %v2367_v39  ;;  %v2318_v47 = vsel %vm924_vm15, %v7554_v48, %v7523_v12  ;;  %v2141_v51 = vmul.f32 %v7540_v11, %v8867_v41 }
 0x4c4   : > { %v2140_v15 = vmul.f32 %v7540_v11, %v7534_v19  ;;  %v2291_v52 = vadd.f32 %v2283_v57, %v7474_v44  ;;  %v2385_v12 = vadd.f32 %v2377_v29, %v2337_v63  ;;  %v2331_v59 = vmul.f32 %v8856_v13, %v2318_v47 }
 0x4c5   : > { %v2401_v55 = vpop.permute.xlu1 %2400  ;;  %v2391_v54 = vadd.f32 %v2383_v20, %v7510_v30  ;;  %v2390_v4 = vadd.f32 %v2382_v6, %v7512_v22  ;;  %v2076_v30 = vadd.f32 %v2068_v33, %v8870_v3  ;;  %v2330_v22 = vmul.f32 %v8856_v13, %v2312_v7  ;;  %v3648_v3 = vld [vmem:[%s4097_s20 + $0x18] sm:$0xff] }
 0x4c6   : > { %v2410_v38 = vsel %vm8869_vm13, %v7588_v16, %v2401_v55  ;;  %v2432_v49 = vadd.f32 %v2424_v34, %v2384_v10  ;;  %v2149_v1 = vadd.f32 %v2141_v51, %v2077_v2  ;;  %v2339_v62 = vadd.f32 %v2331_v59, %v2291_v52 }
 0x4c7   : > { %v2425_v48 = vmul.f32 %v8868_v42, %v2410_v38  ;;  %v2439_v26 = vadd.f32 %v2431_v61, %v2391_v54  ;;  %v2438_v24 = vadd.f32 %v2430_v36, %v2390_v4  ;;  %v2148_v45 = vadd.f32 %v2140_v15, %v2076_v30  ;;  %v3646_v54 = vld [vmem:[%s4097_s20 + $0x8] sm:$0xff]  ;;  %v3647_v15 = vld [vmem:[%s4097_s20] sm:$0xff] }
 0x4c8   : > { %v2338_v16 = vadd.f32 %v2330_v22, %v7586_v56  ;;  %v2449_v25 = vmax.f32 %v2432_v49, 0.0  ;;  %vm2460_vm15 = vcmask 130048   ;;  %v2442_v57 = vmax.f32 %v7649_v0, 0.0  ;;  %v3649_v22 = vld [vmem:[%s4097_s20 + $0x10] sm:$0xff]  ;;  %s3939_s20 = smov 53  }
 0x4c9   : > { %v2357_v9 = vpop.permute.xlu1 %2356  ;;  %v2456_v19 = vmax.f32 %v2439_v26, 0.0  ;;  %v2455_v11 = vmax.f32 %v2438_v24, 0.0  ;;  %v2433_v44 = vadd.f32 %v2425_v48, %v2385_v12  ;;  %v2441_v28 = vmax.f32 %v7644_v14, 0.0 }
 0x4ca   : > { %v2360_v27 = vsel %vm949_vm9, %v7507_v18, %v2357_v9  ;;  %v2366_v33 = vsel %vm949_vm9, %v2357_v9, %v7611_v46  ;;  %v2446_v18 = vmax.f32 %v2149_v1, 0.0  ;;  %vm8872_vm9 = vmmov %vm8848_vm5  ;;  %v8873_v39 = vmov 0.0   ;;  %v2762_v34 = vpop.permute.xlu0 %2761 }
 0x4cb   : > { %v2378_v13 = vmul.f32 %v8861_v37, %v2360_v27  ;;  %v2379_v8 = vmul.f32 %v8861_v37, %v2366_v33  ;;  %2562 = vmatprep.subr.mxu1 %v2456_v19  ;;  %v2450_v35 = vmax.f32 %v2433_v44, 0.0  ;;  %v2445_v37 = vmax.f32 %v2148_v45, 0.0  ;;  %v8874_v19 = vld [vmem:[#allocation130_spill] sm:$0xff] }
 0x4cc   : > { %2563 = vmatpush1.msra.mxu1 %v2455_v11  ;;  %v2448_v0 = vmax.f32 %v7560_v31, 0.0  ;;  %v2447_v14 = vmax.f32 %v7557_v5, 0.0  ;;  %v2444_v7 = vmax.f32 %v7652_v23, 0.0  ;;  %v2443_v53 = vmax.f32 %v7647_v21, 0.0 }
 0x4cd   : > { %v2386_v56 = vadd.f32 %v2378_v13, %v2338_v16  ;;  %v2387_v60 = vadd.f32 %v2379_v8, %v2339_v62  ;;  %2493 = vmatprep.subr.mxu0 %v2450_v35  ;;  %v2405_v40 = vpop.permute.xlu1 %2404  ;;  %v3936_v49 = vmov 73   ;;  %v3937_v9 = vmov 74  }
 0x4ce   : > { %v2408_v32 = vsel %vm8871_vm6, %v2401_v55, %v2405_v40  ;;  %v2414_v46 = vsel %vm8872_vm9, %v2405_v40, %v7607_v50  ;;  %2494 = vmatpush1.msra.mxu0 %v2449_v25  ;;  %v7721_v50 = vld [vmem:[#allocation8] sm:$0xff]  ;;  %3620 = vset.pattern.permute.xlu1 %v3936_v49 }
 0x4cf   : > { %v2426_v2 = vmul.f32 %v8868_v42, %v2408_v32  ;;  %v2427_v58 = vmul.f32 %v8868_v42, %v2414_v46  ;;  %3320 = vmatmul.mubr.msk.f32.vlgmr.msra.gmra.mxu0 %vm2460_vm15, %v2459_v43  ;;  %2635 = vmatprep.subr.mxu0 %v2446_v18 }
 0x4d0   : > { %2636 = vmatpush1.msra.mxu0 %v2445_v37  ;;  %2671 = vmatprep.mubr.f32.mxu0 %v8873_v39 }
 0x4d1   : > { %2637 = vmatprep.subr.mxu0 %v2442_v57  ;;  %v2435_v29 = vadd.f32 %v2427_v58, %v2387_v60  ;;  %v2434_v6 = vadd.f32 %v2426_v2, %v2386_v56  ;;  %3621 = vset.pattern.permute.xlu0 %v3937_v9 }
 0x4d2   : > { %2638 = vmatpush1.msra.mxu0 %v2441_v28  ;;  %3067 = vperm.xlu1 %3620, %v8874_v19  }
 0x4d3   : > { %3322 = vmatmul.mubr.msk.f32.vlgmr.msra.gmra.mxu0 %vm2460_vm15, %v7721_v50  ;;  %v2452_v20 = vmax.f32 %v2435_v29, 0.0  ;;  %v2451_v61 = vmax.f32 %v2434_v6, 0.0  ;;  %3075 = vperm.xlu0 %3621, %v8874_v19  }
 0x4d4   : > { %2830 = vmatprep.mubr.f32.mxu0 %v8873_v39  ;;  %v2751_v36 = vpop.permute.xlu1 %2750 }
 0x4d5   : > { %2564 = vmatprep.subr.mxu1 %v2452_v20 }
 0x4d6   : > { %2565 = vmatpush1.msra.mxu1 %v2451_v61 }
 0x4d7   : > { %3321 = vmatmul.mubr.msk.f32.vlgmr.msra.gmra.mxu1 %vm2460_vm15, %v2459_v43  ;;  %2706 = vmatprep.subr.mxu1 %v2448_v0 }
 0x4d8   : > { %2707 = vmatpush1.msra.mxu1 %v2447_v14  ;;  %2742 = vmatprep.mubr.f32.mxu1 %v8873_v39 }
 0x4d9   : > { %2708 = vmatprep.subr.mxu1 %v2444_v7 }
 0x4da   : > { %2709 = vmatpush1.msra.mxu1 %v2443_v53 }
 0x4db   : > { %3323 = vmatmul.mubr.msk.f32.vlgmr.msra.gmra.mxu1 %vm2460_vm15, %v7721_v50 }
 0x4dc   : > { %2901 = vmatprep.mubr.f32.mxu1 %v8873_v39 }
 0x54d   : > { %v3068_v58 = vpop.permute.xlu1 %3067 }
 0x54e   : > { %v3076_v20 = vpop.permute.xlu0 %3075 }
 0x58f   : > { %v2529_v5 = vpop.f32.mrf.mxu0 }
 0x591   : > { %v2531_v31 = vpop.f32.mrf.mxu0 }
 0x593   : > { %v2673_v63 = vpop.f32.mrf.mxu0 }
 0x594   : > { %v2674_v10 = vadd.f32 %v2673_v63, %v2529_v5 }
 0x595   : > { %v2675_v23 = vpop.f32.mrf.mxu0 }
 0x596   : > { %v2676_v47 = vadd.f32 %v2675_v23, %v2531_v31  ;;  %v2753_v41 = vadd.f32 %v2751_v36, %v2674_v10 }
 0x597   : > { %v2600_v21 = vpop.f32.mrf.mxu1 }
 0x598   : > { %v2754_v51 = vadd.f32 %v2751_v36, %v2676_v47  ;;  %v2757_v52 = vadd.f32 %v3647_v15, %v2753_v41  ;;  %v8875_v41 = vld [vmem:[#allocation67_spill] sm:$0xff] }
 0x599   : > { %v2602_v55 = vpop.f32.mrf.mxu1 }
 0x59a   : > { %v2758_v4 = vadd.f32 %v3646_v54, %v2754_v51  ;;  %v8876_v54 = vld [vmem:[#allocation66_spill] sm:$0xff] }
 0x59b   : > { %v2744_v42 = vpop.f32.mrf.mxu1 }
 0x59c   : > { %v2745_v38 = vadd.f32 %v2744_v42, %v2600_v21  ;;  %2796 = vmatprep.subr.mxu0 %v2758_v4 }
 0x59d   : > { %v2746_v12 = vpop.f32.mrf.mxu1  ;;  %2797 = vmatpush1.msra.mxu0 %v2757_v52 }
 0x59e   : > { %v2747_v48 = vadd.f32 %v2746_v12, %v2602_v55  ;;  %3324 = vmatmul.mubr.msk.f32.vlgmr.msra.gmra.mxu0 %vm2763_vm8, %v2762_v34  ;;  %v2755_v26 = vadd.f32 %v2751_v36, %v2745_v38  ;;  %v8878_v38 = vld [vmem:[#allocation38_spill] sm:$0xff] }
 0x59f   : > { %2980 = vmatprep.mubr.f32.mxu0 %v8873_v39 }
 0x5a0   : > { %v2756_v24 = vadd.f32 %v2751_v36, %v2747_v48  ;;  %v2759_v59 = vadd.f32 %v3649_v22, %v2755_v26 }
 0x5a2   : > { %v2760_v30 = vadd.f32 %v3648_v3, %v2756_v24 }
 0x5a4   : > { %2867 = vmatprep.subr.mxu1 %v2760_v30 }
 0x5a5   : > { %2868 = vmatpush1.msra.mxu1 %v2759_v59 }
 0x5a6   : > { %3325 = vmatmul.mubr.msk.f32.vlgmr.msra.gmra.mxu1 %vm2763_vm8, %v2762_v34 }
 0x5a7   : > { %3051 = vmatprep.mubr.f32.mxu1 %v8873_v39 }
 0x65e   : > { %v2832_v11 = vpop.f32.mrf.mxu0 }
 0x65f   : > { %v2908_v44 = vsub.f32 %v2757_v52, %v2832_v11 }
 0x660   : > { %v2834_v1 = vpop.f32.mrf.mxu0 }
 0x661   : > { %v2909_v45 = vsub.f32 %v2758_v4, %v2834_v1  ;;  %v2912_v27 = vmul.f32 %v2908_v44, %v2908_v44 }
 0x663   : > { %v2913_v16 = vmul.f32 %v2909_v45, %v2909_v45 }
 0x665   : > { %2946 = vmatprep.subr.mxu0 %v2913_v16 }
 0x666   : > { %v2903_v33 = vpop.f32.mrf.mxu1  ;;  %2947 = vmatpush1.msra.mxu0 %v2912_v27 }
 0x667   : > { %3326 = vmatmul.mubr.msk.f32.vlgmr.msra.gmra.mxu0 %vm2763_vm8, %v2762_v34  ;;  %3337 = vmatprep.subr.mxu0 %v8873_v39  ;;  %v2910_v62 = vsub.f32 %v2759_v59, %v2903_v33 }
 0x668   : > { %v2905_v13 = vpop.f32.mrf.mxu1  ;;  %3339 = vmatprep.mubr.msk.f32.mxu0 %vm3938_vm7, %v8873_v39 }
 0x669   : > { %v2911_v8 = vsub.f32 %v2760_v30, %v2905_v13  ;;  %v2914_v43 = vmul.f32 %v2910_v62, %v2910_v62 }
 0x66b   : > { %v2915_v35 = vmul.f32 %v2911_v8, %v2911_v8 }
 0x66d   : > { %3017 = vmatprep.subr.mxu1 %v2915_v35 }
 0x66e   : > { %3018 = vmatpush1.msra.mxu1 %v2914_v43 }
 0x66f   : > { %3327 = vmatmul.mubr.msk.f32.vlgmr.msra.gmra.mxu1 %vm2763_vm8, %v2762_v34  ;;  %v8877_v34 = vld [vmem:[#allocation26_spill] sm:$0xff] }
 0x727   : > { %v2982_v25 = vpop.f32.mrf.mxu0 }
 0x728   : > { %v2983_v56 = vadd.f32 1e-05, %v2982_v25 }
 0x729   : > { %v2984_v60 = vpop.f32.mrf.mxu0 }
 0x72a   : > { %3622 = vrsqrt.f32 %v2983_v56  ;;  %v2985_v40 = vadd.f32 1e-05, %v2984_v60 }
 0x72c   : > { %3624 = vrsqrt.f32 %v2985_v40 }
 0x72f   : > { %v3053_v18 = vpop.f32.mrf.mxu1 }
 0x730   : > { %v3054_v32 = vadd.f32 1e-05, %v3053_v18 }
 0x731   : > { %v3055_v46 = vpop.f32.mrf.mxu1 }
 0x732   : > { %3626 = vrsqrt.f32 %v3054_v32  ;;  %v3056_v37 = vadd.f32 1e-05, %v3055_v46 }
 0x734   : > { %3628 = vrsqrt.f32 %v3056_v37 }
 0x737   : > { %v3623_v2 = vpop.eup %3622 }
 0x738   : > { %v3062_v57 = vmul.f32 %v3623_v2, %v2908_v44 }
 0x739   : > { %v3625_v28 = vpop.eup %3624 }
 0x73a   : > { %v3063_v29 = vmul.f32 %v3625_v28, %v2909_v45  ;;  %v3070_v6 = vmul.f32 %v3068_v58, %v3062_v57 }
 0x73c   : > { %v3071_v61 = vmul.f32 %v3068_v58, %v3063_v29  ;;  %v3078_v0 = vadd.f32 %v3076_v20, %v3070_v6 }
 0x73e   : > { %v3079_v14 = vadd.f32 %v3076_v20, %v3071_v61  ;;  %v3082_v36 = vmax.f32 %v3078_v0, 0.0 }
 0x73f   : > { %v3627_v7 = vpop.eup %3626 }
 0x740   : > { %v3064_v53 = vmul.f32 %v3627_v7, %v2910_v62  ;;  %v3083_v5 = vmax.f32 %v3079_v14, 0.0  ;;  %v3086_v4 = vmul.f32 %v3082_v36, %v8876_v54 }
 0x741   : > { %v3629_v31 = vpop.eup %3628 }
 0x742   : > { %v3065_v63 = vmul.f32 %v3629_v31, %v2911_v8  ;;  %v3072_v10 = vmul.f32 %v3068_v58, %v3064_v53  ;;  %v3087_v21 = vmul.f32 %v3083_v5, %v8875_v41 }
 0x744   : > { %v3073_v23 = vmul.f32 %v3068_v58, %v3065_v63  ;;  %v3080_v47 = vadd.f32 %v3076_v20, %v3072_v10  ;;  %v3090_v52 = vadd.f32 %v3087_v21, %v3086_v4 }
 0x746   : > { %v3081_v51 = vadd.f32 %v3076_v20, %v3073_v23  ;;  %v3084_v55 = vmax.f32 %v3080_v47, 0.0 }
 0x748   : > { %v3085_v42 = vmax.f32 %v3081_v51, 0.0  ;;  %v3088_v15 = vmul.f32 %v3084_v55, %v8877_v34 }
 0x74a   : > { %v3089_v12 = vmul.f32 %v3085_v42, %v8878_v38  ;;  %v3091_v48 = vadd.f32 %v3090_v52, %v3088_v15 }
 0x74c   : > { %v3092_v26 = vadd.f32 %v3091_v48, %v3089_v12 }
 0x74e   : > { %3093 = vadd.xlane.f32.xlu1 %v3092_v26 }
 0x7d7   : > { %v3094_v24 = vpop.xlane.xlu1 %3093 }
 0x7d8   : > { %v3095_v3 = vmul.f32 0.00390625, %v3094_v24 }
 0x7da   : > { %v3096_v30 = vmul.f32 %v8874_v19, %v3095_v3 }
 0x7dc   : > { %3100 = vrot.lane.b32.xlu0 %v3096_v30, %s3939_s20 }
 0x7e0   : > { %3097 = vrot.lane.b32.xlu0 %v7721_v50, %s3882_s29  ;;  %s3319_s29 = sshll.u32 %s4093_s9, 3 }
 0x7e1   : > { %s253_s13 = scalar_lea.vmem [#allocation10], %s3319_s29 }
 0x7e2   : > { %s3206_s14 = sshll.u32 %s253_s13, 4  ;;  %s3207_s14 = int_to_ptr.vmem [resolvable:$true] %s3206_s14 }
 0x7e3   : > { %s3756_s12 = scalar_lea.vmem %s3207_s14, 128  ;;  %p3763_p13 = scmp.lt.s32.totalorder %s3207_s14, %s3761_s25 }
 0x7e4   : > { %3103 = vrot.lane.b32.xlu0 %v8874_v19, %s3940_s6  ;;  %p3757_p8 = scmp.ne.s32.totalorder %s3207_s14, %s3756_s12  ;;  %p3764_p0 = scmp.lt.s32.totalorder %s3762_s26, %s3756_s12 }
 0x7e6   : > { %p3758_p7 = pnand %p3757_p8, %p8879_p12  ;;  %p3765_p1 = por %p3764_p0, %p3763_p13 }
 0x7e8   : > { %p3759_p10 = pneg %p3758_p7 }
 0x7ea   : > { %p3766_p3 = pnand %p3765_p1, %p3759_p10 }
 0x84e   : > { %v3101_v22 = vpop.permute.xlu0 %3100 }
 0x84f   : > { %3338 = vmatpush3.msra.mxu0 %v3101_v22 }
 0x852   : > { %v3098_v59 = vpop.permute.xlu0 %3097 }
 0x853   : > { %3340 = vmatmul.mubr.msk.f32.vlgmr.msra.gmra.mxu0 %vm2763_vm8, %v3098_v59 }
 0x856   : > { %v3104_v39 = vpop.permute.xlu0 %3103 }
 0x913   : > { %v3174_v49 = vpop.f32.mrf.mxu0 }
 0x914   : > { %v3175_v9 = vadd.f32 %v3174_v49, %v3104_v39 }
 0x915   : > { %v3341_v11 = vpop.f32.mrf.mxu0 }
 0x916   : > { %v3329_v44 = vmul.f32 -1.442695, %v3175_v9  ;;  %v3184_v1 = vand.u32 2147483647, %v3175_v9 }
 0x918   : > { %3630 = vpow2.f32 %v3329_v44  ;;  %v3185_v45 = vadd.f32 1.0, %v3184_v1 }
 0x91a   : > { %3632 = vrcp.f32 %v3185_v45 }
 0x925   : > { %v3631_v50 = vpop.eup %3630 }
 0x926   : > { %v3181_v16 = vadd.f32 1.0, %v3631_v50 }
 0x927   : > { %v3633_v19 = vpop.eup %3632 }
 0x928   : > { %3634 = vrcp.f32 %v3181_v16  ;;  %v3187_v27 = vmul.f32 %v3633_v19, %v3175_v9 }
 0x92a   : > { %v3188_v33 = vmul.f32 0.6981317, %v3187_v27 }
 0x935   : > { %v3635_v62 = vpop.eup %3634 }
 0x936   : > { %v3190_v13 = vsel %vm3189_vm0, %v3635_v62, %v3188_v33 }
 0x937   : > { %3191 = vst.msk [vmem:[%s253_s13] sm:$0xff] %vm2460_vm15, %v3190_v13 }
 0x938   : > { %3769 = shalt.err (!%p3766_p3)
}
 0x939   : > { %s3770_s5 = scalar_lea.hbm %s7764_s10, 128  ;;  %s3774_s30 = scalar_lea.hbm %s7806_s4, 256 }
 0x93a   : > { %p3771_p5 = scmp.ne.s32.totalorder %s7764_s10, %s3770_s5  ;;  %p3775_p11 = scmp.lt.s32.totalorder %s7764_s10, %s7806_s4 }
 0x93b   : > { %p3776_p4 = scmp.lt.s32.totalorder %s3774_s30, %s3770_s5 }
 0x93c   : > { %p3772_p2 = pnand %p3771_p5, %p8879_p12 }
 0x93d   : > { %p3777_p6 = por %p3776_p4, %p3775_p11 }
 0x93e   : > { %p3773_p9 = pneg %p3772_p2 }
 0x940   : > { %p3778_p8 = pnand %p3777_p6, %p3773_p9 }
 0x942   : > { %3781 = shalt.err (!%p3778_p8)
}
 0x943   : > { %3356 = dma.vmem_to_hbm [thread:$0]  (%p8879_p12), %s3207_s14, 128, %s7764_s10, %s3193_s11  }
 0x944 PF: > { %s3218_s29 = sand.u32 1, %s3816_s15   ;;  %p8880_p7 = scmp.ne.s32.totalorder %s8155_s22, 0 }
 0x945   : > { %p8881_p10 = scmp.ge.s32.totalorder %s3828_s18, 2  ;;  %s3219_s7 = scalar_lea.sflag [#allocation4], %s3218_s29 }
 0x947   : > { %p3373_p13 = pnand %p8881_p10, %p8880_p7 }
 0x949   : > { %p3374_p0 = pneg %p3373_p13 }
 0x94b   : > { %3811 = dma.done.wait (%p3374_p0), %s3219_s7, 128  }
 0x94c   : > { %3813 = vsyncadd (%p3374_p0), %s3219_s7, 4294967168  ;;  %p19_p1 = scmp.ge.s32.totalorder %s4047_s24, 4   ;;  %s8882_s15 = smov %s3820_s16 }
 0x94d   : > { %s8883_s16 = smov %s3824_s17  ;;  %s8884_s17 = smov %s4057_s27 }
 0x94e   : > { %s8885_s18 = smov %s4047_s24  ;;  %21 = sbr.rel (!%p19_p1) target bundleno = 7 (0x7), region = 93 }
 0x953   :  { %3224 = vsyncpa [#allocation3], 1 }
 0x954   :  { %3226 = vsyncpa [#allocation3 + $0x1], 1 }
 0x955   :  { %3227 = vsyncpa [#allocation6], 1 }
 0x956   :  { %3228 = vsyncpa [#allocation9], 1 }
 0x957   :  { %3229 = vsyncpa [#allocation4], 1 }
 0x958   :  { %3231 = vsyncpa [#allocation4 + $0x1], 1 }

</bundles_post_ra>
